<compile_context>
chip_gen: v7x
topology: tpu7x:2x2x1
jax: 0.10.0
libtpu: 0.0.40
codegen_flags: <defaults>
</compile_context>

<pallas_src>
import functools

import jax
import jax.numpy as jnp
from jax.experimental import pallas as pl
from jax.experimental.pallas import tpu as pltpu  # noqa: F401  (TPU backend)


# ----------------------------------------------------------------------------
# Pallas kernels: fused matmul + bias + activation (+ fused double residual)
# ----------------------------------------------------------------------------
def _apply_act(y, act):
    if act == "relu":
        return jnp.maximum(y, 0.0)
    if act == "tanh":
        return jnp.tanh(y)
    if act == "leaky_relu":
        return jnp.where(y >= 0.0, y, 0.01 * y)
    return y


def _mm_bias_act_kernel(a_ref, b_ref, bias_ref, o_ref, *, act):
    y = jnp.dot(a_ref[...], b_ref[...], preferred_element_type=jnp.float32)
    o_ref[...] = _apply_act(y + bias_ref[...], act)


def _mm_double_res_kernel(a_ref, b_ref, bias_ref, r_ref, o_ref):
    # ResidualIntermediateBlock tail with outer skip fused:
    #   relu(conv2_out + bias + x) + x
    y = jnp.dot(a_ref[...], b_ref[...], preferred_element_type=jnp.float32)
    r = r_ref[...]
    o_ref[...] = jnp.maximum(y + bias_ref[...] + r, 0.0) + r


def fused_matmul(a, b, bias, act="none", double_residual=None):
    """out = act(a @ b + bias)   or   relu(a @ b + bias + r) + r.

    a:[M,K], b:[K,N]; bias broadcastable to [M,N] ([M,1] or [1,N]).
    Single whole-array block — every operand here fits VMEM trivially, so no grid.
    """
    M, K = a.shape
    K2, N = b.shape
    assert K == K2
    out_shape = jax.ShapeDtypeStruct((M, N), jnp.float32)
    if double_residual is None:
        kernel = functools.partial(_mm_bias_act_kernel, act=act)
        return pl.pallas_call(kernel, out_shape=out_shape)(a, b, bias)
    return pl.pallas_call(_mm_double_res_kernel, out_shape=out_shape)(
        a, b, bias, double_residual)


# ----------------------------------------------------------------------------
# Glue: CNHW im2col, conv / conv-transpose lowering
# ----------------------------------------------------------------------------
def im2col_T(x, kh, kw, stride, pad):
    """x: CNHW [C,N,H,W] -> patches [C*kh*kw, N*Ho*Wo] (row order c*kh*kw + i*kw + j)."""
    C, N, H, W = x.shape
    if pad:
        x = jnp.pad(x, ((0, 0), (0, 0), (pad, pad), (pad, pad)))
    Ho = (H + 2 * pad - kh) // stride + 1
    Wo = (W + 2 * pad - kw) // stride + 1
    cols = [x[:, :, i:i + stride * Ho:stride, j:j + stride * Wo:stride]
            for i in range(kh) for j in range(kw)]
    patches = jnp.stack(cols, axis=1)                      # [C, kh*kw, N, Ho, Wo]
    return patches.reshape(C * kh * kw, N * Ho * Wo), Ho, Wo


def conv2d_T(x, wT, bias, *, act="none", stride=1, pad=0, kernel_size=3,
             double_residual=None):
    """Conv2d (+folded BN, +act) on CNHW input via lane-dense transposed matmul."""
    C, N, H, W = x.shape
    Cout = wT.shape[0]
    xT, Ho, Wo = im2col_T(x, kernel_size, kernel_size, stride, pad)
    res = None
    if double_residual is not None:
        res = double_residual.reshape(Cout, N * Ho * Wo).astype(jnp.float32)
    out = fused_matmul(wT, xT.astype(wT.dtype), bias, act=act, double_residual=res)
    return out.reshape(Cout, N, Ho, Wo)


def conv_transpose_s3k3_T(x, wT2, bias):
    """ConvTranspose2d(k=3, stride=3, non-overlapping) on CNHW: [Cin,N,H,W]->[Cout,N,3H,3W]."""
    Cin, N, H, W = x.shape
    Cout = wT2.shape[0] // 9
    xT = x.reshape(Cin, N * H * W).astype(wT2.dtype)
    out = fused_matmul(wT2, xT, bias, act="none")          # [Cout*9, N*H*W]
    out = out.reshape(Cout, 3, 3, N, H, W).transpose(0, 3, 4, 1, 5, 2)
    return out.reshape(Cout, N, H * 3, W * 3)


def residual_block_fused(x, bp):
    """ResidualIntermediateBlock with the OUTER skip fused into conv2's kernel:
         relu(bn2(conv2(relu(bn1(conv1 x)))) + x) + x
    """
    h = conv2d_T(x, bp["w1T"], bp["b1"], act="relu", stride=1, pad=1)
    return conv2d_T(h, bp["w2T"], bp["b2"], stride=1, pad=1, double_residual=x)


# ----------------------------------------------------------------------------
# Parameter initialization (deterministic, synthetic, torch layout)
# ----------------------------------------------------------------------------
def init_params(key, C, h0, h1, h2, latent, K):
    keys = iter(jax.random.split(key, 64))

    def w(shape, s=0.05):
        return s * jax.random.normal(next(keys), shape, jnp.float32)

    def bn(c):
        g = 1.0 + 0.1 * jax.random.normal(next(keys), (c,), jnp.float32)
        b = 0.1 * jax.random.normal(next(keys), (c,), jnp.float32)
        return g, b

    def resblock(c):
        g1, b1 = bn(c)
        g2, b2 = bn(c)
        return dict(w1=w((c, c, 3, 3)), bn1_g=g1, bn1_b=b1,
                    w2=w((c, c, 3, 3)), bn2_g=g2, bn2_b=b2)

    p = {}
    p["pre_block"] = resblock(C)
    p["emb_conv_w"] = w((h0, C, 3, 3)); p["emb_conv_b"] = w((h0,))
    p["emb_bn_g"], p["emb_bn_b"] = bn(h0)
    p["enc_block"] = resblock(h0)
    p["comb_conv_w"] = w((h1, h0, K, K)); p["comb_conv_b"] = w((h1,))
    p["comb_bn_g"], p["comb_bn_b"] = bn(h1)
    p["fc_enc_w"] = w((h2, h1)); p["fc_enc_b"] = w((h2,))
    p["fc_mu_w"] = w((latent, h2)); p["fc_mu_b"] = w((latent,))
    p["fc_var_w"] = w((latent, h2)); p["fc_var_b"] = w((latent,))
    p["fc_dec_w"] = w((h1, latent)); p["fc_dec_b"] = w((h1,))
    p["decomb_w"] = w((h1, h0, K, K)); p["decomb_b"] = w((h0,))
    p["decomb_bn_g"], p["decomb_bn_b"] = bn(h0)
    p["dec_block"] = resblock(h0)
    p["decemb_w"] = w((h0, C, 3, 3)); p["decemb_b"] = w((C,))
    p["decemb_bn_g"], p["decemb_bn_b"] = bn(C)
    p["post_block"] = resblock(C)
    p["final_conv_w"] = w((C, C, 3, 3)); p["final_conv_b"] = w((C,))
    p["final_bn_g"], p["final_bn_b"] = bn(C)
    return p


# ----------------------------------------------------------------------------
# One-time parameter prep: fold BN into weights, pre-transpose, cast MXU operands
# ----------------------------------------------------------------------------
def bn_fold(gamma, beta, conv_bias=None, eps=1e-5):
    """Eval-mode BN with running_mean=0, running_var=1 folded into scale/bias."""
    scale = gamma / jnp.sqrt(1.0 + eps)
    b = beta if conv_bias is None else beta + conv_bias * scale
    return scale, b


def prepare_params(p):
    def conv_T(wt, g, beta, cb=None):
        s, b = bn_fold(g, beta, cb)
        cout = wt.shape[0]
        wT = (wt.reshape(cout, -1) * s[:, None]).astype(jnp.bfloat16)
        return wT, b.reshape(cout, 1).astype(jnp.float32)

    def resblock(bp):
        w1T, b1 = conv_T(bp["w1"], bp["bn1_g"], bp["bn1_b"])
        w2T, b2 = conv_T(bp["w2"], bp["bn2_g"], bp["bn2_b"])
        return dict(w1T=w1T, b1=b1, w2T=w2T, b2=b2)

    pp = {}
    pp["pre_block"] = resblock(p["pre_block"])
    pp["emb_wT"], pp["emb_b"] = conv_T(
        p["emb_conv_w"], p["emb_bn_g"], p["emb_bn_b"], p["emb_conv_b"])
    pp["enc_block"] = resblock(p["enc_block"])

    # combination conv (k=sqrt_k -> 1x1): batch-rows formulation, scale folded per column
    s, b = bn_fold(p["comb_bn_g"], p["comb_bn_b"], p["comb_conv_b"])
    cout = p["comb_conv_w"].shape[0]
    w2 = p["comb_conv_w"].reshape(cout, -1).T * s[None, :]
    pp["comb_w"] = w2.astype(jnp.float32)
    pp["comb_b"] = b.reshape(1, cout).astype(jnp.float32)

    # FC layers: pre-transposed once; fc_mu / fc_var merged into one matmul
    pp["fc_enc_w"] = p["fc_enc_w"].T.astype(jnp.float32)
    pp["fc_enc_b"] = p["fc_enc_b"].reshape(1, -1).astype(jnp.float32)
    pp["fc_muvar_w"] = jnp.concatenate(
        [p["fc_mu_w"], p["fc_var_w"]], axis=0).T.astype(jnp.float32)
    pp["fc_muvar_b"] = jnp.concatenate(
        [p["fc_mu_b"], p["fc_var_b"]]).reshape(1, -1).astype(jnp.float32)
    pp["fc_dec_w"] = p["fc_dec_w"].T.astype(jnp.float32)
    pp["fc_dec_b"] = p["fc_dec_b"].reshape(1, -1).astype(jnp.float32)

    # decombination ConvTranspose2d (k=sqrt_k, stride=1, 1x1 input): batch-rows form
    s, b = bn_fold(p["decomb_bn_g"], p["decomb_bn_b"], p["decomb_b"])
    cin, cout, K, _ = p["decomb_w"].shape
    w2 = p["decomb_w"].reshape(cin, cout * K * K)
    pp["decomb_w"] = (w2 * jnp.repeat(s, K * K)[None, :]).astype(jnp.float32)
    pp["decomb_b"] = jnp.repeat(b, K * K).reshape(1, -1).astype(jnp.float32)

    # dec embedding ConvTranspose2d (k=3, stride=3): lane-dense transposed form
    s, b = bn_fold(p["decemb_bn_g"], p["decemb_bn_b"], p["decemb_b"])
    cin, cout, kh, kw = p["decemb_w"].shape
    wT2 = p["decemb_w"].transpose(1, 2, 3, 0).reshape(cout * kh * kw, cin)
    pp["decemb_wT"] = (wT2 * jnp.repeat(s, kh * kw)[:, None]).astype(jnp.bfloat16)
    pp["decemb_b"] = jnp.repeat(b, kh * kw).reshape(-1, 1).astype(jnp.float32)

    pp["dec_block"] = resblock(p["dec_block"])
    pp["post_block"] = resblock(p["post_block"])
    pp["final_wT"], pp["final_b"] = conv_T(
        p["final_conv_w"], p["final_bn_g"], p["final_bn_b"], p["final_conv_b"])
    return pp


# ----------------------------------------------------------------------------
# Full forward pass:  returns [recon, input, mu, log_var]
# ----------------------------------------------------------------------------
def layer_vae_forward(pp, x_nchw, eps, *, sqrt_k):
    x = jnp.transpose(x_nchw, (1, 0, 2, 3))            # NCHW -> CNHW (once at entry)

    # ---------------- encode ----------------
    r = residual_block_fused(x, pp["pre_block"])                         # + skip (fused)
    r = conv2d_T(r, pp["emb_wT"], pp["emb_b"], act="none", stride=3, pad=0)
    r = residual_block_fused(r, pp["enc_block"])                         # + skip (fused)

    # combination conv (k=sqrt_k -> 1x1 spatial) + tanh, then torch.squeeze
    Cin, N, Hs, Ws = r.shape
    Xc = jnp.transpose(r, (1, 0, 2, 3)).reshape(N, Cin * Hs * Ws)
    h = fused_matmul(Xc, pp["comb_w"], pp["comb_b"], act="tanh")         # [N, h1]

    h = fused_matmul(h, pp["fc_enc_w"], pp["fc_enc_b"], act="leaky_relu")
    mv = fused_matmul(h, pp["fc_muvar_w"], pp["fc_muvar_b"], act="none")
    latent = mv.shape[1] // 2
    mu, log_var = mv[:, :latent], mv[:, latent:]

    # ---------------- reparameterize (plain jnp; trivially small) ----------------
    z = mu + eps * jnp.exp(0.5 * log_var)

    # ---------------- decode ----------------
    d = fused_matmul(z, pp["fc_dec_w"], pp["fc_dec_b"], act="leaky_relu")

    # decombination ConvTranspose2d (1x1 -> sqrt_k x sqrt_k) + BN + tanh
    out = fused_matmul(d, pp["decomb_w"], pp["decomb_b"], act="tanh")    # [N, h0*K*K]
    h0 = out.shape[1] // (sqrt_k * sqrt_k)
    d = out.reshape(N, h0, sqrt_k, sqrt_k).transpose(1, 0, 2, 3)         # CNHW

    d = residual_block_fused(d, pp["dec_block"])                         # + skip (fused)
    d = conv_transpose_s3k3_T(d, pp["decemb_wT"], pp["decemb_b"])
    d = residual_block_fused(d, pp["post_block"])                        # + skip (fused)
    d = conv2d_T(d, pp["final_wT"], pp["final_b"], act="tanh", stride=1, pad=1)

    recon = jnp.transpose(d, (1, 0, 2, 3))             # CNHW -> NCHW (once at exit)
    return recon, x_nchw, mu, log_var


# ----------------------------------------------------------------------------
# Main
# ----------------------------------------------------------------------------
if __name__ == "__main__":
    # Small shapes consistent with the module:
    #   in_channels=4, hidden_dims=[32,64,128], latent_dim=8, sqrt_number_kernels=8
    #   spatial = 3 * sqrt_number_kernels = 24 so the combination conv yields 1x1.
    B, C, H, W = 2, 4, 24, 24
    H0, H1, H2 = 32, 64, 128
    LATENT, SQRT_K = 8, 8

    key = jax.random.PRNGKey(0)
    k_param, k_x, k_eps = jax.random.split(key, 3)

    raw_params = init_params(k_param, C, H0, H1, H2, LATENT, SQRT_K)
    params = prepare_params(raw_params)                # BN-fold / transpose / cast once
    x = jax.random.normal(k_x, (B, C, H, W), jnp.float32)
    eps = jax.random.normal(k_eps, (B, LATENT), jnp.float32)

    fwd = jax.jit(functools.partial(layer_vae_forward, sqrt_k=SQRT_K))
    recon, inp, mu, log_var = fwd(params, x, eps)
    jax.block_until_ready((recon, inp, mu, log_var))

    assert recon.shape == (B, C, H, W)
    assert inp.shape == (B, C, H, W)
    assert mu.shape == (B, LATENT) and log_var.shape == (B, LATENT)
    print("KERNEL_OK")
</pallas_src>

<mosaic_0001>
module attributes {stable_mosaic.version = 11 : i64} {
  func.func @_mm_bias_act_kernel(%arg0: memref<4x36xbf16, #tpu.memory_space<vmem>>, %arg1: memref<36x1152xbf16, #tpu.memory_space<vmem>>, %arg2: memref<4x1xf32, #tpu.memory_space<vmem>>, %arg3: memref<4x1152xf32, #tpu.memory_space<vmem>>) attributes {dimension_semantics = [], scalar_prefetch = 0 : i64, scratch_operands = 0 : i64, tpu.core_type = #tpu.core_type<tc>} {
    %c0 = arith.constant 0 : index
    %c0_0 = arith.constant 0 : index
    %0 = vector.load %arg0[%c0, %c0_0] : memref<4x36xbf16, #tpu.memory_space<vmem>>, vector<4x36xbf16>
    %c0_1 = arith.constant 0 : index
    %c0_2 = arith.constant 0 : index
    %1 = vector.load %arg1[%c0_1, %c0_2] : memref<36x1152xbf16, #tpu.memory_space<vmem>>, vector<36x1152xbf16>
    %cst = arith.constant dense<0.000000e+00> : vector<4x1152xf32>
    %2 = tpu.matmul %0, %1, %cst {dimension_numbers = #tpu.dot_dimension_numbers<[1], [0], [0], [1], [0, 0, 1, 1], [], []>} : vector<4x36xbf16>, vector<36x1152xbf16>, vector<4x1152xf32> -> vector<4x1152xf32>
    %c0_3 = arith.constant 0 : index
    %c0_4 = arith.constant 0 : index
    %3 = vector.load %arg2[%c0_3, %c0_4] : memref<4x1xf32, #tpu.memory_space<vmem>>, vector<4x1xf32>
    %4 = vector.broadcast %3 : vector<4x1xf32> to vector<4x1152xf32>
    %5 = arith.addf %2, %4 : vector<4x1152xf32>
    %cst_5 = arith.constant 0.000000e+00 : f32
    %6 = vector.broadcast %cst_5 : f32 to vector<4x1152xf32>
    %7 = arith.maximumf %5, %6 : vector<4x1152xf32>
    %c0_6 = arith.constant 0 : index
    %c0_7 = arith.constant 0 : index
    %8 = vector.load %arg3[%c0_6, %c0_7] : memref<4x1152xf32, #tpu.memory_space<vmem>>, vector<4x1152xf32>
    tpu.vector_store %arg3[%c0_6, %c0_7], %7 {strides = array<i32>} : memref<4x1152xf32, #tpu.memory_space<vmem>>, vector<4x1152xf32>,
    return
  }
}

module attributes {stable_mosaic.version = 11 : i64} {
  func.func @_mm_double_res_kernel(%arg0: memref<4x36xbf16, #tpu.memory_space<vmem>>, %arg1: memref<36x1152xbf16, #tpu.memory_space<vmem>>, %arg2: memref<4x1xf32, #tpu.memory_space<vmem>>, %arg3: memref<4x1152xf32, #tpu.memory_space<vmem>>, %arg4: memref<4x1152xf32, #tpu.memory_space<vmem>>) attributes {dimension_semantics = [], scalar_prefetch = 0 : i64, scratch_operands = 0 : i64, tpu.core_type = #tpu.core_type<tc>} {
    %c0 = arith.constant 0 : index
    %c0_0 = arith.constant 0 : index
    %0 = vector.load %arg0[%c0, %c0_0] : memref<4x36xbf16, #tpu.memory_space<vmem>>, vector<4x36xbf16>
    %c0_1 = arith.constant 0 : index
    %c0_2 = arith.constant 0 : index
    %1 = vector.load %arg1[%c0_1, %c0_2] : memref<36x1152xbf16, #tpu.memory_space<vmem>>, vector<36x1152xbf16>
    %cst = arith.constant dense<0.000000e+00> : vector<4x1152xf32>
    %2 = tpu.matmul %0, %1, %cst {dimension_numbers = #tpu.dot_dimension_numbers<[1], [0], [0], [1], [0, 0, 1, 1], [], []>} : vector<4x36xbf16>, vector<36x1152xbf16>, vector<4x1152xf32> -> vector<4x1152xf32>
    %c0_3 = arith.constant 0 : index
    %c0_4 = arith.constant 0 : index
    %3 = vector.load %arg3[%c0_3, %c0_4] : memref<4x1152xf32, #tpu.memory_space<vmem>>, vector<4x1152xf32>
    %c0_5 = arith.constant 0 : index
    %c0_6 = arith.constant 0 : index
    %4 = vector.load %arg2[%c0_5, %c0_6] : memref<4x1xf32, #tpu.memory_space<vmem>>, vector<4x1xf32>
    %5 = vector.broadcast %4 : vector<4x1xf32> to vector<4x1152xf32>
    %6 = arith.addf %2, %5 : vector<4x1152xf32>
    %7 = arith.addf %6, %3 : vector<4x1152xf32>
    %cst_7 = arith.constant 0.000000e+00 : f32
    %8 = vector.broadcast %cst_7 : f32 to vector<4x1152xf32>
    %9 = arith.maximumf %7, %8 : vector<4x1152xf32>
    %10 = arith.addf %9, %3 : vector<4x1152xf32>
    %c0_8 = arith.constant 0 : index
    %c0_9 = arith.constant 0 : index
    %11 = vector.load %arg4[%c0_8, %c0_9] : memref<4x1152xf32, #tpu.memory_space<vmem>>, vector<4x1152xf32>
    tpu.vector_store %arg4[%c0_8, %c0_9], %10 {strides = array<i32>} : memref<4x1152xf32, #tpu.memory_space<vmem>>, vector<4x1152xf32>,
    return
  }
}

module attributes {stable_mosaic.version = 11 : i64} {
  func.func @_mm_bias_act_kernel(%arg0: memref<32x36xbf16, #tpu.memory_space<vmem>>, %arg1: memref<36x128xbf16, #tpu.memory_space<vmem>>, %arg2: memref<32x1xf32, #tpu.memory_space<vmem>>, %arg3: memref<32x128xf32, #tpu.memory_space<vmem>>) attributes {dimension_semantics = [], scalar_prefetch = 0 : i64, scratch_operands = 0 : i64, tpu.core_type = #tpu.core_type<tc>} {
    %c0 = arith.constant 0 : index
    %c0_0 = arith.constant 0 : index
    %0 = vector.load %arg0[%c0, %c0_0] : memref<32x36xbf16, #tpu.memory_space<vmem>>, vector<32x36xbf16>
    %c0_1 = arith.constant 0 : index
    %c0_2 = arith.constant 0 : index
    %1 = vector.load %arg1[%c0_1, %c0_2] : memref<36x128xbf16, #tpu.memory_space<vmem>>, vector<36x128xbf16>
    %cst = arith.constant dense<0.000000e+00> : vector<32x128xf32>
    %2 = tpu.matmul %0, %1, %cst {dimension_numbers = #tpu.dot_dimension_numbers<[1], [0], [0], [1], [0, 0, 1, 1], [], []>} : vector<32x36xbf16>, vector<36x128xbf16>, vector<32x128xf32> -> vector<32x128xf32>
    %c0_3 = arith.constant 0 : index
    %c0_4 = arith.constant 0 : index
    %3 = vector.load %arg2[%c0_3, %c0_4] : memref<32x1xf32, #tpu.memory_space<vmem>>, vector<32x1xf32>
    %4 = vector.broadcast %3 : vector<32x1xf32> to vector<32x128xf32>
    %5 = arith.addf %2, %4 : vector<32x128xf32>
    %c0_5 = arith.constant 0 : index
    %c0_6 = arith.constant 0 : index
    %6 = vector.load %arg3[%c0_5, %c0_6] : memref<32x128xf32, #tpu.memory_space<vmem>>, vector<32x128xf32>
    tpu.vector_store %arg3[%c0_5, %c0_6], %5 {strides = array<i32>} : memref<32x128xf32, #tpu.memory_space<vmem>>, vector<32x128xf32>,
    return
  }
}

module attributes {stable_mosaic.version = 11 : i64} {
  func.func @_mm_bias_act_kernel(%arg0: memref<32x288xbf16, #tpu.memory_space<vmem>>, %arg1: memref<288x128xbf16, #tpu.memory_space<vmem>>, %arg2: memref<32x1xf32, #tpu.memory_space<vmem>>, %arg3: memref<32x128xf32, #tpu.memory_space<vmem>>) attributes {dimension_semantics = [], scalar_prefetch = 0 : i64, scratch_operands = 0 : i64, tpu.core_type = #tpu.core_type<tc>} {
    %c0 = arith.constant 0 : index
    %c0_0 = arith.constant 0 : index
    %0 = vector.load %arg0[%c0, %c0_0] : memref<32x288xbf16, #tpu.memory_space<vmem>>, vector<32x288xbf16>
    %c0_1 = arith.constant 0 : index
    %c0_2 = arith.constant 0 : index
    %1 = vector.load %arg1[%c0_1, %c0_2] : memref<288x128xbf16, #tpu.memory_space<vmem>>, vector<288x128xbf16>
    %cst = arith.constant dense<0.000000e+00> : vector<32x128xf32>
    %2 = tpu.matmul %0, %1, %cst {dimension_numbers = #tpu.dot_dimension_numbers<[1], [0], [0], [1], [0, 0, 1, 1], [], []>} : vector<32x288xbf16>, vector<288x128xbf16>, vector<32x128xf32> -> vector<32x128xf32>
    %c0_3 = arith.constant 0 : index
    %c0_4 = arith.constant 0 : index
    %3 = vector.load %arg2[%c0_3, %c0_4] : memref<32x1xf32, #tpu.memory_space<vmem>>, vector<32x1xf32>
    %4 = vector.broadcast %3 : vector<32x1xf32> to vector<32x128xf32>
    %5 = arith.addf %2, %4 : vector<32x128xf32>
    %cst_5 = arith.constant 0.000000e+00 : f32
    %6 = vector.broadcast %cst_5 : f32 to vector<32x128xf32>
    %7 = arith.maximumf %5, %6 : vector<32x128xf32>
    %c0_6 = arith.constant 0 : index
    %c0_7 = arith.constant 0 : index
    %8 = vector.load %arg3[%c0_6, %c0_7] : memref<32x128xf32, #tpu.memory_space<vmem>>, vector<32x128xf32>
    tpu.vector_store %arg3[%c0_6, %c0_7], %7 {strides = array<i32>} : memref<32x128xf32, #tpu.memory_space<vmem>>, vector<32x128xf32>,
    return
  }
}

module attributes {stable_mosaic.version = 11 : i64} {
  func.func @_mm_double_res_kernel(%arg0: memref<32x288xbf16, #tpu.memory_space<vmem>>, %arg1: memref<288x128xbf16, #tpu.memory_space<vmem>>, %arg2: memref<32x1xf32, #tpu.memory_space<vmem>>, %arg3: memref<32x128xf32, #tpu.memory_space<vmem>>, %arg4: memref<32x128xf32, #tpu.memory_space<vmem>>) attributes {dimension_semantics = [], scalar_prefetch = 0 : i64, scratch_operands = 0 : i64, tpu.core_type = #tpu.core_type<tc>} {
    %c0 = arith.constant 0 : index
    %c0_0 = arith.constant 0 : index
    %0 = vector.load %arg0[%c0, %c0_0] : memref<32x288xbf16, #tpu.memory_space<vmem>>, vector<32x288xbf16>
    %c0_1 = arith.constant 0 : index
    %c0_2 = arith.constant 0 : index
    %1 = vector.load %arg1[%c0_1, %c0_2] : memref<288x128xbf16, #tpu.memory_space<vmem>>, vector<288x128xbf16>
    %cst = arith.constant dense<0.000000e+00> : vector<32x128xf32>
    %2 = tpu.matmul %0, %1, %cst {dimension_numbers = #tpu.dot_dimension_numbers<[1], [0], [0], [1], [0, 0, 1, 1], [], []>} : vector<32x288xbf16>, vector<288x128xbf16>, vector<32x128xf32> -> vector<32x128xf32>
    %c0_3 = arith.constant 0 : index
    %c0_4 = arith.constant 0 : index
    %3 = vector.load %arg3[%c0_3, %c0_4] : memref<32x128xf32, #tpu.memory_space<vmem>>, vector<32x128xf32>
    %c0_5 = arith.constant 0 : index
    %c0_6 = arith.constant 0 : index
    %4 = vector.load %arg2[%c0_5, %c0_6] : memref<32x1xf32, #tpu.memory_space<vmem>>, vector<32x1xf32>
    %5 = vector.broadcast %4 : vector<32x1xf32> to vector<32x128xf32>
    %6 = arith.addf %2, %5 : vector<32x128xf32>
    %7 = arith.addf %6, %3 : vector<32x128xf32>
    %cst_7 = arith.constant 0.000000e+00 : f32
    %8 = vector.broadcast %cst_7 : f32 to vector<32x128xf32>
    %9 = arith.maximumf %7, %8 : vector<32x128xf32>
    %10 = arith.addf %9, %3 : vector<32x128xf32>
    %c0_8 = arith.constant 0 : index
    %c0_9 = arith.constant 0 : index
    %11 = vector.load %arg4[%c0_8, %c0_9] : memref<32x128xf32, #tpu.memory_space<vmem>>, vector<32x128xf32>
    tpu.vector_store %arg4[%c0_8, %c0_9], %10 {strides = array<i32>} : memref<32x128xf32, #tpu.memory_space<vmem>>, vector<32x128xf32>,
    return
  }
}

module attributes {stable_mosaic.version = 11 : i64} {
  func.func @_mm_bias_act_kernel(%arg0: memref<2x2048xf32, #tpu.memory_space<vmem>>, %arg1: memref<2048x64xf32, #tpu.memory_space<vmem>>, %arg2: memref<1x64xf32, #tpu.memory_space<vmem>>, %arg3: memref<2x64xf32, #tpu.memory_space<vmem>>) attributes {dimension_semantics = [], scalar_prefetch = 0 : i64, scratch_operands = 0 : i64, tpu.core_type = #tpu.core_type<tc>} {
    %c0 = arith.constant 0 : index
    %c0_0 = arith.constant 0 : index
    %0 = vector.load %arg0[%c0, %c0_0] : memref<2x2048xf32, #tpu.memory_space<vmem>>, vector<2x2048xf32>
    %c0_1 = arith.constant 0 : index
    %c0_2 = arith.constant 0 : index
    %1 = vector.load %arg1[%c0_1, %c0_2] : memref<2048x64xf32, #tpu.memory_space<vmem>>, vector<2048x64xf32>
    %cst = arith.constant dense<0.000000e+00> : vector<2x64xf32>
    %2 = tpu.matmul %0, %1, %cst {dimension_numbers = #tpu.dot_dimension_numbers<[1], [0], [0], [1], [0, 0, 1, 1], [], []>} : vector<2x2048xf32>, vector<2048x64xf32>, vector<2x64xf32> -> vector<2x64xf32>
    %c0_3 = arith.constant 0 : index
    %c0_4 = arith.constant 0 : index
    %3 = vector.load %arg2[%c0_3, %c0_4] : memref<1x64xf32, #tpu.memory_space<vmem>>, vector<1x64xf32>
    %4 = vector.broadcast %3 : vector<1x64xf32> to vector<2x64xf32>
    %5 = arith.addf %2, %4 : vector<2x64xf32>
    %6 = math.tanh %5 : vector<2x64xf32>
    %c0_5 = arith.constant 0 : index
    %c0_6 = arith.constant 0 : index
    %7 = vector.load %arg3[%c0_5, %c0_6] : memref<2x64xf32, #tpu.memory_space<vmem>>, vector<2x64xf32>
    tpu.vector_store %arg3[%c0_5, %c0_6], %6 {strides = array<i32>} : memref<2x64xf32, #tpu.memory_space<vmem>>, vector<2x64xf32>,
    return
  }
}

module attributes {stable_mosaic.version = 11 : i64} {
  func.func @_mm_bias_act_kernel(%arg0: memref<2x64xf32, #tpu.memory_space<vmem>>, %arg1: memref<64x128xf32, #tpu.memory_space<vmem>>, %arg2: memref<1x128xf32, #tpu.memory_space<vmem>>, %arg3: memref<2x128xf32, #tpu.memory_space<vmem>>) attributes {dimension_semantics = [], scalar_prefetch = 0 : i64, scratch_operands = 0 : i64, tpu.core_type = #tpu.core_type<tc>} {
    %c0 = arith.constant 0 : index
    %c0_0 = arith.constant 0 : index
    %0 = vector.load %arg0[%c0, %c0_0] : memref<2x64xf32, #tpu.memory_space<vmem>>, vector<2x64xf32>
    %c0_1 = arith.constant 0 : index
    %c0_2 = arith.constant 0 : index
    %1 = vector.load %arg1[%c0_1, %c0_2] : memref<64x128xf32, #tpu.memory_space<vmem>>, vector<64x128xf32>
    %cst = arith.constant dense<0.000000e+00> : vector<2x128xf32>
    %2 = tpu.matmul %0, %1, %cst {dimension_numbers = #tpu.dot_dimension_numbers<[1], [0], [0], [1], [0, 0, 1, 1], [], []>} : vector<2x64xf32>, vector<64x128xf32>, vector<2x128xf32> -> vector<2x128xf32>
    %c0_3 = arith.constant 0 : index
    %c0_4 = arith.constant 0 : index
    %3 = vector.load %arg2[%c0_3, %c0_4] : memref<1x128xf32, #tpu.memory_space<vmem>>, vector<1x128xf32>
    %4 = vector.broadcast %3 : vector<1x128xf32> to vector<2x128xf32>
    %5 = arith.addf %2, %4 : vector<2x128xf32>
    %cst_5 = arith.constant 0.000000e+00 : f32
    %6 = vector.broadcast %cst_5 : f32 to vector<2x128xf32>
    %7 = arith.cmpf oge, %5, %6 : vector<2x128xf32>
    %cst_6 = arith.constant 0.00999999977 : f32
    %8 = vector.broadcast %cst_6 : f32 to vector<2x128xf32>
    %9 = arith.mulf %8, %5 : vector<2x128xf32>
    %10 = arith.select %7, %5, %9 : vector<2x128xi1>, vector<2x128xf32>
    %c0_7 = arith.constant 0 : index
    %c0_8 = arith.constant 0 : index
    %11 = vector.load %arg3[%c0_7, %c0_8] : memref<2x128xf32, #tpu.memory_space<vmem>>, vector<2x128xf32>
    tpu.vector_store %arg3[%c0_7, %c0_8], %10 {strides = array<i32>} : memref<2x128xf32, #tpu.memory_space<vmem>>, vector<2x128xf32>,
    return
  }
}

module attributes {stable_mosaic.version = 11 : i64} {
  func.func @_mm_bias_act_kernel(%arg0: memref<2x128xf32, #tpu.memory_space<vmem>>, %arg1: memref<128x16xf32, #tpu.memory_space<vmem>>, %arg2: memref<1x16xf32, #tpu.memory_space<vmem>>, %arg3: memref<2x16xf32, #tpu.memory_space<vmem>>) attributes {dimension_semantics = [], scalar_prefetch = 0 : i64, scratch_operands = 0 : i64, tpu.core_type = #tpu.core_type<tc>} {
    %c0 = arith.constant 0 : index
    %c0_0 = arith.constant 0 : index
    %0 = vector.load %arg0[%c0, %c0_0] : memref<2x128xf32, #tpu.memory_space<vmem>>, vector<2x128xf32>
    %c0_1 = arith.constant 0 : index
    %c0_2 = arith.constant 0 : index
    %1 = vector.load %arg1[%c0_1, %c0_2] : memref<128x16xf32, #tpu.memory_space<vmem>>, vector<128x16xf32>
    %cst = arith.constant dense<0.000000e+00> : vector<2x16xf32>
    %2 = tpu.matmul %0, %1, %cst {dimension_numbers = #tpu.dot_dimension_numbers<[1], [0], [0], [1], [0, 0, 1, 1], [], []>} : vector<2x128xf32>, vector<128x16xf32>, vector<2x16xf32> -> vector<2x16xf32>
    %c0_3 = arith.constant 0 : index
    %c0_4 = arith.constant 0 : index
    %3 = vector.load %arg2[%c0_3, %c0_4] : memref<1x16xf32, #tpu.memory_space<vmem>>, vector<1x16xf32>
    %4 = vector.broadcast %3 : vector<1x16xf32> to vector<2x16xf32>
    %5 = arith.addf %2, %4 : vector<2x16xf32>
    %c0_5 = arith.constant 0 : index
    %c0_6 = arith.constant 0 : index
    %6 = vector.load %arg3[%c0_5, %c0_6] : memref<2x16xf32, #tpu.memory_space<vmem>>, vector<2x16xf32>
    tpu.vector_store %arg3[%c0_5, %c0_6], %5 {strides = array<i32>} : memref<2x16xf32, #tpu.memory_space<vmem>>, vector<2x16xf32>,
    return
  }
}

module attributes {stable_mosaic.version = 11 : i64} {
  func.func @_mm_bias_act_kernel(%arg0: memref<2x8xf32, #tpu.memory_space<vmem>>, %arg1: memref<8x64xf32, #tpu.memory_space<vmem>>, %arg2: memref<1x64xf32, #tpu.memory_space<vmem>>, %arg3: memref<2x64xf32, #tpu.memory_space<vmem>>) attributes {dimension_semantics = [], scalar_prefetch = 0 : i64, scratch_operands = 0 : i64, tpu.core_type = #tpu.core_type<tc>} {
    %c0 = arith.constant 0 : index
    %c0_0 = arith.constant 0 : index
    %0 = vector.load %arg0[%c0, %c0_0] : memref<2x8xf32, #tpu.memory_space<vmem>>, vector<2x8xf32>
    %c0_1 = arith.constant 0 : index
    %c0_2 = arith.constant 0 : index
    %1 = vector.load %arg1[%c0_1, %c0_2] : memref<8x64xf32, #tpu.memory_space<vmem>>, vector<8x64xf32>
    %cst = arith.constant dense<0.000000e+00> : vector<2x64xf32>
    %2 = tpu.matmul %0, %1, %cst {dimension_numbers = #tpu.dot_dimension_numbers<[1], [0], [0], [1], [0, 0, 1, 1], [], []>} : vector<2x8xf32>, vector<8x64xf32>, vector<2x64xf32> -> vector<2x64xf32>
    %c0_3 = arith.constant 0 : index
    %c0_4 = arith.constant 0 : index
    %3 = vector.load %arg2[%c0_3, %c0_4] : memref<1x64xf32, #tpu.memory_space<vmem>>, vector<1x64xf32>
    %4 = vector.broadcast %3 : vector<1x64xf32> to vector<2x64xf32>
    %5 = arith.addf %2, %4 : vector<2x64xf32>
    %cst_5 = arith.constant 0.000000e+00 : f32
    %6 = vector.broadcast %cst_5 : f32 to vector<2x64xf32>
    %7 = arith.cmpf oge, %5, %6 : vector<2x64xf32>
    %cst_6 = arith.constant 0.00999999977 : f32
    %8 = vector.broadcast %cst_6 : f32 to vector<2x64xf32>
    %9 = arith.mulf %8, %5 : vector<2x64xf32>
    %10 = arith.select %7, %5, %9 : vector<2x64xi1>, vector<2x64xf32>
    %c0_7 = arith.constant 0 : index
    %c0_8 = arith.constant 0 : index
    %11 = vector.load %arg3[%c0_7, %c0_8] : memref<2x64xf32, #tpu.memory_space<vmem>>, vector<2x64xf32>
    tpu.vector_store %arg3[%c0_7, %c0_8], %10 {strides = array<i32>} : memref<2x64xf32, #tpu.memory_space<vmem>>, vector<2x64xf32>,
    return
  }
}

module attributes {stable_mosaic.version = 11 : i64} {
  func.func @_mm_bias_act_kernel(%arg0: memref<2x64xf32, #tpu.memory_space<vmem>>, %arg1: memref<64x2048xf32, #tpu.memory_space<vmem>>, %arg2: memref<1x2048xf32, #tpu.memory_space<vmem>>, %arg3: memref<2x2048xf32, #tpu.memory_space<vmem>>) attributes {dimension_semantics = [], scalar_prefetch = 0 : i64, scratch_operands = 0 : i64, tpu.core_type = #tpu.core_type<tc>} {
    %c0 = arith.constant 0 : index
    %c0_0 = arith.constant 0 : index
    %0 = vector.load %arg0[%c0, %c0_0] : memref<2x64xf32, #tpu.memory_space<vmem>>, vector<2x64xf32>
    %c0_1 = arith.constant 0 : index
    %c0_2 = arith.constant 0 : index
    %1 = vector.load %arg1[%c0_1, %c0_2] : memref<64x2048xf32, #tpu.memory_space<vmem>>, vector<64x2048xf32>
    %cst = arith.constant dense<0.000000e+00> : vector<2x2048xf32>
    %2 = tpu.matmul %0, %1, %cst {dimension_numbers = #tpu.dot_dimension_numbers<[1], [0], [0], [1], [0, 0, 1, 1], [], []>} : vector<2x64xf32>, vector<64x2048xf32>, vector<2x2048xf32> -> vector<2x2048xf32>
    %c0_3 = arith.constant 0 : index
    %c0_4 = arith.constant 0 : index
    %3 = vector.load %arg2[%c0_3, %c0_4] : memref<1x2048xf32, #tpu.memory_space<vmem>>, vector<1x2048xf32>
    %4 = vector.broadcast %3 : vector<1x2048xf32> to vector<2x2048xf32>
    %5 = arith.addf %2, %4 : vector<2x2048xf32>
    %6 = math.tanh %5 : vector<2x2048xf32>
    %c0_5 = arith.constant 0 : index
    %c0_6 = arith.constant 0 : index
    %7 = vector.load %arg3[%c0_5, %c0_6] : memref<2x2048xf32, #tpu.memory_space<vmem>>, vector<2x2048xf32>
    tpu.vector_store %arg3[%c0_5, %c0_6], %6 {strides = array<i32>} : memref<2x2048xf32, #tpu.memory_space<vmem>>, vector<2x2048xf32>,
    return
  }
}

module attributes {stable_mosaic.version = 11 : i64} {
  func.func @_mm_bias_act_kernel(%arg0: memref<36x32xbf16, #tpu.memory_space<vmem>>, %arg1: memref<32x128xbf16, #tpu.memory_space<vmem>>, %arg2: memref<36x1xf32, #tpu.memory_space<vmem>>, %arg3: memref<36x128xf32, #tpu.memory_space<vmem>>) attributes {dimension_semantics = [], scalar_prefetch = 0 : i64, scratch_operands = 0 : i64, tpu.core_type = #tpu.core_type<tc>} {
    %c0 = arith.constant 0 : index
    %c0_0 = arith.constant 0 : index
    %0 = vector.load %arg0[%c0, %c0_0] : memref<36x32xbf16, #tpu.memory_space<vmem>>, vector<36x32xbf16>
    %c0_1 = arith.constant 0 : index
    %c0_2 = arith.constant 0 : index
    %1 = vector.load %arg1[%c0_1, %c0_2] : memref<32x128xbf16, #tpu.memory_space<vmem>>, vector<32x128xbf16>
    %cst = arith.constant dense<0.000000e+00> : vector<36x128xf32>
    %2 = tpu.matmul %0, %1, %cst {dimension_numbers = #tpu.dot_dimension_numbers<[1], [0], [0], [1], [0, 0, 1, 1], [], []>} : vector<36x32xbf16>, vector<32x128xbf16>, vector<36x128xf32> -> vector<36x128xf32>
    %c0_3 = arith.constant 0 : index
    %c0_4 = arith.constant 0 : index
    %3 = vector.load %arg2[%c0_3, %c0_4] : memref<36x1xf32, #tpu.memory_space<vmem>>, vector<36x1xf32>
    %4 = vector.broadcast %3 : vector<36x1xf32> to vector<36x128xf32>
    %5 = arith.addf %2, %4 : vector<36x128xf32>
    %c0_5 = arith.constant 0 : index
    %c0_6 = arith.constant 0 : index
    %6 = vector.load %arg3[%c0_5, %c0_6] : memref<36x128xf32, #tpu.memory_space<vmem>>, vector<36x128xf32>
    tpu.vector_store %arg3[%c0_5, %c0_6], %5 {strides = array<i32>} : memref<36x128xf32, #tpu.memory_space<vmem>>, vector<36x128xf32>,
    return
  }
}

module attributes {stable_mosaic.version = 11 : i64} {
  func.func @_mm_bias_act_kernel(%arg0: memref<4x36xbf16, #tpu.memory_space<vmem>>, %arg1: memref<36x1152xbf16, #tpu.memory_space<vmem>>, %arg2: memref<4x1xf32, #tpu.memory_space<vmem>>, %arg3: memref<4x1152xf32, #tpu.memory_space<vmem>>) attributes {dimension_semantics = [], scalar_prefetch = 0 : i64, scratch_operands = 0 : i64, tpu.core_type = #tpu.core_type<tc>} {
    %c0 = arith.constant 0 : index
    %c0_0 = arith.constant 0 : index
    %0 = vector.load %arg0[%c0, %c0_0] : memref<4x36xbf16, #tpu.memory_space<vmem>>, vector<4x36xbf16>
    %c0_1 = arith.constant 0 : index
    %c0_2 = arith.constant 0 : index
    %1 = vector.load %arg1[%c0_1, %c0_2] : memref<36x1152xbf16, #tpu.memory_space<vmem>>, vector<36x1152xbf16>
    %cst = arith.constant dense<0.000000e+00> : vector<4x1152xf32>
    %2 = tpu.matmul %0, %1, %cst {dimension_numbers = #tpu.dot_dimension_numbers<[1], [0], [0], [1], [0, 0, 1, 1], [], []>} : vector<4x36xbf16>, vector<36x1152xbf16>, vector<4x1152xf32> -> vector<4x1152xf32>
    %c0_3 = arith.constant 0 : index
    %c0_4 = arith.constant 0 : index
    %3 = vector.load %arg2[%c0_3, %c0_4] : memref<4x1xf32, #tpu.memory_space<vmem>>, vector<4x1xf32>
    %4 = vector.broadcast %3 : vector<4x1xf32> to vector<4x1152xf32>
    %5 = arith.addf %2, %4 : vector<4x1152xf32>
    %6 = math.tanh %5 : vector<4x1152xf32>
    %c0_5 = arith.constant 0 : index
    %c0_6 = arith.constant 0 : index
    %7 = vector.load %arg3[%c0_5, %c0_6] : memref<4x1152xf32, #tpu.memory_space<vmem>>, vector<4x1152xf32>
    tpu.vector_store %arg3[%c0_5, %c0_6], %6 {strides = array<i32>} : memref<4x1152xf32, #tpu.memory_space<vmem>>, vector<4x1152xf32>,
    return
  }
}

</mosaic_0001>

<bundles_post_ra>
// kernel: layer_vae_forward.16
= control target key start
LH: loop header
LB: loop body
LE: loop exit
PB: predicated region body
PF: predicated region fallthrough
CT: control target
= control target key end

     0   :  { %v521_v1 = vmov 0   ;;  %vm166_vm0 = vcmask 1041408   ;;  %vm162_vm1 = vcmask 293888   ;;  %v522_v36 = vmov 0.0   ;;  %s648_s1 = inlined_call_operand.vmem [shape: bf16[36,1152], index: 1, kind: input, shape index: {}]   ;;  %s649_s0 = inlined_call_operand.vmem [shape: bf16[4,36], index: 0, kind: input, shape index: {}]   ;;  %s650_s2 = inlined_call_operand.vmem [shape: f32[4,1], index: 2, kind: input, shape index: {}]   ;;  %s651_s3 = inlined_call_operand.vmem [shape: f32[4,1152], index: 3, kind: output, shape index: {}]  }
   0x1   :  { %v486_v0 = vld [vmem:[%s648_s1 + $0x4] ss:$36 sps:$4 sm:$0xff]   ;;  %226 = vmatprep.mubr.bf16.mxu0 %v521_v1  ;;  %267 = vmatprep.mubr.bf16.mxu1 %v521_v1  ;;  %v489_v3 = vld [vmem:[%s648_s1 + $0x4c] ss:$36 sps:$4 sm:$0xff]   ;;  %v497_v10 = vld [vmem:[%s648_s1 + $0x54] ss:$36 sps:$4 sm:$0xff]  }
   0x2   :  { %v488_v2 = vld [vmem:[%s648_s1] ss:$36 sps:$4 sm:$0xff]   ;;  %485 = vset.pattern.permute.xlu0 %v521_v1  ;;  %194 = vmatprep.subr.bf16.mxu0 %v486_v0  ;;  %v491_v4 = vld [vmem:[%s648_s1 + $0x48] ss:$36 sps:$4 sm:$0xff]   ;;  %v36_v7 = vld [vmem:[%s648_s1 + $0x90] sm:$0x33] }
   0x3   :  { %195 = vmatpush1.bf16.msra.mxu0 %v488_v2  ;;  %v492_v5 = vld [vmem:[%s648_s1 + $0xc] ss:$36 sps:$4 sm:$0xff]   ;;  %v451_v8 = vcombine.high %v36_v7, %v36_v7  ;;  %v450_v9 = vcombine.low %v36_v7, %v36_v7  ;;  %v37_v12 = vld [vmem:[%s648_s1 + $0x98] sm:$0x33]  ;;  %v15_v17 = vld [vmem:[%s649_s0] sm:$0x3] }
   0x4   :  { %v494_v6 = vld [vmem:[%s648_s1 + $0x8] ss:$36 sps:$4 sm:$0xff]   ;;  %196 = vmatprep.subr.bf16.mxu0 %v489_v3  ;;  %235 = vmatprep.subr.bf16.mxu1 %v492_v5  ;;  %v499_v11 = vld [vmem:[%s648_s1 + $0x50] ss:$36 sps:$4 sm:$0xff]   ;;  %v453_v15 = vcombine.high %v37_v12, %v37_v12  ;;  %v452_v16 = vcombine.low %v37_v12, %v37_v12  ;;  %v510_v20 = vld [vmem:[%s648_s1 + $0x1c] ss:$36 sps:$4 sm:$0xff]  }
   0x5   :  { %236 = vmatpush1.bf16.msra.mxu1 %v494_v6  ;;  %v168_v13 = vsel %vm166_vm0, %v450_v9, 0  ;;  %v502_v14 = vld [vmem:[%s648_s1 + $0x14] ss:$36 sps:$4 sm:$0xff]   ;;  %v507_v21 = vld [vmem:[%s648_s1 + $0x5c] ss:$36 sps:$4 sm:$0xff]   ;;  %vm523_vm2 = vmmov 0  }
   0x6   :  { %237 = vmatprep.subr.bf16.mxu1 %v497_v10  ;;  %v500_v18 = vld [vmem:[%s648_s1 + $0x10] ss:$36 sps:$4 sm:$0xff]   ;;  %v174_v19 = vsel %vm166_vm0, %v452_v16, 0  ;;  %v38_v22 = vld [vmem:[%s648_s1 + $0xa0] sm:$0x33] }
   0x7   :  { %197 = vmatpush1.bf16.msra.mxu0 %v491_v4  ;;  %v508_v23 = vld [vmem:[%s648_s1 + $0x18] ss:$36 sps:$4 sm:$0xff]   ;;  %v515_v25 = vld [vmem:[%s648_s1 + $0x64] ss:$36 sps:$4 sm:$0xff]   ;;  %v41_v26 = vld [vmem:[%s650_s2] sm:$0xf]  ;;  %v455_v27 = vcombine.high %v38_v22, %v38_v22  ;;  %v454_v28 = vcombine.low %v38_v22, %v38_v22 }
   0x8   :  { %459 = vmatprep.subr.msk.bf16.mxu0 %vm166_vm0, %v451_v8  ;;  %v505_v24 = vld [vmem:[%s648_s1 + $0x58] ss:$36 sps:$4 sm:$0xff]   ;;  %v39_v29 = vld [vmem:[%s648_s1 + $0xa8] sm:$0x33]  ;;  %44 = vperm.xlu0 %485, %v41_v26   ;;  %v513_v30 = vld [vmem:[%s648_s1 + $0x60] ss:$36 sps:$4 sm:$0xff]  }
   0x9   :  { %238 = vmatpush1.bf16.msra.mxu1 %v499_v11  ;;  %v457_v31 = vcombine.high %v39_v29, %v39_v29  ;;  %v456_v32 = vcombine.low %v39_v29, %v39_v29  ;;  %v180_v33 = vsel %vm166_vm0, %v454_v28, 0  ;;  %v516_v34 = vld [vmem:[%s648_s1 + $0x20] ss:$36 sps:$4 sm:$0xff]   ;;  %v519_v37 = vld [vmem:[%s648_s1 + $0x68] ss:$36 sps:$4 sm:$0xff]  }
   0xa   :  { %461 = vmatprep.subr.msk.bf16.mxu1 %vm166_vm0, %v453_v15  ;;  %v520_v38 = vld [vmem:[%s648_s1 + $0xb0] ss:$0 sps:$4 sm:$0x33]  }
   0xb   :  { %199 = vmatpush1.bf16.msra.mxu0 %v168_v13  ;;  %v186_v35 = vsel %vm166_vm0, %v456_v32, 0  ;;  %v192_v39 = vsel %vm166_vm0, %v520_v38, 0 }
   0xc   :  { %276 = vmatprep.subr.bf16.mxu0 %v502_v14 }
   0xd   :  { %240 = vmatpush1.bf16.msra.mxu1 %v174_v19 }
   0xe   :  { %460 = vmatmul.mubr.msk.bf16.vlgmr.msra.gmra.mrb[0].mxu0 %vm162_vm1, %v15_v17  ;;  %317 = vmatprep.subr.bf16.mxu1 %v510_v20 }
   0xf   :  { %277 = vmatpush1.bf16.msra.mxu0 %v500_v18  ;;  %308 = vmatprep.mubr.bf16.mxu0 %v521_v1 }
  0x10   :  { %278 = vmatprep.subr.bf16.mxu0 %v507_v21  ;;  %462 = vmatmul.mubr.msk.bf16.vlgmr.msra.gmra.mrb[0].mxu1 %vm162_vm1, %v15_v17 }
  0x11   :  { %318 = vmatpush1.bf16.msra.mxu1 %v508_v23  ;;  %349 = vmatprep.mubr.bf16.mxu1 %v521_v1 }
  0x12   :  { %319 = vmatprep.subr.bf16.mxu1 %v515_v25 }
  0x13   :  { %279 = vmatpush1.bf16.msra.mxu0 %v505_v24 }
  0x14   :  { %463 = vmatprep.subr.msk.bf16.mxu0 %vm166_vm0, %v455_v27 }
  0x15   :  { %320 = vmatpush1.bf16.msra.mxu1 %v513_v30 }
  0x16   :  { %465 = vmatprep.subr.msk.bf16.mxu1 %vm166_vm0, %v457_v31 }
  0x17   :  { %281 = vmatpush1.bf16.msra.mxu0 %v180_v33 }
  0x18   :  { %472 = vmatprep.subr.bf16.mxu0 %v522_v36 }
  0x19   :  { %322 = vmatpush1.bf16.msra.mxu1 %v186_v35 }
  0x1a   :  { %464 = vmatmul.mubr.msk.bf16.vlgmr.msra.gmra.mrb[4].mxu0 %vm162_vm1, %v15_v17 }
  0x1b   :  { %473 = vmatpush3.bf16.msra.mxu0 %v516_v34  ;;  %478 = vmatprep.mubr.msk.bf16.mxu0 %vm523_vm2, %v522_v36 }
  0x1c   :  { %474 = vmatprep.subr.bf16.mxu0 %v522_v36  ;;  %466 = vmatmul.mubr.msk.bf16.vlgmr.msra.gmra.mrb[4].mxu1 %vm162_vm1, %v15_v17 }
  0x1f   :  { %475 = vmatpush3.bf16.msra.mxu0 %v519_v37 }
  0x20   :  { %476 = vmatprep.subr.bf16.mxu0 %v522_v36 }
  0x23   :  { %477 = vmatpush3.bf16.msra.mxu0 %v192_v39 }
  0x26   :  { %479 = vmatmul.mubr.msk.bf16.vlgmr.msra.gmra.mrb[8].mxu0 %vm162_vm1, %v15_v17 }
  0x87   :  { %v45_v40 = vpop.permute.xlu0 %44 }
  0xe1   :  { %v228_v41 = vpop.f32.mrb[0].mxu0 }
  0xe2   :  { %v229_v42 = vadd.f32 %v228_v41, %v45_v40  ;;  %v230_v43 = vpop.f32.mrb[1].mxu0 }
  0xe3   :  { %v231_v44 = vadd.f32 %v230_v43, %v45_v40  ;;  %v232_v45 = vpop.f32.mrb[2].mxu0  ;;  %v269_v48 = vpop.f32.mrb[0].mxu1 }
  0xe4   :  { %v398_v46 = vmax.f32 %v229_v42, 0.0  ;;  %v233_v47 = vpop.f32.mrb[3].mxu0  ;;  %v270_v50 = vadd.f32 %v269_v48, %v45_v40  ;;  %v271_v51 = vpop.f32.mrb[1].mxu1 }
  0xe5   :  { %v399_v49 = vmax.f32 %v231_v44, 0.0  ;;  %v272_v52 = vadd.f32 %v271_v51, %v45_v40  ;;  %v273_v53 = vpop.f32.mrb[2].mxu1 }
  0xe6   :  { %v400_v55 = vmax.f32 %v270_v50, 0.0  ;;  %v274_v56 = vpop.f32.mrb[3].mxu1 }
  0xe7   :  { %v415_v54 = vcombine.low %v398_v46, %v399_v49  ;;  %v401_v57 = vmax.f32 %v272_v52, 0.0 }
  0xe9   :  { %423 = vst [vmem:[%s651_s3] sm:$0xff] %v415_v54  ;;  %v416_v58 = vcombine.low %v400_v55, %v401_v57 }
  0xeb   :  { %424 = vst [vmem:[%s651_s3 + $0x8] sm:$0xff] %v416_v58 }
  0xed   :  { %v310_v59 = vpop.f32.mrb[4].mxu0 }
  0xee   :  { %v311_v60 = vadd.f32 %v310_v59, %v45_v40  ;;  %v312_v61 = vpop.f32.mrb[5].mxu0 }
  0xef   :  { %v313_v62 = vadd.f32 %v312_v61, %v45_v40  ;;  %v314_v63 = vpop.f32.mrb[6].mxu0  ;;  %v351_v2 = vpop.f32.mrb[4].mxu1 }
  0xf0   :  { %v402_v0 = vmax.f32 %v311_v60, 0.0  ;;  %v315_v1 = vpop.f32.mrb[7].mxu0  ;;  %v352_v4 = vadd.f32 %v351_v2, %v45_v40  ;;  %v353_v5 = vpop.f32.mrb[5].mxu1 }
  0xf1   :  { %v403_v3 = vmax.f32 %v313_v62, 0.0  ;;  %v354_v6 = vadd.f32 %v353_v5, %v45_v40  ;;  %v355_v7 = vpop.f32.mrb[6].mxu1 }
  0xf2   :  { %v404_v9 = vmax.f32 %v352_v4, 0.0  ;;  %v356_v10 = vpop.f32.mrb[7].mxu1 }
  0xf3   :  { %v417_v8 = vcombine.low %v402_v0, %v403_v3  ;;  %v405_v11 = vmax.f32 %v354_v6, 0.0 }
  0xf5   :  { %425 = vst [vmem:[%s651_s3 + $0x10] sm:$0xff] %v417_v8  ;;  %v418_v12 = vcombine.low %v404_v9, %v405_v11 }
  0xf7   :  { %426 = vst [vmem:[%s651_s3 + $0x18] sm:$0xff] %v418_v12 }
  0xf9   :  { %v392_v13 = vpop.f32.mrb[8].mxu0 }
  0xfa   :  { %v393_v14 = vadd.f32 %v392_v13, %v45_v40  ;;  %v480_v15 = vpop.f32.mrb[9].mxu0 }
  0xfb   :  { %v395_v16 = vpop.f32.mrb[10].mxu0 }
  0xfc   :  { %v406_v17 = vmax.f32 %v393_v14, 0.0  ;;  %v481_v18 = vpop.f32.mrb[11].mxu0 }
  0xfe   :  { %427 = vst [vmem:[%s651_s3 + $0x20] sm:$0xf] %v406_v17 }

// kernel: layer_vae_forward.17
= control target key start
LH: loop header
LB: loop body
LE: loop exit
PB: predicated region body
PF: predicated region fallthrough
CT: control target
= control target key end

     0   :  { %v563_v1 = vmov 0   ;;  %vm174_vm0 = vcmask 1041408   ;;  %vm170_vm1 = vcmask 293888   ;;  %v564_v36 = vmov 0.0   ;;  %s721_s1 = inlined_call_operand.vmem [shape: bf16[36,1152], index: 1, kind: input, shape index: {}]   ;;  %s722_s0 = inlined_call_operand.vmem [shape: bf16[4,36], index: 0, kind: input, shape index: {}]   ;;  %s723_s2 = inlined_call_operand.vmem [shape: f32[4,1], index: 2, kind: input, shape index: {}]   ;;  %s724_s3 = inlined_call_operand.vmem [shape: f32[4,1152], index: 3, kind: input, shape index: {}]   ;;  %s725_s4 = inlined_call_operand.vmem [shape: f32[4,1152], index: 4, kind: output, shape index: {}]  }
   0x1   :  { %v524_v0 = vld [vmem:[%s721_s1 + $0x4] ss:$36 sps:$4 sm:$0xff]   ;;  %234 = vmatprep.mubr.bf16.mxu0 %v563_v1  ;;  %275 = vmatprep.mubr.bf16.mxu1 %v563_v1  ;;  %v527_v3 = vld [vmem:[%s721_s1 + $0x4c] ss:$36 sps:$4 sm:$0xff]   ;;  %v535_v10 = vld [vmem:[%s721_s1 + $0x54] ss:$36 sps:$4 sm:$0xff]  }
   0x2   :  { %v526_v2 = vld [vmem:[%s721_s1] ss:$36 sps:$4 sm:$0xff]   ;;  %523 = vset.pattern.permute.xlu0 %v563_v1  ;;  %202 = vmatprep.subr.bf16.mxu0 %v524_v0  ;;  %v529_v4 = vld [vmem:[%s721_s1 + $0x48] ss:$36 sps:$4 sm:$0xff]   ;;  %v39_v7 = vld [vmem:[%s721_s1 + $0x90] sm:$0x33] }
   0x3   :  { %203 = vmatpush1.bf16.msra.mxu0 %v526_v2  ;;  %v530_v5 = vld [vmem:[%s721_s1 + $0xc] ss:$36 sps:$4 sm:$0xff]   ;;  %v489_v8 = vcombine.high %v39_v7, %v39_v7  ;;  %v488_v9 = vcombine.low %v39_v7, %v39_v7  ;;  %v40_v12 = vld [vmem:[%s721_s1 + $0x98] sm:$0x33]  ;;  %v18_v17 = vld [vmem:[%s722_s0] sm:$0x3] }
   0x4   :  { %v532_v6 = vld [vmem:[%s721_s1 + $0x8] ss:$36 sps:$4 sm:$0xff]   ;;  %204 = vmatprep.subr.bf16.mxu0 %v527_v3  ;;  %243 = vmatprep.subr.bf16.mxu1 %v530_v5  ;;  %v537_v11 = vld [vmem:[%s721_s1 + $0x50] ss:$36 sps:$4 sm:$0xff]   ;;  %v491_v15 = vcombine.high %v40_v12, %v40_v12  ;;  %v490_v16 = vcombine.low %v40_v12, %v40_v12  ;;  %v548_v20 = vld [vmem:[%s721_s1 + $0x1c] ss:$36 sps:$4 sm:$0xff]  }
   0x5   :  { %244 = vmatpush1.bf16.msra.mxu1 %v532_v6  ;;  %v176_v13 = vsel %vm174_vm0, %v488_v9, 0  ;;  %v540_v14 = vld [vmem:[%s721_s1 + $0x14] ss:$36 sps:$4 sm:$0xff]   ;;  %v545_v21 = vld [vmem:[%s721_s1 + $0x5c] ss:$36 sps:$4 sm:$0xff]   ;;  %vm565_vm2 = vmmov 0  }
   0x6   :  { %245 = vmatprep.subr.bf16.mxu1 %v535_v10  ;;  %v538_v18 = vld [vmem:[%s721_s1 + $0x10] ss:$36 sps:$4 sm:$0xff]   ;;  %v182_v19 = vsel %vm174_vm0, %v490_v16, 0  ;;  %v41_v22 = vld [vmem:[%s721_s1 + $0xa0] sm:$0x33]  ;;  %v45_v44 = vld [vmem:[%s724_s3 + $0x8] sm:$0xff] }
   0x7   :  { %205 = vmatpush1.bf16.msra.mxu0 %v529_v4  ;;  %v546_v23 = vld [vmem:[%s721_s1 + $0x18] ss:$36 sps:$4 sm:$0xff]   ;;  %v553_v25 = vld [vmem:[%s721_s1 + $0x64] ss:$36 sps:$4 sm:$0xff]   ;;  %v49_v26 = vld [vmem:[%s723_s2] sm:$0xf]  ;;  %v493_v27 = vcombine.high %v41_v22, %v41_v22  ;;  %v492_v28 = vcombine.low %v41_v22, %v41_v22  ;;  %v411_v52 = vcombine.high %v45_v44, %v45_v44 }
   0x8   :  { %497 = vmatprep.subr.msk.bf16.mxu0 %vm174_vm0, %v489_v8  ;;  %v543_v24 = vld [vmem:[%s721_s1 + $0x58] ss:$36 sps:$4 sm:$0xff]   ;;  %v42_v29 = vld [vmem:[%s721_s1 + $0xa8] sm:$0x33]  ;;  %52 = vperm.xlu0 %523, %v49_v26   ;;  %v551_v30 = vld [vmem:[%s721_s1 + $0x60] ss:$36 sps:$4 sm:$0xff]  }
   0x9   :  { %246 = vmatpush1.bf16.msra.mxu1 %v537_v11  ;;  %v495_v31 = vcombine.high %v42_v29, %v42_v29  ;;  %v494_v32 = vcombine.low %v42_v29, %v42_v29  ;;  %v188_v33 = vsel %vm174_vm0, %v492_v28, 0  ;;  %v554_v34 = vld [vmem:[%s721_s1 + $0x20] ss:$36 sps:$4 sm:$0xff]   ;;  %v557_v37 = vld [vmem:[%s721_s1 + $0x68] ss:$36 sps:$4 sm:$0xff]   ;;  %v46_v3 = vld [vmem:[%s724_s3 + $0x10] sm:$0xff] }
   0xa   :  { %499 = vmatprep.subr.msk.bf16.mxu1 %vm174_vm0, %v491_v15  ;;  %v558_v38 = vld [vmem:[%s721_s1 + $0xb0] ss:$0 sps:$4 sm:$0x33]   ;;  %v44_v40 = vld [vmem:[%s724_s3] sm:$0xff]  ;;  %v412_v8 = vcombine.high %v46_v3, %v46_v3  ;;  %v47_v9 = vld [vmem:[%s724_s3 + $0x18] sm:$0xff] }
   0xb   :  { %207 = vmatpush1.bf16.msra.mxu0 %v176_v13  ;;  %v194_v35 = vsel %vm174_vm0, %v494_v32, 0  ;;  %v200_v39 = vsel %vm174_vm0, %v558_v38, 0  ;;  %v410_v43 = vcombine.high %v44_v40, %v44_v40 }
   0xc   :  { %284 = vmatprep.subr.bf16.mxu0 %v540_v14 }
   0xd   :  { %248 = vmatpush1.bf16.msra.mxu1 %v182_v19 }
   0xe   :  { %498 = vmatmul.mubr.msk.bf16.vlgmr.msra.gmra.mrb[0].mxu0 %vm170_vm1, %v18_v17  ;;  %325 = vmatprep.subr.bf16.mxu1 %v548_v20 }
   0xf   :  { %285 = vmatpush1.bf16.msra.mxu0 %v538_v18  ;;  %316 = vmatprep.mubr.bf16.mxu0 %v563_v1  ;;  %v413_v18 = vcombine.high %v47_v9, %v47_v9 }
  0x10   :  { %286 = vmatprep.subr.bf16.mxu0 %v545_v21  ;;  %500 = vmatmul.mubr.msk.bf16.vlgmr.msra.gmra.mrb[0].mxu1 %vm170_vm1, %v18_v17 }
  0x11   :  { %326 = vmatpush1.bf16.msra.mxu1 %v546_v23  ;;  %357 = vmatprep.mubr.bf16.mxu1 %v563_v1 }
  0x12   :  { %327 = vmatprep.subr.bf16.mxu1 %v553_v25 }
  0x13   :  { %287 = vmatpush1.bf16.msra.mxu0 %v543_v24 }
  0x14   :  { %501 = vmatprep.subr.msk.bf16.mxu0 %vm174_vm0, %v493_v27 }
  0x15   :  { %328 = vmatpush1.bf16.msra.mxu1 %v551_v30 }
  0x16   :  { %503 = vmatprep.subr.msk.bf16.mxu1 %vm174_vm0, %v495_v31 }
  0x17   :  { %289 = vmatpush1.bf16.msra.mxu0 %v188_v33 }
  0x18   :  { %510 = vmatprep.subr.bf16.mxu0 %v564_v36 }
  0x19   :  { %330 = vmatpush1.bf16.msra.mxu1 %v194_v35 }
  0x1a   :  { %502 = vmatmul.mubr.msk.bf16.vlgmr.msra.gmra.mrb[4].mxu0 %vm170_vm1, %v18_v17 }
  0x1b   :  { %511 = vmatpush3.bf16.msra.mxu0 %v554_v34  ;;  %516 = vmatprep.mubr.msk.bf16.mxu0 %vm565_vm2, %v564_v36 }
  0x1c   :  { %512 = vmatprep.subr.bf16.mxu0 %v564_v36  ;;  %504 = vmatmul.mubr.msk.bf16.vlgmr.msra.gmra.mrb[4].mxu1 %vm170_vm1, %v18_v17 }
  0x1f   :  { %513 = vmatpush3.bf16.msra.mxu0 %v557_v37 }
  0x20   :  { %514 = vmatprep.subr.bf16.mxu0 %v564_v36  ;;  %v48_v36 = vld [vmem:[%s724_s3 + $0x20] sm:$0xf] }
  0x23   :  { %515 = vmatpush3.bf16.msra.mxu0 %v200_v39 }
  0x26   :  { %517 = vmatmul.mubr.msk.bf16.vlgmr.msra.gmra.mrb[8].mxu0 %vm170_vm1, %v18_v17 }
  0x87   :  { %v683_v41 = vpop.permute.xlu0 %52 }
  0xe1   :  { %v236_v42 = vpop.f32.mrb[0].mxu0 }
  0xe2   :  { %v237_v45 = vadd.f32 %v236_v42, %v683_v41  ;;  %v238_v46 = vpop.f32.mrb[1].mxu0 }
  0xe3   :  { %v239_v47 = vadd.f32 %v238_v46, %v683_v41  ;;  %v240_v48 = vpop.f32.mrb[2].mxu0  ;;  %v277_v51 = vpop.f32.mrb[0].mxu1 }
  0xe4   :  { %v418_v49 = vadd.f32 %v237_v45, %v44_v40  ;;  %v241_v50 = vpop.f32.mrb[3].mxu0  ;;  %v278_v54 = vadd.f32 %v277_v51, %v683_v41  ;;  %v279_v55 = vpop.f32.mrb[1].mxu1 }
  0xe5   :  { %v419_v53 = vadd.f32 %v410_v43, %v239_v47  ;;  %v280_v57 = vadd.f32 %v279_v55, %v683_v41  ;;  %v281_v58 = vpop.f32.mrb[2].mxu1 }
  0xe6   :  { %v427_v56 = vmax.f32 %v418_v49, 0.0  ;;  %v420_v60 = vadd.f32 %v278_v54, %v45_v44  ;;  %v282_v61 = vpop.f32.mrb[3].mxu1 }
  0xe7   :  { %v428_v59 = vmax.f32 %v419_v53, 0.0  ;;  %v421_v63 = vadd.f32 %v411_v52, %v280_v57 }
  0xe8   :  { %v436_v62 = vadd.f32 %v427_v56, %v44_v40  ;;  %v429_v1 = vmax.f32 %v420_v60, 0.0 }
  0xe9   :  { %v437_v0 = vadd.f32 %v428_v59, %v410_v43  ;;  %v430_v2 = vmax.f32 %v421_v63, 0.0 }
  0xea   :  { %v438_v5 = vadd.f32 %v429_v1, %v45_v44 }
  0xeb   :  { %v453_v4 = vcombine.low %v436_v62, %v437_v0  ;;  %v439_v6 = vadd.f32 %v430_v2, %v411_v52 }
  0xed   :  { %461 = vst [vmem:[%s725_s4] sm:$0xff] %v453_v4  ;;  %v318_v7 = vpop.f32.mrb[4].mxu0  ;;  %v454_v10 = vcombine.low %v438_v5, %v439_v6 }
  0xee   :  { %v319_v11 = vadd.f32 %v318_v7, %v683_v41  ;;  %v320_v12 = vpop.f32.mrb[5].mxu0 }
  0xef   :  { %v321_v13 = vadd.f32 %v320_v12, %v683_v41  ;;  %v322_v14 = vpop.f32.mrb[6].mxu0  ;;  %462 = vst [vmem:[%s725_s4 + $0x8] sm:$0xff] %v454_v10  ;;  %v359_v17 = vpop.f32.mrb[4].mxu1 }
  0xf0   :  { %v422_v15 = vadd.f32 %v319_v11, %v46_v3  ;;  %v323_v16 = vpop.f32.mrb[7].mxu0  ;;  %v360_v20 = vadd.f32 %v359_v17, %v683_v41  ;;  %v361_v21 = vpop.f32.mrb[5].mxu1 }
  0xf1   :  { %v423_v19 = vadd.f32 %v412_v8, %v321_v13  ;;  %v362_v23 = vadd.f32 %v361_v21, %v683_v41  ;;  %v363_v24 = vpop.f32.mrb[6].mxu1 }
  0xf2   :  { %v431_v22 = vmax.f32 %v422_v15, 0.0  ;;  %v424_v26 = vadd.f32 %v360_v20, %v47_v9  ;;  %v364_v27 = vpop.f32.mrb[7].mxu1 }
  0xf3   :  { %v432_v25 = vmax.f32 %v423_v19, 0.0  ;;  %v425_v29 = vadd.f32 %v413_v18, %v362_v23 }
  0xf4   :  { %v440_v28 = vadd.f32 %v431_v22, %v46_v3  ;;  %v433_v31 = vmax.f32 %v424_v26, 0.0 }
  0xf5   :  { %v441_v30 = vadd.f32 %v432_v25, %v412_v8  ;;  %v434_v32 = vmax.f32 %v425_v29, 0.0 }
  0xf6   :  { %v442_v34 = vadd.f32 %v433_v31, %v47_v9 }
  0xf7   :  { %v455_v33 = vcombine.low %v440_v28, %v441_v30  ;;  %v443_v35 = vadd.f32 %v434_v32, %v413_v18 }
  0xf9   :  { %463 = vst [vmem:[%s725_s4 + $0x10] sm:$0xff] %v455_v33  ;;  %v400_v37 = vpop.f32.mrb[8].mxu0  ;;  %v456_v38 = vcombine.low %v442_v34, %v443_v35 }
  0xfa   :  { %v401_v39 = vadd.f32 %v400_v37, %v683_v41  ;;  %v518_v40 = vpop.f32.mrb[9].mxu0 }
  0xfb   :  { %v403_v42 = vpop.f32.mrb[10].mxu0  ;;  %464 = vst [vmem:[%s725_s4 + $0x18] sm:$0xff] %v456_v38 }
  0xfc   :  { %v426_v43 = vadd.f32 %v401_v39, %v48_v36  ;;  %v519_v44 = vpop.f32.mrb[11].mxu0 }
  0xfe   :  { %v435_v45 = vmax.f32 %v426_v43, 0.0 }
 0x100   :  { %v444_v46 = vadd.f32 %v435_v45, %v48_v36 }
 0x102   :  { %465 = vst [vmem:[%s725_s4 + $0x20] sm:$0xf] %v444_v46 }

// kernel: layer_vae_forward.18
= control target key start
LH: loop header
LB: loop body
LE: loop exit
PB: predicated region body
PF: predicated region fallthrough
CT: control target
= control target key end

     0   :  { %v172_v1 = vmov 0   ;;  %vm73_vm0 = vcmask 293888   ;;  %vm80_vm1 = vcmask 1041408   ;;  %s234_s1 = inlined_call_operand.vmem [shape: bf16[36,128], index: 1, kind: input, shape index: {}]   ;;  %s235_s0 = inlined_call_operand.vmem [shape: bf16[32,36], index: 0, kind: input, shape index: {}]   ;;  %s236_s2 = inlined_call_operand.vmem [shape: f32[32,1], index: 2, kind: input, shape index: {}]   ;;  %s237_s3 = inlined_call_operand.vmem [shape: f32[32,128], index: 3, kind: output, shape index: {}]  }
   0x1   :  { %v167_v0 = vld [vmem:[%s234_s1] sm:$0xff]   ;;  %166 = vset.pattern.permute.xlu1 %v172_v1  ;;  %165 = vset.pattern.permute.xlu0 %v172_v1  ;;  %v168_v2 = vld [vmem:[%s234_s1 + $0x8] sm:$0xff]   ;;  %v169_v4 = vld [vmem:[%s234_s1 + $0x10] ss:$0 sps:$4 sm:$0x33]  }
   0x2   :  { %153 = vmatprep.subr.bf16.mxu0 %v167_v0  ;;  %v170_v3 = vld [vmem:[%s235_s0] sm:$0xff]   ;;  %v26_v5 = vld [vmem:[%s236_s2 + $0x10] sm:$0xff]  ;;  %v27_v7 = vld [vmem:[%s236_s2 + $0x18] sm:$0xff]  ;;  %v82_v9 = vsel %vm80_vm1, %v169_v4, 0 }
   0x3   :  { %154 = vmatpush3.bf16.msra.mxu0 %v167_v0  ;;  %159 = vmatprep.mubr.msk.bf16.mxu0 %vm73_vm0, %v170_v3  ;;  %v24_v6 = vld [vmem:[%s236_s2] sm:$0xff]  ;;  %v25_v8 = vld [vmem:[%s236_s2 + $0x8] sm:$0xff] }
   0x4   :  { %155 = vmatprep.subr.bf16.mxu0 %v168_v2  ;;  %40 = vperm.xlu1 %166, %v26_v5   ;;  %v171_v10 = vld [vmem:[%s235_s0 + $0x8] sm:$0xff]  }
   0x5   :  { %30 = vperm.xlu0 %165, %v24_v6  }
   0x7   :  { %156 = vmatpush3.bf16.msra.mxu0 %v168_v2 }
   0x8   :  { %163 = vmatprep.subr.msk.bf16.mxu0 %vm80_vm1, %v169_v4  ;;  %45 = vperm.xlu1 %166, %v27_v7  }
   0x9   :  { %35 = vperm.xlu0 %165, %v25_v8  }
   0xb   :  { %158 = vmatpush3.bf16.msra.mxu0 %v82_v9 }
   0xe   :  { %160 = vmatmul.mubr.msk.bf16.vlgmr.msra.gmra.mrb[0].mxu0 %vm73_vm0, %v171_v10 }
  0x83   :  { %v41_v11 = vpop.permute.xlu1 %40 }
  0x84   :  { %v31_v12 = vpop.permute.xlu0 %30 }
  0x87   :  { %v46_v16 = vpop.permute.xlu1 %45 }
  0x88   :  { %v36_v19 = vpop.permute.xlu0 %35 }
  0xe1   :  { %v161_v13 = vpop.f32.mrb[0].mxu0 }
  0xe2   :  { %v127_v14 = vadd.f32 %v161_v13, %v41_v11  ;;  %v118_v15 = vpop.f32.mrb[1].mxu0 }
  0xe3   :  { %v119_v17 = vadd.f32 %v118_v15, %v31_v12  ;;  %v162_v18 = vpop.f32.mrb[2].mxu0 }
  0xe4   :  { %135 = vst [vmem:[%s237_s3 + $0x10] sm:$0xff] %v127_v14  ;;  %v130_v20 = vadd.f32 %v162_v18, %v46_v16  ;;  %v121_v21 = vpop.f32.mrb[3].mxu0 }
  0xe5   :  { %133 = vst [vmem:[%s237_s3] sm:$0xff] %v119_v17  ;;  %v122_v22 = vadd.f32 %v121_v21, %v36_v19 }
  0xe6   :  { %136 = vst [vmem:[%s237_s3 + $0x18] sm:$0xff] %v130_v20 }
  0xe7   :  { %134 = vst [vmem:[%s237_s3 + $0x8] sm:$0xff] %v122_v22 }

// kernel: layer_vae_forward.19
= control target key start
LH: loop header
LB: loop body
LE: loop exit
PB: predicated region body
PF: predicated region fallthrough
CT: control target
= control target key end

     0   :  { %v433_v1 = vmov 0   ;;  %vm221_vm0 = vcmask 261120   ;;  %s552_s1 = inlined_call_operand.vmem [shape: bf16[288,128], index: 1, kind: input, shape index: {}]   ;;  %s553_s0 = inlined_call_operand.vmem [shape: bf16[32,288], index: 0, kind: input, shape index: {}]   ;;  %s554_s2 = inlined_call_operand.vmem [shape: f32[32,1], index: 2, kind: input, shape index: {}]   ;;  %s555_s3 = inlined_call_operand.vmem [shape: f32[32,128], index: 3, kind: output, shape index: {}]  }
   0x1   :  { %v407_v0 = vld [vmem:[%s552_s1 + $0x40] sm:$0xff]   ;;  %405 = vset.pattern.permute.xlu0 %v433_v1  ;;  %406 = vset.pattern.permute.xlu1 %v433_v1  ;;  %v409_v3 = vld [vmem:[%s552_s1 + $0x48] sm:$0xff]   ;;  %v411_v5 = vld [vmem:[%s552_s1 + $0x50] sm:$0xff]  }
   0x2   :  { %v408_v2 = vld [vmem:[%s552_s1] sm:$0xff]   ;;  %364 = vmatprep.subr.bf16.mxu0 %v407_v0  ;;  %v410_v4 = vld [vmem:[%s552_s1 + $0x8] sm:$0xff]   ;;  %v412_v6 = vld [vmem:[%s552_s1 + $0x10] sm:$0xff]  }
   0x3   :  { %365 = vmatpush3.bf16.msra.mxu0 %v408_v2  ;;  %v413_v7 = vld [vmem:[%s552_s1 + $0x58] sm:$0xff]   ;;  %v415_v9 = vld [vmem:[%s552_s1 + $0x60] sm:$0xff]   ;;  %v417_v12 = vld [vmem:[%s552_s1 + $0x68] sm:$0xff]  }
   0x4   :  { %366 = vmatprep.subr.bf16.mxu0 %v409_v3  ;;  %v414_v8 = vld [vmem:[%s552_s1 + $0x18] sm:$0xff]   ;;  %v416_v10 = vld [vmem:[%s552_s1 + $0x20] sm:$0xff]   ;;  %v418_v13 = vld [vmem:[%s552_s1 + $0x28] sm:$0xff]  }
   0x5   :  { %v422_v11 = vld [vmem:[%s552_s1 + $0x80] sm:$0xff]   ;;  %v419_v14 = vld [vmem:[%s552_s1 + $0x70] sm:$0xff]   ;;  %v427_v16 = vld [vmem:[%s552_s1 + $0x88] sm:$0xff]  }
   0x6   :  { %396 = vmatprep.subr.bf16.mxu1 %v422_v11  ;;  %v426_v15 = vld [vmem:[%s553_s0 + $0x4] ss:$12 sps:$4 sm:$0xff]   ;;  %v428_v17 = vld [vmem:[%s553_s0 + $0x8] ss:$12 sps:$4 sm:$0xff]   ;;  %v429_v18 = vld [vmem:[%s553_s0 + $0x20] ss:$12 sps:$4 sm:$0xff]  }
   0x7   :  { %367 = vmatpush3.bf16.msra.mxu0 %v410_v4  ;;  %397 = vmatpush3.bf16.msra.mxu1 %v422_v11  ;;  %v59_v19 = vld [vmem:[%s554_s2] sm:$0xff]  ;;  %v420_v20 = vld [vmem:[%s552_s1 + $0x30] sm:$0xff]   ;;  %v421_v22 = vld [vmem:[%s552_s1 + $0x78] sm:$0xff]  }
   0x8   :  { %368 = vmatprep.subr.bf16.mxu0 %v411_v5  ;;  %260 = vmatprep.mubr.bf16.mxu0 %v426_v15  ;;  %v61_v21 = vld [vmem:[%s554_s2 + $0x10] sm:$0xff]  ;;  %v60_v23 = vld [vmem:[%s554_s2 + $0x8] sm:$0xff]  ;;  %v62_v24 = vld [vmem:[%s554_s2 + $0x18] sm:$0xff] }
   0x9   :  { %398 = vmatprep.subr.bf16.mxu1 %v427_v16  ;;  %400 = vmatprep.mubr.msk.bf16.mxu1 %vm221_vm0, %v428_v17  ;;  %v423_v25 = vld [vmem:[%s552_s1 + $0x38] sm:$0xff]   ;;  %v424_v26 = vld [vmem:[%s553_s0] ss:$12 sps:$4 sm:$0xff]  }
   0xa   :  { %65 = vperm.xlu0 %405, %v59_v19   ;;  %75 = vperm.xlu1 %406, %v61_v21   ;;  %v430_v27 = vld [vmem:[%s553_s0 + $0x1c] ss:$12 sps:$4 sm:$0xff]   ;;  %v432_v28 = vld [vmem:[%s553_s0 + $0x18] ss:$12 sps:$4 sm:$0xff]  }
   0xb   :  { %369 = vmatpush3.bf16.msra.mxu0 %v412_v6  ;;  %399 = vmatpush3.bf16.msra.mxu1 %v427_v16 }
   0xc   :  { %370 = vmatprep.subr.bf16.mxu0 %v413_v7 }
   0xe   :  { %401 = vmatmul.mubr.msk.bf16.vlgmr.msra.gmra.mrb[0].mxu1 %vm221_vm0, %v429_v18  ;;  %70 = vperm.xlu0 %405, %v60_v23  }
   0xf   :  { %371 = vmatpush3.bf16.msra.mxu0 %v414_v8  ;;  %80 = vperm.xlu1 %406, %v62_v24  }
  0x10   :  { %372 = vmatprep.subr.bf16.mxu0 %v415_v9 }
  0x13   :  { %373 = vmatpush3.bf16.msra.mxu0 %v416_v10 }
  0x14   :  { %374 = vmatprep.subr.bf16.mxu0 %v417_v12 }
  0x17   :  { %375 = vmatpush3.bf16.msra.mxu0 %v418_v13 }
  0x18   :  { %376 = vmatprep.subr.bf16.mxu0 %v419_v14 }
  0x1b   :  { %377 = vmatpush3.bf16.msra.mxu0 %v420_v20 }
  0x1c   :  { %378 = vmatprep.subr.bf16.mxu0 %v421_v22 }
  0x1f   :  { %379 = vmatpush3.bf16.msra.mxu0 %v423_v25 }
  0x22   :  { %261 = vmatmul.mubr.bf16.vlgmr.msra.gmra.mrb[0].mxu0 %v424_v26 }
  0x23   :  { %268 = vmatprep.mubr.bf16.mxu0 %v430_v27 }
  0x2a   :  { %269 = vmatmul.mubr.bf16.gmra.mrb[4].mxu0 %v432_v28 }
  0x89   :  { %v66_v33 = vpop.permute.xlu0 %65  ;;  %v76_v44 = vpop.permute.xlu1 %75 }
  0x8d   :  { %v71_v39 = vpop.permute.xlu0 %70 }
  0x8e   :  { %v81_v55 = vpop.permute.xlu1 %80 }
  0xe1   :  { %v402_v29 = vpop.f32.mrb[0].mxu1 }
  0xe2   :  { %v311_v30 = vpop.f32.mrb[1].mxu1 }
  0xe3   :  { %v403_v31 = vpop.f32.mrb[2].mxu1 }
  0xe4   :  { %v314_v32 = vpop.f32.mrb[3].mxu1 }
  0xf5   :  { %v380_v34 = vpop.f32.mrb[0].mxu0 }
  0xf6   :  { %v381_v35 = vpop.f32.mrb[1].mxu0 }
  0xf7   :  { %v382_v36 = vadd.f32 %v381_v35, %v380_v34  ;;  %v383_v37 = vpop.f32.mrb[2].mxu0 }
  0xf8   :  { %v384_v38 = vpop.f32.mrb[3].mxu0 }
  0xf9   :  { %v385_v40 = vadd.f32 %v384_v38, %v383_v37  ;;  %v263_v41 = vadd.f32 %v382_v36, %v66_v33 }
  0xfb   :  { %v266_v42 = vadd.f32 %v385_v40, %v71_v39  ;;  %v312_v43 = vadd.f32 %v311_v30, %v263_v41 }
  0xfd   :  { %v326_v45 = vmax.f32 %v312_v43, 0.0  ;;  %v315_v46 = vadd.f32 %v314_v32, %v266_v42  ;;  %v386_v47 = vpop.f32.mrb[4].mxu0 }
  0xfe   :  { %v387_v48 = vpop.f32.mrb[5].mxu0 }
  0xff   :  { %330 = vst [vmem:[%s555_s3] sm:$0xff] %v326_v45  ;;  %v327_v49 = vmax.f32 %v315_v46, 0.0  ;;  %v388_v50 = vadd.f32 %v387_v48, %v386_v47  ;;  %v389_v51 = vpop.f32.mrb[6].mxu0 }
 0x100   :  { %v390_v52 = vpop.f32.mrb[7].mxu0 }
 0x101   :  { %331 = vst [vmem:[%s555_s3 + $0x8] sm:$0xff] %v327_v49  ;;  %v271_v53 = vadd.f32 %v388_v50, %v76_v44  ;;  %v391_v54 = vadd.f32 %v390_v52, %v389_v51 }
 0x103   :  { %v320_v56 = vadd.f32 %v402_v29, %v271_v53  ;;  %v274_v57 = vadd.f32 %v391_v54, %v81_v55 }
 0x105   :  { %v328_v58 = vmax.f32 %v320_v56, 0.0  ;;  %v323_v59 = vadd.f32 %v403_v31, %v274_v57 }
 0x107   :  { %332 = vst [vmem:[%s555_s3 + $0x10] sm:$0xff] %v328_v58  ;;  %v329_v60 = vmax.f32 %v323_v59, 0.0 }
 0x109   :  { %333 = vst [vmem:[%s555_s3 + $0x18] sm:$0xff] %v329_v60 }

// kernel: layer_vae_forward.20
= control target key start
LH: loop header
LB: loop body
LE: loop exit
PB: predicated region body
PF: predicated region fallthrough
CT: control target
= control target key end

     0   :  { %v448_v1 = vmov 0   ;;  %vm228_vm0 = vcmask 261120   ;;  %s584_s1 = inlined_call_operand.vmem [shape: bf16[288,128], index: 1, kind: input, shape index: {}]   ;;  %s585_s0 = inlined_call_operand.vmem [shape: bf16[32,288], index: 0, kind: input, shape index: {}]   ;;  %s586_s2 = inlined_call_operand.vmem [shape: f32[32,1], index: 2, kind: input, shape index: {}]   ;;  %s587_s3 = inlined_call_operand.vmem [shape: f32[32,128], index: 3, kind: input, shape index: {}]   ;;  %s588_s4 = inlined_call_operand.vmem [shape: f32[32,128], index: 4, kind: output, shape index: {}]  }
   0x1   :  { %v422_v0 = vld [vmem:[%s584_s1 + $0x40] sm:$0xff]   ;;  %420 = vset.pattern.permute.xlu0 %v448_v1  ;;  %421 = vset.pattern.permute.xlu1 %v448_v1  ;;  %v424_v3 = vld [vmem:[%s584_s1 + $0x48] sm:$0xff]   ;;  %v426_v5 = vld [vmem:[%s584_s1 + $0x50] sm:$0xff]  }
   0x2   :  { %v423_v2 = vld [vmem:[%s584_s1] sm:$0xff]   ;;  %379 = vmatprep.subr.bf16.mxu0 %v422_v0  ;;  %v425_v4 = vld [vmem:[%s584_s1 + $0x8] sm:$0xff]   ;;  %v427_v6 = vld [vmem:[%s584_s1 + $0x10] sm:$0xff]  }
   0x3   :  { %380 = vmatpush3.bf16.msra.mxu0 %v423_v2  ;;  %v428_v7 = vld [vmem:[%s584_s1 + $0x58] sm:$0xff]   ;;  %v430_v9 = vld [vmem:[%s584_s1 + $0x60] sm:$0xff]   ;;  %v432_v12 = vld [vmem:[%s584_s1 + $0x68] sm:$0xff]  }
   0x4   :  { %381 = vmatprep.subr.bf16.mxu0 %v424_v3  ;;  %v429_v8 = vld [vmem:[%s584_s1 + $0x18] sm:$0xff]   ;;  %v431_v10 = vld [vmem:[%s584_s1 + $0x20] sm:$0xff]   ;;  %v433_v13 = vld [vmem:[%s584_s1 + $0x28] sm:$0xff]  }
   0x5   :  { %v437_v11 = vld [vmem:[%s584_s1 + $0x80] sm:$0xff]   ;;  %v434_v14 = vld [vmem:[%s584_s1 + $0x70] sm:$0xff]   ;;  %v442_v16 = vld [vmem:[%s584_s1 + $0x88] sm:$0xff]  }
   0x6   :  { %411 = vmatprep.subr.bf16.mxu1 %v437_v11  ;;  %v441_v15 = vld [vmem:[%s585_s0 + $0x4] ss:$12 sps:$4 sm:$0xff]   ;;  %v443_v17 = vld [vmem:[%s585_s0 + $0x8] ss:$12 sps:$4 sm:$0xff]   ;;  %v444_v18 = vld [vmem:[%s585_s0 + $0x20] ss:$12 sps:$4 sm:$0xff]  }
   0x7   :  { %382 = vmatpush3.bf16.msra.mxu0 %v425_v4  ;;  %412 = vmatpush3.bf16.msra.mxu1 %v437_v11  ;;  %v66_v19 = vld [vmem:[%s586_s2] sm:$0xff]  ;;  %v435_v20 = vld [vmem:[%s584_s1 + $0x30] sm:$0xff]   ;;  %v436_v22 = vld [vmem:[%s584_s1 + $0x78] sm:$0xff]  }
   0x8   :  { %383 = vmatprep.subr.bf16.mxu0 %v426_v5  ;;  %267 = vmatprep.mubr.bf16.mxu0 %v441_v15  ;;  %v68_v21 = vld [vmem:[%s586_s2 + $0x10] sm:$0xff]  ;;  %v67_v23 = vld [vmem:[%s586_s2 + $0x8] sm:$0xff]  ;;  %v69_v24 = vld [vmem:[%s586_s2 + $0x18] sm:$0xff] }
   0x9   :  { %413 = vmatprep.subr.bf16.mxu1 %v442_v16  ;;  %415 = vmatprep.mubr.msk.bf16.mxu1 %vm228_vm0, %v443_v17  ;;  %v438_v25 = vld [vmem:[%s584_s1 + $0x38] sm:$0xff]   ;;  %v439_v26 = vld [vmem:[%s585_s0] ss:$12 sps:$4 sm:$0xff]   ;;  %v64_v61 = vld [vmem:[%s587_s3 + $0x10] sm:$0xff] }
   0xa   :  { %72 = vperm.xlu0 %420, %v66_v19   ;;  %82 = vperm.xlu1 %421, %v68_v21   ;;  %v445_v27 = vld [vmem:[%s585_s0 + $0x1c] ss:$12 sps:$4 sm:$0xff]   ;;  %v447_v28 = vld [vmem:[%s585_s0 + $0x18] ss:$12 sps:$4 sm:$0xff]  }
   0xb   :  { %384 = vmatpush3.bf16.msra.mxu0 %v427_v6  ;;  %414 = vmatpush3.bf16.msra.mxu1 %v442_v16  ;;  %v62_v42 = vld [vmem:[%s587_s3] sm:$0xff]  ;;  %v63_v46 = vld [vmem:[%s587_s3 + $0x8] sm:$0xff]  ;;  %v65_v1 = vld [vmem:[%s587_s3 + $0x18] sm:$0xff] }
   0xc   :  { %385 = vmatprep.subr.bf16.mxu0 %v428_v7 }
   0xe   :  { %416 = vmatmul.mubr.msk.bf16.vlgmr.msra.gmra.mrb[0].mxu1 %vm228_vm0, %v444_v18  ;;  %77 = vperm.xlu0 %420, %v67_v23  }
   0xf   :  { %386 = vmatpush3.bf16.msra.mxu0 %v429_v8  ;;  %87 = vperm.xlu1 %421, %v69_v24  }
  0x10   :  { %387 = vmatprep.subr.bf16.mxu0 %v430_v9 }
  0x13   :  { %388 = vmatpush3.bf16.msra.mxu0 %v431_v10 }
  0x14   :  { %389 = vmatprep.subr.bf16.mxu0 %v432_v12 }
  0x17   :  { %390 = vmatpush3.bf16.msra.mxu0 %v433_v13 }
  0x18   :  { %391 = vmatprep.subr.bf16.mxu0 %v434_v14 }
  0x1b   :  { %392 = vmatpush3.bf16.msra.mxu0 %v435_v20 }
  0x1c   :  { %393 = vmatprep.subr.bf16.mxu0 %v436_v22 }
  0x1f   :  { %394 = vmatpush3.bf16.msra.mxu0 %v438_v25 }
  0x22   :  { %268 = vmatmul.mubr.bf16.vlgmr.msra.gmra.mrb[0].mxu0 %v439_v26 }
  0x23   :  { %275 = vmatprep.mubr.bf16.mxu0 %v445_v27 }
  0x2a   :  { %276 = vmatmul.mubr.bf16.gmra.mrb[4].mxu0 %v447_v28 }
  0x89   :  { %v73_v33 = vpop.permute.xlu0 %72  ;;  %v83_v45 = vpop.permute.xlu1 %82 }
  0x8d   :  { %v78_v39 = vpop.permute.xlu0 %77 }
  0x8e   :  { %v88_v60 = vpop.permute.xlu1 %87 }
  0xe1   :  { %v417_v29 = vpop.f32.mrb[0].mxu1 }
  0xe2   :  { %v318_v30 = vpop.f32.mrb[1].mxu1 }
  0xe3   :  { %v418_v31 = vpop.f32.mrb[2].mxu1 }
  0xe4   :  { %v321_v32 = vpop.f32.mrb[3].mxu1 }
  0xf5   :  { %v395_v34 = vpop.f32.mrb[0].mxu0 }
  0xf6   :  { %v396_v35 = vpop.f32.mrb[1].mxu0 }
  0xf7   :  { %v397_v36 = vadd.f32 %v396_v35, %v395_v34  ;;  %v398_v37 = vpop.f32.mrb[2].mxu0 }
  0xf8   :  { %v399_v38 = vpop.f32.mrb[3].mxu0 }
  0xf9   :  { %v400_v40 = vadd.f32 %v399_v38, %v398_v37  ;;  %v270_v41 = vadd.f32 %v397_v36, %v73_v33 }
  0xfb   :  { %v273_v43 = vadd.f32 %v400_v40, %v78_v39  ;;  %v319_v44 = vadd.f32 %v318_v30, %v270_v41 }
  0xfd   :  { %v333_v47 = vadd.f32 %v319_v44, %v62_v42  ;;  %v322_v48 = vadd.f32 %v321_v32, %v273_v43  ;;  %v401_v49 = vpop.f32.mrb[4].mxu0 }
  0xfe   :  { %v402_v50 = vpop.f32.mrb[5].mxu0 }
  0xff   :  { %v337_v51 = vmax.f32 %v333_v47, 0.0  ;;  %v334_v52 = vadd.f32 %v322_v48, %v63_v46  ;;  %v403_v53 = vadd.f32 %v402_v50, %v401_v49  ;;  %v404_v54 = vpop.f32.mrb[6].mxu0 }
 0x100   :  { %v405_v55 = vpop.f32.mrb[7].mxu0 }
 0x101   :  { %v341_v56 = vadd.f32 %v337_v51, %v62_v42  ;;  %v338_v57 = vmax.f32 %v334_v52, 0.0  ;;  %v278_v58 = vadd.f32 %v403_v53, %v83_v45  ;;  %v406_v59 = vadd.f32 %v405_v55, %v404_v54 }
 0x103   :  { %345 = vst [vmem:[%s588_s4] sm:$0xff] %v341_v56  ;;  %v342_v62 = vadd.f32 %v338_v57, %v63_v46  ;;  %v327_v63 = vadd.f32 %v417_v29, %v278_v58  ;;  %v281_v0 = vadd.f32 %v406_v59, %v88_v60 }
 0x105   :  { %346 = vst [vmem:[%s588_s4 + $0x8] sm:$0xff] %v342_v62  ;;  %v335_v2 = vadd.f32 %v327_v63, %v64_v61  ;;  %v330_v3 = vadd.f32 %v418_v31, %v281_v0 }
 0x107   :  { %v339_v4 = vmax.f32 %v335_v2, 0.0  ;;  %v336_v5 = vadd.f32 %v330_v3, %v65_v1 }
 0x109   :  { %v343_v6 = vadd.f32 %v339_v4, %v64_v61  ;;  %v340_v7 = vmax.f32 %v336_v5, 0.0 }
 0x10b   :  { %347 = vst [vmem:[%s588_s4 + $0x10] sm:$0xff] %v343_v6  ;;  %v344_v8 = vadd.f32 %v340_v7, %v65_v1 }
 0x10d   :  { %348 = vst [vmem:[%s588_s4 + $0x18] sm:$0xff] %v344_v8 }

// kernel: layer_vae_forward.22
= control target key start
LH: loop header
LB: loop body
LE: loop exit
PB: predicated region body
PF: predicated region fallthrough
CT: control target
= control target key end

     0   :  { %v157_v0 = vmov 0.0|0.0   ;;  %vm158_vm0 = vmmov 0   ;;  %v159_v4 = vmov 0.0   ;;  %vm30_vm1 = vcmask 523264   ;;  %s213_s1 = inlined_call_operand.vmem [shape: f32[64,128], index: 1, kind: input, shape index: {}]   ;;  %s214_s0 = inlined_call_operand.vmem [shape: f32[2,64], index: 0, kind: input, shape index: {}]   ;;  %s215_s2 = inlined_call_operand.vmem [shape: f32[1,128], index: 2, kind: input, shape index: {}]   ;;  %s216_s3 = inlined_call_operand.vmem [shape: f32[2,128], index: 3, kind: output, shape index: {}]  }
   0x1   :  { %142 = vmatprep.subr.bf16.mxu0 %v157_v0  ;;  %v15_v1 = vld [vmem:[%s213_s1] sm:$0xff]  ;;  %v16_v2 = vld [vmem:[%s213_s1 + $0x8] sm:$0xff]  ;;  %v17_v3 = vld [vmem:[%s213_s1 + $0x10] sm:$0xff]  ;;  %139 = vmatprep.mubr.msk.f32.mxu0 %vm158_vm0, %v159_v4 }
   0x2   :  { %v143_v5 = vpack.c.bf16 %v16_v2, %v15_v1  ;;  %v18_v6 = vld [vmem:[%s213_s1 + $0x18] sm:$0xff]  ;;  %v19_v8 = vld [vmem:[%s213_s1 + $0x20] sm:$0xff]  ;;  %v20_v9 = vld [vmem:[%s213_s1 + $0x28] sm:$0xff] }
   0x3   :  { %v146_v7 = vpack.c.bf16 %v18_v6, %v17_v3  ;;  %v149_v10 = vpack.c.bf16 %v20_v9, %v19_v8  ;;  %v21_v11 = vld [vmem:[%s213_s1 + $0x30] sm:$0xff]  ;;  %v22_v12 = vld [vmem:[%s213_s1 + $0x38] sm:$0xff]  ;;  %v14_v14 = vld [vmem:[%s214_s0] sm:$0x3] }
   0x4   :  { %144 = vmatpush3.bf16.msra.mxu0 %v143_v5  ;;  %v152_v13 = vpack.c.bf16 %v22_v12, %v21_v11  ;;  %v112_v15 = vld [vmem:[%s215_s2] ss:$0 sm:$0xff] }
   0x5   :  { %145 = vmatprep.subr.bf16.mxu0 %v157_v0 }
   0x8   :  { %147 = vmatpush3.bf16.msra.mxu0 %v146_v7 }
   0x9   :  { %148 = vmatprep.subr.bf16.mxu0 %v157_v0 }
   0xc   :  { %150 = vmatpush3.bf16.msra.mxu0 %v149_v10 }
   0xd   :  { %151 = vmatprep.subr.bf16.mxu0 %v157_v0 }
  0x10   :  { %153 = vmatpush3.bf16.msra.mxu0 %v152_v13 }
  0x13   :  { %140 = vmatmul.mubr.msk.f32.vlgmr.msra.gmra.mrb[0].mxu0 %vm30_vm1, %v14_v14 }
  0xe6   :  { %v100_v16 = vpop.f32.mrb[0].mxu0 }
  0xe7   :  { %v101_v17 = vadd.f32 %v112_v15, %v100_v16  ;;  %v141_v18 = vpop.f32.mrb[1].mxu0 }
  0xe9   :  { %vm104_vm2 = vcmp.ge.f32.partialorder %v101_v17, 0.0  ;;  %v105_v19 = vmul.f32 0.01, %v101_v17 }
  0xeb   :  { %v106_v20 = vsel %vm104_vm2, %v101_v17, %v105_v19 }
  0xec   :  { %107 = vst [vmem:[%s216_s3] sm:$0x3] %v106_v20 }

// kernel: layer_vae_forward.21
= control target key start
LH: loop header
LB: loop body
LE: loop exit
PB: predicated region body
PF: predicated region fallthrough
CT: control target
= control target key end

     0   :  { %v1480_v47 = vmov 1983009808   ;;  %v289_v49 = vlaneseq  ;;  %vm930_vm0 = vcmask 517120   ;;  %s2327_s1 = inlined_call_operand.vmem [shape: f32[2048,64], index: 1, kind: input, shape index: {}]   ;;  %s2328_s0 = inlined_call_operand.vmem [shape: f32[2,2048], index: 0, kind: input, shape index: {}]   ;;  %s2329_s2 = inlined_call_operand.vmem [shape: f32[1,64], index: 2, kind: input, shape index: {}]   ;;  %s2330_s3 = inlined_call_operand.vmem [shape: f32[2,64], index: 3, kind: output, shape index: {}]  }
   0x1   :  { %v34_v0 = vld [vmem:[%s2327_s1 + $0x80] sm:$0xff]  ;;  %v35_v1 = vld [vmem:[%s2327_s1 + $0x88] sm:$0xff]  ;;  %v36_v11 = vld [vmem:[%s2327_s1 + $0x90] sm:$0xff]  ;;  %v287_v48 = vunpack.c.l.s4 %v1480_v47 }
   0x2   :  { %v18_v2 = vld [vmem:[%s2327_s1] sm:$0xff]  ;;  %v1217_v3 = vpack.c.bf16 %v35_v1, %v34_v0  ;;  %v19_v4 = vld [vmem:[%s2327_s1 + $0x8] sm:$0xff]  ;;  %v37_v13 = vld [vmem:[%s2327_s1 + $0x98] sm:$0xff]  ;;  %v290_v0 = vshrl.u32 %v289_v49, 7 }
   0x3   :  { %v66_v5 = vld [vmem:[%s2327_s1 + $0x180] sm:$0xff]  ;;  %v67_v6 = vld [vmem:[%s2327_s1 + $0x188] sm:$0xff]  ;;  %v1219_v7 = vpack.c.bf16 %v19_v4, %v18_v2  ;;  %v20_v14 = vld [vmem:[%s2327_s1 + $0x10] sm:$0xff]  ;;  %v1221_v16 = vpack.c.bf16 %v37_v13, %v36_v11  ;;  %v288_v63 = vunpack.c.0.s8 %v287_v48 }
   0x4   :  { %v1249_v8 = vpack.c.bf16 %v67_v6, %v66_v5  ;;  %v50_v9 = vld [vmem:[%s2327_s1 + $0x100] sm:$0xff]  ;;  %v51_v10 = vld [vmem:[%s2327_s1 + $0x108] sm:$0xff]  ;;  %1218 = vmatprep.subr.bf16.mxu0 %v1217_v3  ;;  %v21_v15 = vld [vmem:[%s2327_s1 + $0x18] sm:$0xff] }
   0x5   :  { %v1251_v12 = vpack.c.bf16 %v51_v10, %v50_v9  ;;  %1220 = vmatpush3.bf16.msra.mxu0 %v1219_v7  ;;  %v1223_v17 = vpack.c.bf16 %v21_v15, %v20_v14  ;;  %v68_v18 = vld [vmem:[%s2327_s1 + $0x190] sm:$0xff]  ;;  %v69_v19 = vld [vmem:[%s2327_s1 + $0x198] sm:$0xff]  ;;  %v38_v23 = vld [vmem:[%s2327_s1 + $0xa0] sm:$0xff]  ;;  %v1651_v13 = vsub.s32 %v288_v63, %v290_v0 }
   0x6   :  { %1250 = vmatprep.subr.bf16.mxu1 %v1249_v8  ;;  %v52_v20 = vld [vmem:[%s2327_s1 + $0x110] sm:$0xff]  ;;  %v1253_v21 = vpack.c.bf16 %v69_v19, %v68_v18  ;;  %v53_v22 = vld [vmem:[%s2327_s1 + $0x118] sm:$0xff]  ;;  %v39_v24 = vld [vmem:[%s2327_s1 + $0xa8] sm:$0xff]  ;;  %1222 = vmatprep.subr.bf16.mxu0 %v1221_v16 }
   0x7   :  { %1252 = vmatpush3.bf16.msra.mxu1 %v1251_v12  ;;  %v1255_v25 = vpack.c.bf16 %v53_v22, %v52_v20  ;;  %v1225_v26 = vpack.c.bf16 %v39_v24, %v38_v23  ;;  %v22_v27 = vld [vmem:[%s2327_s1 + $0x20] sm:$0xff]  ;;  %v23_v28 = vld [vmem:[%s2327_s1 + $0x28] sm:$0xff]  ;;  %v40_v35 = vld [vmem:[%s2327_s1 + $0xb0] sm:$0xff] }
   0x8   :  { %v70_v29 = vld [vmem:[%s2327_s1 + $0x1a0] sm:$0xff]  ;;  %1254 = vmatprep.subr.bf16.mxu1 %v1253_v21  ;;  %v71_v30 = vld [vmem:[%s2327_s1 + $0x1a8] sm:$0xff]  ;;  %v1227_v33 = vpack.c.bf16 %v23_v28, %v22_v27  ;;  %v41_v36 = vld [vmem:[%s2327_s1 + $0xb8] sm:$0xff] }
   0x9   :  { %v54_v31 = vld [vmem:[%s2327_s1 + $0x120] sm:$0xff]  ;;  %v55_v32 = vld [vmem:[%s2327_s1 + $0x128] sm:$0xff]  ;;  %1224 = vmatpush3.bf16.msra.mxu0 %v1223_v17  ;;  %v1257_v34 = vpack.c.bf16 %v71_v30, %v70_v29  ;;  %v24_v37 = vld [vmem:[%s2327_s1 + $0x30] sm:$0xff]  ;;  %v1229_v39 = vpack.c.bf16 %v41_v36, %v40_v35 }
   0xa   :  { %1226 = vmatprep.subr.bf16.mxu0 %v1225_v26  ;;  %v1259_v38 = vpack.c.bf16 %v55_v32, %v54_v31  ;;  %v25_v40 = vld [vmem:[%s2327_s1 + $0x38] sm:$0xff]  ;;  %v72_v41 = vld [vmem:[%s2327_s1 + $0x1b0] sm:$0xff]  ;;  %v42_v46 = vld [vmem:[%s2327_s1 + $0xc0] sm:$0xff] }
   0xb   :  { %1256 = vmatpush3.bf16.msra.mxu1 %v1255_v25  ;;  %v73_v42 = vld [vmem:[%s2327_s1 + $0x1b8] sm:$0xff]  ;;  %v56_v44 = vld [vmem:[%s2327_s1 + $0x130] sm:$0xff]  ;;  %v43_v50 = vld [vmem:[%s2327_s1 + $0xc8] sm:$0xff]  ;;  %v1231_v51 = vpack.c.bf16 %v25_v40, %v24_v37 }
   0xc   :  { %1258 = vmatprep.subr.bf16.mxu1 %v1257_v34  ;;  %v1261_v43 = vpack.c.bf16 %v73_v42, %v72_v41  ;;  %v57_v45 = vld [vmem:[%s2327_s1 + $0x138] sm:$0xff]  ;;  %v74_v52 = vld [vmem:[%s2327_s1 + $0x1c0] sm:$0xff]  ;;  %v75_v53 = vld [vmem:[%s2327_s1 + $0x1c8] sm:$0xff]  ;;  %v1233_v55 = vpack.c.bf16 %v43_v50, %v42_v46 }
   0xd   :  { %1228 = vmatpush3.bf16.msra.mxu0 %v1227_v33  ;;  %v1263_v54 = vpack.c.bf16 %v57_v45, %v56_v44  ;;  %v26_v56 = vld [vmem:[%s2327_s1 + $0x40] sm:$0xff]  ;;  %v27_v57 = vld [vmem:[%s2327_s1 + $0x48] sm:$0xff]  ;;  %v1265_v59 = vpack.c.bf16 %v75_v53, %v74_v52  ;;  %v44_v61 = vld [vmem:[%s2327_s1 + $0xd0] sm:$0xff] }
   0xe   :  { %1230 = vmatprep.subr.bf16.mxu0 %v1229_v39  ;;  %v58_v58 = vld [vmem:[%s2327_s1 + $0x140] sm:$0xff]  ;;  %v59_v60 = vld [vmem:[%s2327_s1 + $0x148] sm:$0xff]  ;;  %v45_v62 = vld [vmem:[%s2327_s1 + $0xd8] sm:$0xff]  ;;  %v1235_v3 = vpack.c.bf16 %v27_v57, %v26_v56 }
   0xf   :  { %1260 = vmatpush3.bf16.msra.mxu1 %v1259_v38  ;;  %v76_v1 = vld [vmem:[%s2327_s1 + $0x1d0] sm:$0xff]  ;;  %v77_v2 = vld [vmem:[%s2327_s1 + $0x1d8] sm:$0xff]  ;;  %v1267_v4 = vpack.c.bf16 %v59_v60, %v58_v58  ;;  %v1237_v5 = vpack.c.bf16 %v45_v62, %v44_v61  ;;  %v46_v11 = vld [vmem:[%s2327_s1 + $0xe0] sm:$0xff] }
  0x10   :  { %1262 = vmatprep.subr.bf16.mxu1 %v1261_v43  ;;  %v28_v6 = vld [vmem:[%s2327_s1 + $0x50] sm:$0xff]  ;;  %v29_v7 = vld [vmem:[%s2327_s1 + $0x58] sm:$0xff]  ;;  %v1269_v9 = vpack.c.bf16 %v77_v2, %v76_v1  ;;  %v47_v12 = vld [vmem:[%s2327_s1 + $0xe8] sm:$0xff] }
  0x11   :  { %1232 = vmatpush3.bf16.msra.mxu0 %v1231_v51  ;;  %v60_v8 = vld [vmem:[%s2327_s1 + $0x150] sm:$0xff]  ;;  %v61_v10 = vld [vmem:[%s2327_s1 + $0x158] sm:$0xff]  ;;  %v78_v14 = vld [vmem:[%s2327_s1 + $0x1e0] sm:$0xff]  ;;  %v1239_v16 = vpack.c.bf16 %v29_v7, %v28_v6  ;;  %v1241_v19 = vpack.c.bf16 %v47_v12, %v46_v11 }
  0x12   :  { %1234 = vmatprep.subr.bf16.mxu0 %v1233_v55  ;;  %v79_v15 = vld [vmem:[%s2327_s1 + $0x1e8] sm:$0xff]  ;;  %v30_v17 = vld [vmem:[%s2327_s1 + $0x60] sm:$0xff]  ;;  %v1271_v18 = vpack.c.bf16 %v61_v10, %v60_v8  ;;  %v48_v25 = vld [vmem:[%s2327_s1 + $0xf0] sm:$0xff] }
  0x13   :  { %1264 = vmatpush3.bf16.msra.mxu1 %v1263_v54  ;;  %v31_v20 = vld [vmem:[%s2327_s1 + $0x68] sm:$0xff]  ;;  %v62_v21 = vld [vmem:[%s2327_s1 + $0x160] sm:$0xff]  ;;  %v1273_v23 = vpack.c.bf16 %v79_v15, %v78_v14  ;;  %v49_v26 = vld [vmem:[%s2327_s1 + $0xf8] sm:$0xff] }
  0x14   :  { %1266 = vmatprep.subr.bf16.mxu1 %v1265_v59  ;;  %v14_v22 = vld [vmem:[%s2328_s0] sm:$0xff]  ;;  %v63_v24 = vld [vmem:[%s2327_s1 + $0x168] sm:$0xff]  ;;  %v80_v29 = vld [vmem:[%s2327_s1 + $0x1f0] sm:$0xff]  ;;  %v1243_v31 = vpack.c.bf16 %v31_v20, %v30_v17  ;;  %v1245_v35 = vpack.c.bf16 %v49_v26, %v48_v25 }
  0x15   :  { %1236 = vmatpush3.bf16.msra.mxu0 %v1235_v3  ;;  %v292_v27 = vrot.slane %v14_v22, %v1651_v13  ;;  %v285_v28 = vcombine.high %v14_v22, %v14_v22  ;;  %v81_v30 = vld [vmem:[%s2327_s1 + $0x1f8] sm:$0xff]  ;;  %v1275_v34 = vpack.c.bf16 %v63_v24, %v62_v21  ;;  %v32_v36 = vld [vmem:[%s2327_s1 + $0x70] sm:$0xff]  ;;  %v98_v41 = vld [vmem:[%s2327_s1 + $0x280] sm:$0xff] }
  0x16   :  { %1238 = vmatprep.subr.bf16.mxu0 %v1237_v5  ;;  %v33_v37 = vld [vmem:[%s2327_s1 + $0x78] sm:$0xff]  ;;  %v64_v38 = vld [vmem:[%s2327_s1 + $0x170] sm:$0xff]  ;;  %v1277_v39 = vpack.c.bf16 %v81_v30, %v80_v29  ;;  %v99_v42 = vld [vmem:[%s2327_s1 + $0x288] sm:$0xff] }
  0x17   :  { %1268 = vmatpush3.bf16.msra.mxu1 %v1267_v4  ;;  %v300_v32 = vcombine.high %v292_v27, %v292_v27  ;;  %v299_v33 = vrot.slane %v285_v28, %v1651_v13  ;;  %v65_v40 = vld [vmem:[%s2327_s1 + $0x178] sm:$0xff]  ;;  %v130_v44 = vld [vmem:[%s2327_s1 + $0x380] sm:$0xff]  ;;  %v131_v45 = vld [vmem:[%s2327_s1 + $0x388] sm:$0xff]  ;;  %v1247_v46 = vpack.c.bf16 %v33_v37, %v32_v36  ;;  %v1281_v48 = vpack.c.bf16 %v99_v42, %v98_v41 }
  0x18   :  { %1270 = vmatprep.subr.bf16.mxu1 %v1269_v9  ;;  %v1279_v47 = vpack.c.bf16 %v65_v40, %v64_v38  ;;  %v82_v49 = vld [vmem:[%s2327_s1 + $0x200] sm:$0xff]  ;;  %v83_v50 = vld [vmem:[%s2327_s1 + $0x208] sm:$0xff]  ;;  %v1313_v52 = vpack.c.bf16 %v131_v45, %v130_v44  ;;  %v100_v54 = vld [vmem:[%s2327_s1 + $0x290] sm:$0xff] }
  0x19   :  { %1240 = vmatpush3.bf16.msra.mxu0 %v1239_v16  ;;  %433 = vmatprep.mubr.f32.mxu0 %v300_v32  ;;  %v301_v43 = vcombine.high %v299_v33, %v299_v33  ;;  %v114_v51 = vld [vmem:[%s2327_s1 + $0x300] sm:$0xff]  ;;  %v115_v53 = vld [vmem:[%s2327_s1 + $0x308] sm:$0xff]  ;;  %v101_v55 = vld [vmem:[%s2327_s1 + $0x298] sm:$0xff]  ;;  %v1283_v58 = vpack.c.bf16 %v83_v50, %v82_v49 }
  0x1a   :  { %1242 = vmatprep.subr.bf16.mxu0 %v1241_v19  ;;  %v132_v56 = vld [vmem:[%s2327_s1 + $0x390] sm:$0xff]  ;;  %v133_v57 = vld [vmem:[%s2327_s1 + $0x398] sm:$0xff]  ;;  %v1315_v59 = vpack.c.bf16 %v115_v53, %v114_v51  ;;  %v1285_v60 = vpack.c.bf16 %v101_v55, %v100_v54  ;;  %v102_v2 = vld [vmem:[%s2327_s1 + $0x2a0] sm:$0xff] }
  0x1b   :  { %1272 = vmatpush3.bf16.msra.mxu1 %v1271_v18  ;;  %503 = vmatprep.mubr.f32.mxu1 %v301_v43  ;;  %v84_v61 = vld [vmem:[%s2327_s1 + $0x210] sm:$0xff]  ;;  %v85_v62 = vld [vmem:[%s2327_s1 + $0x218] sm:$0xff]  ;;  %v1317_v0 = vpack.c.bf16 %v133_v57, %v132_v56  ;;  %v103_v3 = vld [vmem:[%s2327_s1 + $0x2a8] sm:$0xff] }
  0x1c   :  { %1274 = vmatprep.subr.bf16.mxu1 %v1273_v23  ;;  %v116_v63 = vld [vmem:[%s2327_s1 + $0x310] sm:$0xff]  ;;  %v117_v1 = vld [vmem:[%s2327_s1 + $0x318] sm:$0xff]  ;;  %v134_v4 = vld [vmem:[%s2327_s1 + $0x3a0] sm:$0xff]  ;;  %v1287_v6 = vpack.c.bf16 %v85_v62, %v84_v61  ;;  %v1289_v8 = vpack.c.bf16 %v103_v3, %v102_v2 }
  0x1d   :  { %1244 = vmatpush3.bf16.msra.mxu0 %v1243_v31  ;;  %v135_v5 = vld [vmem:[%s2327_s1 + $0x3a8] sm:$0xff]  ;;  %v1319_v7 = vpack.c.bf16 %v117_v1, %v116_v63  ;;  %v86_v9 = vld [vmem:[%s2327_s1 + $0x220] sm:$0xff]  ;;  %v104_v15 = vld [vmem:[%s2327_s1 + $0x2b0] sm:$0xff] }
  0x1e   :  { %1246 = vmatprep.subr.bf16.mxu0 %v1245_v35  ;;  %v87_v10 = vld [vmem:[%s2327_s1 + $0x228] sm:$0xff]  ;;  %v118_v11 = vld [vmem:[%s2327_s1 + $0x320] sm:$0xff]  ;;  %v1321_v12 = vpack.c.bf16 %v135_v5, %v134_v4  ;;  %v105_v16 = vld [vmem:[%s2327_s1 + $0x2b8] sm:$0xff] }
  0x1f   :  { %1276 = vmatpush3.bf16.msra.mxu1 %v1275_v34  ;;  %v119_v14 = vld [vmem:[%s2327_s1 + $0x328] sm:$0xff]  ;;  %v136_v17 = vld [vmem:[%s2327_s1 + $0x3b0] sm:$0xff]  ;;  %v137_v18 = vld [vmem:[%s2327_s1 + $0x3b8] sm:$0xff]  ;;  %v1291_v19 = vpack.c.bf16 %v87_v10, %v86_v9  ;;  %v1293_v21 = vpack.c.bf16 %v105_v16, %v104_v15 }
  0x20   :  { %1278 = vmatprep.subr.bf16.mxu1 %v1277_v39  ;;  %v1323_v20 = vpack.c.bf16 %v119_v14, %v118_v11  ;;  %v88_v22 = vld [vmem:[%s2327_s1 + $0x230] sm:$0xff]  ;;  %v89_v23 = vld [vmem:[%s2327_s1 + $0x238] sm:$0xff]  ;;  %v1325_v25 = vpack.c.bf16 %v137_v18, %v136_v17  ;;  %v107_v28 = vld [vmem:[%s2327_s1 + $0x2c8] sm:$0xff] }
  0x21   :  { %1248 = vmatpush3.bf16.msra.mxu0 %v1247_v46  ;;  %v120_v24 = vld [vmem:[%s2327_s1 + $0x330] sm:$0xff]  ;;  %v121_v26 = vld [vmem:[%s2327_s1 + $0x338] sm:$0xff]  ;;  %v138_v29 = vld [vmem:[%s2327_s1 + $0x3c0] sm:$0xff]  ;;  %v1295_v32 = vpack.c.bf16 %v89_v23, %v88_v22 }
  0x22   :  { %1282 = vmatprep.subr.bf16.mxu0 %v1281_v48  ;;  %v139_v30 = vld [vmem:[%s2327_s1 + $0x3c8] sm:$0xff]  ;;  %v1327_v35 = vpack.c.bf16 %v121_v26, %v120_v24  ;;  %v90_v37 = vld [vmem:[%s2327_s1 + $0x240] sm:$0xff]  ;;  %v108_v42 = vld [vmem:[%s2327_s1 + $0x2d0] sm:$0xff] }
  0x23   :  { %1280 = vmatpush3.bf16.msra.mxu1 %v1279_v47  ;;  %v15_v31 = vld [vmem:[%s2328_s0 + $0x8] sm:$0xff]  ;;  %v122_v39 = vld [vmem:[%s2327_s1 + $0x340] sm:$0xff]  ;;  %v1329_v40 = vpack.c.bf16 %v139_v30, %v138_v29  ;;  %v109_v43 = vld [vmem:[%s2327_s1 + $0x2d8] sm:$0xff] }
  0x24   :  { %1314 = vmatprep.subr.bf16.mxu1 %v1313_v52  ;;  %434 = vmatmul.mubr.f32.vlgmr.msra.gmra.mrb[0].mxu0 %v292_v27  ;;  %v106_v27 = vld [vmem:[%s2327_s1 + $0x2c0] sm:$0xff]  ;;  %v302_v34 = vcombine.high %v15_v31, %v15_v31  ;;  %v91_v38 = vld [vmem:[%s2327_s1 + $0x248] sm:$0xff]  ;;  %v140_v46 = vld [vmem:[%s2327_s1 + $0x3d0] sm:$0xff]  ;;  %v1301_v51 = vpack.c.bf16 %v109_v43, %v108_v42 }
  0x25   :  { %1284 = vmatpush3.bf16.msra.mxu0 %v1283_v58  ;;  %v1297_v36 = vpack.c.bf16 %v107_v28, %v106_v27  ;;  %v123_v41 = vld [vmem:[%s2327_s1 + $0x348] sm:$0xff]  ;;  %v141_v47 = vld [vmem:[%s2327_s1 + $0x3d8] sm:$0xff]  ;;  %v1299_v48 = vpack.c.bf16 %v91_v38, %v90_v37  ;;  %v92_v52 = vld [vmem:[%s2327_s1 + $0x250] sm:$0xff] }
  0x26   :  { %504 = vmatmul.mubr.f32.vlgmr.msra.gmra.mrb[0].mxu1 %v299_v33  ;;  %1286 = vmatprep.subr.bf16.mxu0 %v1285_v60  ;;  %v1812_v33 = vrot.slane %v15_v31, %v1651_v13  ;;  %v1835_v45 = vrot.slane %v302_v34, %v1651_v13  ;;  %v1331_v50 = vpack.c.bf16 %v123_v41, %v122_v39  ;;  %v93_v53 = vld [vmem:[%s2327_s1 + $0x258] sm:$0xff]  ;;  %v124_v54 = vld [vmem:[%s2327_s1 + $0x350] sm:$0xff]  ;;  %v110_v57 = vld [vmem:[%s2327_s1 + $0x2e0] sm:$0xff] }
  0x27   :  { %1316 = vmatpush3.bf16.msra.mxu1 %v1315_v59  ;;  %v1333_v55 = vpack.c.bf16 %v141_v47, %v140_v46  ;;  %v125_v56 = vld [vmem:[%s2327_s1 + $0x358] sm:$0xff]  ;;  %v111_v58 = vld [vmem:[%s2327_s1 + $0x2e8] sm:$0xff]  ;;  %v142_v59 = vld [vmem:[%s2327_s1 + $0x3e0] sm:$0xff]  ;;  %v1303_v61 = vpack.c.bf16 %v93_v53, %v92_v52 }
  0x28   :  { %1318 = vmatprep.subr.bf16.mxu1 %v1317_v0  ;;  %v317_v44 = vcombine.high %v1812_v33, %v1812_v33  ;;  %v318_v49 = vcombine.high %v1835_v45, %v1835_v45  ;;  %v143_v60 = vld [vmem:[%s2327_s1 + $0x3e8] sm:$0xff]  ;;  %v1335_v62 = vpack.c.bf16 %v125_v56, %v124_v54  ;;  %v1305_v63 = vpack.c.bf16 %v111_v58, %v110_v57  ;;  %v94_v0 = vld [vmem:[%s2327_s1 + $0x260] sm:$0xff]  ;;  %v112_v5 = vld [vmem:[%s2327_s1 + $0x2f0] sm:$0xff] }
  0x29   :  { %1288 = vmatpush3.bf16.msra.mxu0 %v1287_v6  ;;  %v95_v1 = vld [vmem:[%s2327_s1 + $0x268] sm:$0xff]  ;;  %v126_v2 = vld [vmem:[%s2327_s1 + $0x360] sm:$0xff]  ;;  %v1337_v3 = vpack.c.bf16 %v143_v60, %v142_v59  ;;  %v113_v6 = vld [vmem:[%s2327_s1 + $0x2f8] sm:$0xff] }
  0x2a   :  { %1290 = vmatprep.subr.bf16.mxu0 %v1289_v8  ;;  %573 = vmatprep.mubr.f32.mxu0 %v317_v44  ;;  %v127_v4 = vld [vmem:[%s2327_s1 + $0x368] sm:$0xff]  ;;  %v145_v8 = vld [vmem:[%s2327_s1 + $0x3f8] sm:$0xff]  ;;  %v1307_v9 = vpack.c.bf16 %v95_v1, %v94_v0  ;;  %v1309_v11 = vpack.c.bf16 %v113_v6, %v112_v5  ;;  %v128_v15 = vld [vmem:[%s2327_s1 + $0x370] sm:$0xff] }
  0x2b   :  { %1320 = vmatpush3.bf16.msra.mxu1 %v1319_v7  ;;  %643 = vmatprep.mubr.f32.mxu1 %v318_v49  ;;  %v144_v7 = vld [vmem:[%s2327_s1 + $0x3f0] sm:$0xff]  ;;  %v1339_v10 = vpack.c.bf16 %v127_v4, %v126_v2  ;;  %v97_v14 = vld [vmem:[%s2327_s1 + $0x278] sm:$0xff]  ;;  %v162_v18 = vld [vmem:[%s2327_s1 + $0x480] sm:$0xff] }
  0x2c   :  { %1322 = vmatprep.subr.bf16.mxu1 %v1321_v12  ;;  %v96_v12 = vld [vmem:[%s2327_s1 + $0x270] sm:$0xff]  ;;  %v1341_v16 = vpack.c.bf16 %v145_v8, %v144_v7  ;;  %v129_v17 = vld [vmem:[%s2327_s1 + $0x378] sm:$0xff]  ;;  %v146_v23 = vld [vmem:[%s2327_s1 + $0x400] sm:$0xff] }
  0x2d   :  { %1292 = vmatpush3.bf16.msra.mxu0 %v1291_v19  ;;  %v163_v19 = vld [vmem:[%s2327_s1 + $0x488] sm:$0xff]  ;;  %v1311_v22 = vpack.c.bf16 %v97_v14, %v96_v12  ;;  %v1343_v24 = vpack.c.bf16 %v129_v17, %v128_v15  ;;  %v178_v27 = vld [vmem:[%s2327_s1 + $0x500] sm:$0xff]  ;;  %v164_v30 = vld [vmem:[%s2327_s1 + $0x490] sm:$0xff] }
  0x2e   :  { %1294 = vmatprep.subr.bf16.mxu0 %v1293_v21  ;;  %v195_v21 = vld [vmem:[%s2327_s1 + $0x588] sm:$0xff]  ;;  %v165_v31 = vld [vmem:[%s2327_s1 + $0x498] sm:$0xff]  ;;  %v16_v37 = vld [vmem:[%s2328_s0 + $0x10] sm:$0xff] }
  0x2f   :  { %1324 = vmatpush3.bf16.msra.mxu1 %v1323_v20  ;;  %v194_v20 = vld [vmem:[%s2327_s1 + $0x580] sm:$0xff]  ;;  %v147_v26 = vld [vmem:[%s2327_s1 + $0x408] sm:$0xff]  ;;  %v197_v34 = vld [vmem:[%s2327_s1 + $0x598] sm:$0xff]  ;;  %v1349_v38 = vpack.c.bf16 %v165_v31, %v164_v30  ;;  %v1954_v42 = vrot.slane %v16_v37, %v1651_v13  ;;  %v319_v43 = vcombine.high %v16_v37, %v16_v37 }
  0x30   :  { %1326 = vmatprep.subr.bf16.mxu1 %v1325_v25  ;;  %v1345_v25 = vpack.c.bf16 %v163_v19, %v162_v18  ;;  %v179_v28 = vld [vmem:[%s2327_s1 + $0x508] sm:$0xff]  ;;  %v1377_v29 = vpack.c.bf16 %v195_v21, %v194_v20  ;;  %v148_v39 = vld [vmem:[%s2327_s1 + $0x410] sm:$0xff]  ;;  %v181_v46 = vld [vmem:[%s2327_s1 + $0x518] sm:$0xff] }
  0x31   :  { %1296 = vmatpush3.bf16.msra.mxu0 %v1295_v32  ;;  %v196_v32 = vld [vmem:[%s2327_s1 + $0x590] sm:$0xff]  ;;  %v166_v47 = vld [vmem:[%s2327_s1 + $0x4a0] sm:$0xff]  ;;  %v1975_v52 = vrot.slane %v319_v43, %v1651_v13  ;;  %v151_v56 = vld [vmem:[%s2327_s1 + $0x428] sm:$0xff] }
  0x32   :  { %1298 = vmatprep.subr.bf16.mxu0 %v1297_v36  ;;  %v1379_v36 = vpack.c.bf16 %v179_v28, %v178_v27  ;;  %v180_v41 = vld [vmem:[%s2327_s1 + $0x510] sm:$0xff]  ;;  %v1381_v44 = vpack.c.bf16 %v197_v34, %v196_v32  ;;  %v198_v49 = vld [vmem:[%s2327_s1 + $0x5a0] sm:$0xff]  ;;  %v183_v59 = vld [vmem:[%s2327_s1 + $0x528] sm:$0xff] }
  0x33   :  { %1328 = vmatpush3.bf16.msra.mxu1 %v1327_v35  ;;  %v1347_v35 = vpack.c.bf16 %v147_v26, %v146_v23  ;;  %v182_v57 = vld [vmem:[%s2327_s1 + $0x520] sm:$0xff]  ;;  %v168_v60 = vld [vmem:[%s2327_s1 + $0x4b0] sm:$0xff]  ;;  %v153_v4 = vld [vmem:[%s2327_s1 + $0x438] sm:$0xff] }
  0x34   :  { %1330 = vmatprep.subr.bf16.mxu1 %v1329_v40  ;;  %v149_v40 = vld [vmem:[%s2327_s1 + $0x418] sm:$0xff]  ;;  %v1387_v1 = vpack.c.bf16 %v183_v59, %v182_v57  ;;  %v184_v5 = vld [vmem:[%s2327_s1 + $0x530] sm:$0xff]  ;;  %v170_v8 = vld [vmem:[%s2327_s1 + $0x4c0] sm:$0xff] }
  0x35   :  { %1300 = vmatpush3.bf16.msra.mxu0 %v1299_v48  ;;  %v167_v48 = vld [vmem:[%s2327_s1 + $0x4a8] sm:$0xff]  ;;  %v1351_v53 = vpack.c.bf16 %v149_v40, %v148_v39  ;;  %v185_v7 = vld [vmem:[%s2327_s1 + $0x538] sm:$0xff]  ;;  %v186_v18 = vld [vmem:[%s2327_s1 + $0x540] sm:$0xff] }
  0x36   :  { %1302 = vmatprep.subr.bf16.mxu0 %v1301_v51  ;;  %v334_v51 = vcombine.high %v1954_v42, %v1954_v42  ;;  %v1353_v54 = vpack.c.bf16 %v167_v48, %v166_v47  ;;  %v1391_v14 = vpack.c.bf16 %v185_v7, %v184_v5  ;;  %v155_v17 = vld [vmem:[%s2327_s1 + $0x448] sm:$0xff]  ;;  %v172_v21 = vld [vmem:[%s2327_s1 + $0x4d0] sm:$0xff]  ;;  %v189_v32 = vld [vmem:[%s2327_s1 + $0x558] sm:$0xff] }
  0x37   :  { %1332 = vmatpush3.bf16.msra.mxu1 %v1331_v50  ;;  %v199_v50 = vld [vmem:[%s2327_s1 + $0x5a8] sm:$0xff]  ;;  %v204_v23 = vld [vmem:[%s2327_s1 + $0x5d0] sm:$0xff]  ;;  %v174_v34 = vld [vmem:[%s2327_s1 + $0x4e0] sm:$0xff] }
  0x38   :  { %1334 = vmatprep.subr.bf16.mxu1 %v1333_v55  ;;  %v150_v55 = vld [vmem:[%s2327_s1 + $0x420] sm:$0xff]  ;;  %v1385_v58 = vpack.c.bf16 %v199_v50, %v198_v49  ;;  %v187_v20 = vld [vmem:[%s2327_s1 + $0x548] sm:$0xff]  ;;  %v156_v28 = vld [vmem:[%s2327_s1 + $0x450] sm:$0xff] }
  0x39   :  { %1304 = vmatpush3.bf16.msra.mxu0 %v1303_v61  ;;  %v169_v61 = vld [vmem:[%s2327_s1 + $0x4b8] sm:$0xff]  ;;  %v1355_v0 = vpack.c.bf16 %v151_v56, %v150_v55  ;;  %v1395_v26 = vpack.c.bf16 %v187_v20, %v186_v18  ;;  %v188_v30 = vld [vmem:[%s2327_s1 + $0x550] sm:$0xff]  ;;  %v207_v37 = vld [vmem:[%s2327_s1 + $0x5e8] sm:$0xff] }
  0x3a   :  { %1306 = vmatprep.subr.bf16.mxu0 %v1305_v63  ;;  %v201_v63 = vld [vmem:[%s2327_s1 + $0x5b8] sm:$0xff]  ;;  %v1357_v2 = vpack.c.bf16 %v169_v61, %v168_v60  ;;  %v1399_v39 = vpack.c.bf16 %v189_v32, %v188_v30  ;;  %v159_v43 = vld [vmem:[%s2327_s1 + $0x468] sm:$0xff]  ;;  %v176_v48 = vld [vmem:[%s2327_s1 + $0x4f0] sm:$0xff] }
  0x3b   :  { %1336 = vmatpush3.bf16.msra.mxu1 %v1335_v62  ;;  %v200_v62 = vld [vmem:[%s2327_s1 + $0x5b0] sm:$0xff]  ;;  %v191_v47 = vld [vmem:[%s2327_s1 + $0x568] sm:$0xff]  ;;  %v177_v49 = vld [vmem:[%s2327_s1 + $0x4f8] sm:$0xff] }
  0x3c   :  { %1338 = vmatprep.subr.bf16.mxu1 %v1337_v3  ;;  %v152_v3 = vld [vmem:[%s2327_s1 + $0x430] sm:$0xff]  ;;  %v1389_v6 = vpack.c.bf16 %v201_v63, %v200_v62  ;;  %v1373_v55 = vpack.c.bf16 %v177_v49, %v176_v48  ;;  %v161_v57 = vld [vmem:[%s2327_s1 + $0x478] sm:$0xff]  ;;  %v226_v60 = vld [vmem:[%s2327_s1 + $0x680] sm:$0xff] }
  0x3d   :  { %1308 = vmatpush3.bf16.msra.mxu0 %v1307_v9  ;;  %v171_v9 = vld [vmem:[%s2327_s1 + $0x4c8] sm:$0xff]  ;;  %v1359_v12 = vpack.c.bf16 %v153_v4, %v152_v3  ;;  %v208_v50 = vld [vmem:[%s2327_s1 + $0x5f0] sm:$0xff]  ;;  %v193_v59 = vld [vmem:[%s2327_s1 + $0x578] sm:$0xff] }
  0x3e   :  { %1310 = vmatprep.subr.bf16.mxu0 %v1309_v11  ;;  %v203_v11 = vld [vmem:[%s2327_s1 + $0x5c8] sm:$0xff]  ;;  %v1361_v15 = vpack.c.bf16 %v171_v9, %v170_v8  ;;  %v160_v56 = vld [vmem:[%s2327_s1 + $0x470] sm:$0xff]  ;;  %v258_v62 = vld [vmem:[%s2327_s1 + $0x780] sm:$0xff] }
  0x3f   :  { %1340 = vmatpush3.bf16.msra.mxu1 %v1339_v10  ;;  %v202_v10 = vld [vmem:[%s2327_s1 + $0x5c0] sm:$0xff]  ;;  %v227_v61 = vld [vmem:[%s2327_s1 + $0x688] sm:$0xff]  ;;  %v228_v9 = vld [vmem:[%s2327_s1 + $0x690] sm:$0xff] }
  0x40   :  { %1342 = vmatprep.subr.bf16.mxu1 %v1341_v16  ;;  %v154_v16 = vld [vmem:[%s2327_s1 + $0x440] sm:$0xff]  ;;  %v1393_v19 = vpack.c.bf16 %v203_v11, %v202_v10  ;;  %v259_v63 = vld [vmem:[%s2327_s1 + $0x788] sm:$0xff]  ;;  %v1409_v3 = vpack.c.bf16 %v227_v61, %v226_v60  ;;  %v229_v10 = vld [vmem:[%s2327_s1 + $0x698] sm:$0xff] }
  0x41   :  { %1312 = vmatpush3.bf16.msra.mxu0 %v1311_v22  ;;  %v173_v22 = vld [vmem:[%s2327_s1 + $0x4d8] sm:$0xff]  ;;  %v210_v4 = vld [vmem:[%s2327_s1 + $0x600] sm:$0xff]  ;;  %v211_v5 = vld [vmem:[%s2327_s1 + $0x608] sm:$0xff]  ;;  %v1441_v7 = vpack.c.bf16 %v259_v63, %v258_v62  ;;  %v1413_v18 = vpack.c.bf16 %v229_v10, %v228_v9 }
  0x42   :  { %1346 = vmatprep.subr.bf16.mxu0 %v1345_v25  ;;  %v1363_v25 = vpack.c.bf16 %v155_v17, %v154_v16  ;;  %v1365_v27 = vpack.c.bf16 %v173_v22, %v172_v21  ;;  %v243_v8 = vld [vmem:[%s2327_s1 + $0x708] sm:$0xff]  ;;  %v1411_v16 = vpack.c.bf16 %v211_v5, %v210_v4  ;;  %v213_v20 = vld [vmem:[%s2327_s1 + $0x618] sm:$0xff]  ;;  %v244_v21 = vld [vmem:[%s2327_s1 + $0x710] sm:$0xff] }
  0x43   :  { %1344 = vmatpush3.bf16.msra.mxu1 %v1343_v24  ;;  %v205_v24 = vld [vmem:[%s2327_s1 + $0x5d8] sm:$0xff]  ;;  %v215_v32 = vld [vmem:[%s2327_s1 + $0x628] sm:$0xff]  ;;  %v236_v61 = vld [vmem:[%s2327_s1 + $0x6d0] sm:$0xff] }
  0x44   :  { %1378 = vmatprep.subr.bf16.mxu1 %v1377_v29  ;;  %574 = vmatmul.mubr.f32.vlgmr.msra.gmra.mrb[2].mxu0 %v1812_v33  ;;  %v1383_v33 = vpack.c.bf16 %v181_v46, %v180_v41  ;;  %v157_v29 = vld [vmem:[%s2327_s1 + $0x458] sm:$0xff]  ;;  %v1397_v31 = vpack.c.bf16 %v205_v24, %v204_v23  ;;  %v158_v41 = vld [vmem:[%s2327_s1 + $0x460] sm:$0xff]  ;;  %v231_v24 = vld [vmem:[%s2327_s1 + $0x6a8] sm:$0xff] }
  0x45   :  { %1348 = vmatpush3.bf16.msra.mxu0 %v1347_v35  ;;  %713 = vmatprep.mubr.f32.mxu0 %v334_v51  ;;  %v175_v35 = vld [vmem:[%s2327_s1 + $0x4e8] sm:$0xff]  ;;  %v209_v51 = vld [vmem:[%s2327_s1 + $0x5f8] sm:$0xff]  ;;  %v230_v23 = vld [vmem:[%s2327_s1 + $0x6a0] sm:$0xff] }
  0x46   :  { %644 = vmatmul.mubr.f32.vlgmr.msra.gmra.mrb[2].mxu1 %v1835_v45  ;;  %1350 = vmatprep.subr.bf16.mxu0 %v1349_v38  ;;  %v335_v45 = vcombine.high %v1975_v52, %v1975_v52  ;;  %v1367_v38 = vpack.c.bf16 %v157_v29, %v156_v28  ;;  %v1369_v40 = vpack.c.bf16 %v175_v35, %v174_v34  ;;  %v245_v22 = vld [vmem:[%s2327_s1 + $0x718] sm:$0xff]  ;;  %v246_v34 = vld [vmem:[%s2327_s1 + $0x720] sm:$0xff]  ;;  %v251_v60 = vld [vmem:[%s2327_s1 + $0x748] sm:$0xff] }
  0x47   :  { %1380 = vmatpush3.bf16.msra.mxu1 %v1379_v36  ;;  %v206_v36 = vld [vmem:[%s2327_s1 + $0x5e0] sm:$0xff]  ;;  %v1447_v30 = vpack.c.bf16 %v245_v22, %v244_v21  ;;  %v249_v49 = vld [vmem:[%s2327_s1 + $0x738] sm:$0xff]  ;;  %v268_v63 = vld [vmem:[%s2327_s1 + $0x7d0] sm:$0xff] }
  0x48   :  { %1382 = vmatprep.subr.bf16.mxu1 %v1381_v44  ;;  %783 = vmatprep.mubr.f32.mxu1 %v335_v45  ;;  %v190_v44 = vld [vmem:[%s2327_s1 + $0x560] sm:$0xff]  ;;  %v1401_v46 = vpack.c.bf16 %v207_v37, %v206_v36  ;;  %v192_v45 = vld [vmem:[%s2327_s1 + $0x570] sm:$0xff]  ;;  %v233_v37 = vld [vmem:[%s2327_s1 + $0x6b8] sm:$0xff] }
  0x49   :  { %1352 = vmatpush3.bf16.msra.mxu0 %v1351_v53  ;;  %v1371_v53 = vpack.c.bf16 %v159_v43, %v158_v41  ;;  %v232_v36 = vld [vmem:[%s2327_s1 + $0x6b0] sm:$0xff]  ;;  %v237_v62 = vld [vmem:[%s2327_s1 + $0x6d8] sm:$0xff]  ;;  %v238_v9 = vld [vmem:[%s2327_s1 + $0x6e0] sm:$0xff] }
  0x4a   :  { %1354 = vmatprep.subr.bf16.mxu0 %v1353_v54  ;;  %v1403_v54 = vpack.c.bf16 %v191_v47, %v190_v44  ;;  %v1421_v43 = vpack.c.bf16 %v233_v37, %v232_v36  ;;  %v216_v44 = vld [vmem:[%s2327_s1 + $0x630] sm:$0xff]  ;;  %v221_v5 = vld [vmem:[%s2327_s1 + $0x658] sm:$0xff]  ;;  %v239_v10 = vld [vmem:[%s2327_s1 + $0x6e8] sm:$0xff] }
  0x4b   :  { %1384 = vmatpush3.bf16.msra.mxu1 %v1383_v33  ;;  %v17_v33 = vld [vmem:[%s2328_s0 + $0x18] sm:$0xff]  ;;  %v248_v47 = vld [vmem:[%s2327_s1 + $0x730] sm:$0xff]  ;;  %v254_v21 = vld [vmem:[%s2327_s1 + $0x760] sm:$0xff] }
  0x4c   :  { %1386 = vmatprep.subr.bf16.mxu1 %v1385_v58  ;;  %v1405_v58 = vpack.c.bf16 %v209_v51, %v208_v50  ;;  %v2146_v11 = vrot.slane %v17_v33, %v1651_v13  ;;  %v234_v50 = vld [vmem:[%s2327_s1 + $0x6c0] sm:$0xff]  ;;  %v235_v51 = vld [vmem:[%s2327_s1 + $0x6c8] sm:$0xff]  ;;  %v220_v4 = vld [vmem:[%s2327_s1 + $0x650] sm:$0xff] }
  0x4d   :  { %1356 = vmatpush3.bf16.msra.mxu0 %v1355_v0  ;;  %v336_v0 = vcombine.high %v17_v33, %v17_v33  ;;  %v267_v33 = vld [vmem:[%s2327_s1 + $0x7c8] sm:$0xff]  ;;  %v936_v37 = vld [vmem:[%s2329_s2] ss:$0 sm:$0xff] }
  0x4e   :  { %1358 = vmatprep.subr.bf16.mxu0 %v1357_v2  ;;  %v1407_v2 = vpack.c.bf16 %v193_v59, %v192_v45  ;;  %v219_v45 = vld [vmem:[%s2327_s1 + $0x648] sm:$0xff] }
  0x4f   :  { %1388 = vmatpush3.bf16.msra.mxu1 %v1387_v1  ;;  %v1375_v1 = vpack.c.bf16 %v161_v57, %v160_v56  ;;  %v1425_v56 = vpack.c.bf16 %v235_v51, %v234_v50  ;;  %v218_v57 = vld [vmem:[%s2327_s1 + $0x640] sm:$0xff]  ;;  %v255_v22 = vld [vmem:[%s2327_s1 + $0x768] sm:$0xff] }
  0x50   :  { %1390 = vmatprep.subr.bf16.mxu1 %v1389_v6  ;;  %v242_v6 = vld [vmem:[%s2327_s1 + $0x700] sm:$0xff] }
  0x51   :  { %1360 = vmatpush3.bf16.msra.mxu0 %v1359_v12  ;;  %v260_v12 = vld [vmem:[%s2327_s1 + $0x790] sm:$0xff]  ;;  %v1443_v17 = vpack.c.bf16 %v243_v8, %v242_v6  ;;  %v253_v8 = vld [vmem:[%s2327_s1 + $0x758] sm:$0xff] }
  0x52   :  { %1362 = vmatprep.subr.bf16.mxu0 %v1361_v15  ;;  %v2155_v15 = vrot.slane %v336_v0, %v1651_v13  ;;  %v269_v0 = vld [vmem:[%s2327_s1 + $0x7d8] sm:$0xff]  ;;  %v252_v6 = vld [vmem:[%s2327_s1 + $0x750] sm:$0xff] }
  0x53   :  { %1392 = vmatpush3.bf16.msra.mxu1 %v1391_v14  ;;  %v261_v14 = vld [vmem:[%s2327_s1 + $0x798] sm:$0xff] }
  0x54   :  { %1394 = vmatprep.subr.bf16.mxu1 %v1393_v19  ;;  %v212_v19 = vld [vmem:[%s2327_s1 + $0x610] sm:$0xff]  ;;  %v1445_v13 = vpack.c.bf16 %v261_v14, %v260_v12  ;;  %v352_v28 = vcombine.high %v2155_v15, %v2155_v15  ;;  %v270_v12 = vld [vmem:[%s2327_s1 + $0x7e0] sm:$0xff]  ;;  %v271_v14 = vld [vmem:[%s2327_s1 + $0x7e8] sm:$0xff] }
  0x55   :  { %1364 = vmatpush3.bf16.msra.mxu0 %v1363_v25  ;;  %v351_v25 = vcombine.high %v2146_v11, %v2146_v11  ;;  %v1415_v29 = vpack.c.bf16 %v213_v20, %v212_v19  ;;  %v222_v19 = vld [vmem:[%s2327_s1 + $0x660] sm:$0xff]  ;;  %v223_v20 = vld [vmem:[%s2327_s1 + $0x668] sm:$0xff] }
  0x56   :  { %1366 = vmatprep.subr.bf16.mxu0 %v1365_v27  ;;  %v263_v27 = vld [vmem:[%s2327_s1 + $0x7a8] sm:$0xff] }
  0x57   :  { %1396 = vmatpush3.bf16.msra.mxu1 %v1395_v26  ;;  %v262_v26 = vld [vmem:[%s2327_s1 + $0x7a0] sm:$0xff] }
  0x58   :  { %1398 = vmatprep.subr.bf16.mxu1 %v1397_v31  ;;  %v1417_v31 = vpack.c.bf16 %v231_v24, %v230_v23  ;;  %v1449_v35 = vpack.c.bf16 %v263_v27, %v262_v26  ;;  %v240_v23 = vld [vmem:[%s2327_s1 + $0x6f0] sm:$0xff]  ;;  %v241_v24 = vld [vmem:[%s2327_s1 + $0x6f8] sm:$0xff]  ;;  %v1435_v27 = vpack.c.bf16 %v223_v20, %v222_v19 }
  0x59   :  { %1368 = vmatpush3.bf16.msra.mxu0 %v1367_v38  ;;  %v264_v38 = vld [vmem:[%s2327_s1 + $0x7b0] sm:$0xff]  ;;  %v273_v26 = vld [vmem:[%s2327_s1 + $0x7f8] sm:$0xff] }
  0x5a   :  { %1370 = vmatprep.subr.bf16.mxu0 %v1369_v40 }
  0x5b   :  { %1400 = vmatpush3.bf16.msra.mxu1 %v1399_v39  ;;  %v265_v39 = vld [vmem:[%s2327_s1 + $0x7b8] sm:$0xff] }
  0x5c   :  { %1402 = vmatprep.subr.bf16.mxu1 %v1401_v46  ;;  %v217_v46 = vld [vmem:[%s2327_s1 + $0x638] sm:$0xff]  ;;  %v1453_v48 = vpack.c.bf16 %v265_v39, %v264_v38 }
  0x5d   :  { %1372 = vmatpush3.bf16.msra.mxu0 %v1371_v53  ;;  %v266_v53 = vld [vmem:[%s2327_s1 + $0x7c0] sm:$0xff] }
  0x5e   :  { %1374 = vmatprep.subr.bf16.mxu0 %v1373_v55  ;;  %v1455_v55 = vpack.c.bf16 %v249_v49, %v248_v47  ;;  %v1457_v59 = vpack.c.bf16 %v267_v33, %v266_v53 }
  0x5f   :  { %1404 = vmatpush3.bf16.msra.mxu1 %v1403_v54  ;;  %v1423_v54 = vpack.c.bf16 %v217_v46, %v216_v44 }
  0x60   :  { %1406 = vmatprep.subr.bf16.mxu1 %v1405_v58  ;;  %v250_v58 = vld [vmem:[%s2327_s1 + $0x740] sm:$0xff] }
  0x61   :  { %1376 = vmatpush3.bf16.msra.mxu0 %v1375_v1  ;;  %v1427_v1 = vpack.c.bf16 %v219_v45, %v218_v57 }
  0x62   :  { %1410 = vmatprep.subr.bf16.mxu0 %v1409_v3  ;;  %v1429_v3 = vpack.c.bf16 %v237_v62, %v236_v61 }
  0x63   :  { %1408 = vmatpush3.bf16.msra.mxu1 %v1407_v2  ;;  %v1459_v2 = vpack.c.bf16 %v251_v60, %v250_v58 }
  0x64   :  { %1442 = vmatprep.subr.bf16.mxu1 %v1441_v7  ;;  %714 = vmatmul.mubr.f32.vlgmr.msra.gmra.mrb[4].mxu0 %v1954_v42  ;;  %v214_v42 = vld [vmem:[%s2327_s1 + $0x620] sm:$0xff]  ;;  %v1461_v7 = vpack.c.bf16 %v269_v0, %v268_v63 }
  0x65   :  { %1412 = vmatpush3.bf16.msra.mxu0 %v1411_v16  ;;  %853 = vmatprep.mubr.f32.mxu0 %v351_v25  ;;  %v1419_v40 = vpack.c.bf16 %v215_v32, %v214_v42  ;;  %v1431_v16 = vpack.c.bf16 %v221_v5, %v220_v4  ;;  %v272_v25 = vld [vmem:[%s2327_s1 + $0x7f0] sm:$0xff] }
  0x66   :  { %784 = vmatmul.mubr.f32.vlgmr.msra.gmra.mrb[4].mxu1 %v1975_v52  ;;  %1414 = vmatprep.subr.bf16.mxu0 %v1413_v18  ;;  %v247_v52 = vld [vmem:[%s2327_s1 + $0x728] sm:$0xff]  ;;  %v1433_v18 = vpack.c.bf16 %v239_v10, %v238_v9  ;;  %v1469_v42 = vpack.c.bf16 %v273_v26, %v272_v25  ;;  %v256_v32 = vld [vmem:[%s2327_s1 + $0x770] sm:$0xff] }
  0x67   :  { %1444 = vmatpush3.bf16.msra.mxu1 %v1443_v17  ;;  %923 = vmatprep.mubr.f32.mxu1 %v352_v28  ;;  %v1451_v41 = vpack.c.bf16 %v247_v52, %v246_v34  ;;  %v1463_v17 = vpack.c.bf16 %v253_v8, %v252_v6  ;;  %v1467_v28 = vpack.c.bf16 %v255_v22, %v254_v21  ;;  %v257_v34 = vld [vmem:[%s2327_s1 + $0x778] sm:$0xff] }
  0x68   :  { %1446 = vmatprep.subr.bf16.mxu1 %v1445_v13  ;;  %v1465_v13 = vpack.c.bf16 %v271_v14, %v270_v12  ;;  %v1471_v52 = vpack.c.bf16 %v257_v34, %v256_v32 }
  0x69   :  { %1416 = vmatpush3.bf16.msra.mxu0 %v1415_v29  ;;  %v1437_v29 = vpack.c.bf16 %v241_v24, %v240_v23 }
  0x6a   :  { %1418 = vmatprep.subr.bf16.mxu0 %v1417_v31  ;;  %v225_v31 = vld [vmem:[%s2327_s1 + $0x678] sm:$0xff] }
  0x6b   :  { %1448 = vmatpush3.bf16.msra.mxu1 %v1447_v30  ;;  %v224_v30 = vld [vmem:[%s2327_s1 + $0x670] sm:$0xff] }
  0x6c   :  { %1450 = vmatprep.subr.bf16.mxu1 %v1449_v35  ;;  %v1439_v35 = vpack.c.bf16 %v225_v31, %v224_v30 }
  0x6d   :  { %1420 = vmatpush3.bf16.msra.mxu0 %v1419_v40 }
  0x6e   :  { %1422 = vmatprep.subr.bf16.mxu0 %v1421_v43 }
  0x6f   :  { %1452 = vmatpush3.bf16.msra.mxu1 %v1451_v41 }
  0x70   :  { %1454 = vmatprep.subr.bf16.mxu1 %v1453_v48 }
  0x71   :  { %1424 = vmatpush3.bf16.msra.mxu0 %v1423_v54 }
  0x72   :  { %1426 = vmatprep.subr.bf16.mxu0 %v1425_v56 }
  0x73   :  { %1456 = vmatpush3.bf16.msra.mxu1 %v1455_v55 }
  0x74   :  { %1458 = vmatprep.subr.bf16.mxu1 %v1457_v59 }
  0x75   :  { %1428 = vmatpush3.bf16.msra.mxu0 %v1427_v1 }
  0x76   :  { %1430 = vmatprep.subr.bf16.mxu0 %v1429_v3 }
  0x77   :  { %1460 = vmatpush3.bf16.msra.mxu1 %v1459_v2 }
  0x78   :  { %1462 = vmatprep.subr.bf16.mxu1 %v1461_v7 }
  0x79   :  { %1432 = vmatpush3.bf16.msra.mxu0 %v1431_v16 }
  0x7a   :  { %1434 = vmatprep.subr.bf16.mxu0 %v1433_v18 }
  0x7b   :  { %1464 = vmatpush3.bf16.msra.mxu1 %v1463_v17 }
  0x7c   :  { %1466 = vmatprep.subr.bf16.mxu1 %v1465_v13 }
  0x7d   :  { %1436 = vmatpush3.bf16.msra.mxu0 %v1435_v27 }
  0x7e   :  { %1438 = vmatprep.subr.bf16.mxu0 %v1437_v29 }
  0x7f   :  { %1468 = vmatpush3.bf16.msra.mxu1 %v1467_v28 }
  0x80   :  { %1470 = vmatprep.subr.bf16.mxu1 %v1469_v42 }
  0x81   :  { %1440 = vmatpush3.bf16.msra.mxu0 %v1439_v35 }
  0x83   :  { %1472 = vmatpush3.bf16.msra.mxu1 %v1471_v52 }
  0x84   :  { %854 = vmatmul.mubr.f32.vlgmr.msra.gmra.mrb[6].mxu0 %v2146_v11 }
  0x86   :  { %924 = vmatmul.mubr.f32.vlgmr.msra.gmra.mrb[6].mxu1 %v2155_v15 }
  0xf7   :  { %v969_v36 = vpop.f32.mrb[0].mxu0 }
  0xf8   :  { %v970_v38 = vpop.f32.mrb[1].mxu0 }
  0xf9   :  { %v1004_v39 = vpop.f32.mrb[0].mxu1  ;;  %v971_v40 = vadd.f32 %v970_v38, %v969_v36 }
  0xfa   :  { %v1005_v41 = vpop.f32.mrb[1].mxu1 }
  0xfb   :  { %v1006_v43 = vadd.f32 %v1005_v41, %v1004_v39  ;;  %v436_v44 = vadd.f32 %v971_v40, %v936_v37 }
  0xfd   :  { %v506_v46 = vadd.f32 %v1006_v43, %v436_v44 }
 0x117   :  { %v1039_v47 = vpop.f32.mrb[2].mxu0 }
 0x118   :  { %v1040_v48 = vpop.f32.mrb[3].mxu0 }
 0x119   :  { %v1074_v49 = vpop.f32.mrb[2].mxu1  ;;  %v1041_v50 = vadd.f32 %v1040_v48, %v1039_v47 }
 0x11a   :  { %v1075_v51 = vpop.f32.mrb[3].mxu1 }
 0x11b   :  { %v1076_v11 = vadd.f32 %v1075_v51, %v1074_v49  ;;  %v576_v53 = vadd.f32 %v1041_v50, %v506_v46 }
 0x11d   :  { %v646_v15 = vadd.f32 %v1076_v11, %v576_v53 }
 0x137   :  { %v1109_v33 = vpop.f32.mrb[4].mxu0 }
 0x138   :  { %v1110_v54 = vpop.f32.mrb[5].mxu0 }
 0x139   :  { %v1144_v55 = vpop.f32.mrb[4].mxu1  ;;  %v1111_v56 = vadd.f32 %v1110_v54, %v1109_v33 }
 0x13a   :  { %v1145_v57 = vpop.f32.mrb[5].mxu1 }
 0x13b   :  { %v1146_v45 = vadd.f32 %v1145_v57, %v1144_v55  ;;  %v716_v58 = vadd.f32 %v1111_v56, %v646_v15 }
 0x13d   :  { %v786_v59 = vadd.f32 %v1146_v45, %v716_v58 }
 0x157   :  { %v1179_v60 = vpop.f32.mrb[6].mxu0 }
 0x158   :  { %v1180_v61 = vpop.f32.mrb[7].mxu0 }
 0x159   :  { %v1214_v62 = vpop.f32.mrb[6].mxu1  ;;  %v1181_v63 = vadd.f32 %v1180_v61, %v1179_v60 }
 0x15a   :  { %v1215_v0 = vpop.f32.mrb[7].mxu1 }
 0x15b   :  { %v1216_v1 = vadd.f32 %v1215_v0, %v1214_v62  ;;  %v856_v2 = vadd.f32 %v1181_v63, %v786_v59 }
 0x15d   :  { %v926_v3 = vadd.f32 %v1216_v1, %v856_v2 }
 0x15f   :  { %1478 = vtanh.f32 %v926_v3 }
 0x169   :  { %v1479_v4 = vpop.eup %1478 }
 0x16a   :  { %931 = vst.msk [vmem:[%s2330_s3] sm:$0x3] %vm930_vm0, %v1479_v4 }

// kernel: layer_vae_forward.23
= control target key start
LH: loop header
LB: loop body
LE: loop exit
PB: predicated region body
PF: predicated region fallthrough
CT: control target
= control target key end

     0   :  { %v194_v0 = vmov 0.0|0.0   ;;  %vm195_vm0 = vmmov 0   ;;  %v196_v4 = vmov 0.0   ;;  %vm108_vm1 = vcmask 123904   ;;  %s274_s1 = inlined_call_operand.vmem [shape: f32[128,16], index: 1, kind: input, shape index: {}]   ;;  %s275_s0 = inlined_call_operand.vmem [shape: f32[2,128], index: 0, kind: input, shape index: {}]   ;;  %s276_s2 = inlined_call_operand.vmem [shape: f32[1,16], index: 2, kind: input, shape index: {}]   ;;  %s277_s3 = inlined_call_operand.vmem [shape: f32[2,16], index: 3, kind: output, shape index: {}]  }
   0x1   :  { %167 = vmatprep.subr.bf16.mxu0 %v194_v0  ;;  %v15_v1 = vld [vmem:[%s274_s1] sm:$0xff]  ;;  %v16_v2 = vld [vmem:[%s274_s1 + $0x8] sm:$0xff]  ;;  %v17_v3 = vld [vmem:[%s274_s1 + $0x10] sm:$0xff]  ;;  %164 = vmatprep.mubr.msk.f32.mxu0 %vm195_vm0, %v196_v4 }
   0x2   :  { %v168_v5 = vpack.c.bf16 %v16_v2, %v15_v1  ;;  %v18_v6 = vld [vmem:[%s274_s1 + $0x18] sm:$0xff]  ;;  %v19_v8 = vld [vmem:[%s274_s1 + $0x20] sm:$0xff]  ;;  %v20_v9 = vld [vmem:[%s274_s1 + $0x28] sm:$0xff] }
   0x3   :  { %v171_v7 = vpack.c.bf16 %v18_v6, %v17_v3  ;;  %v174_v10 = vpack.c.bf16 %v20_v9, %v19_v8  ;;  %v21_v11 = vld [vmem:[%s274_s1 + $0x30] sm:$0xff]  ;;  %v22_v12 = vld [vmem:[%s274_s1 + $0x38] sm:$0xff]  ;;  %v23_v14 = vld [vmem:[%s274_s1 + $0x40] sm:$0xff] }
   0x4   :  { %169 = vmatpush3.bf16.msra.mxu0 %v168_v5  ;;  %v177_v13 = vpack.c.bf16 %v22_v12, %v21_v11  ;;  %v24_v15 = vld [vmem:[%s274_s1 + $0x48] sm:$0xff]  ;;  %v25_v17 = vld [vmem:[%s274_s1 + $0x50] sm:$0xff]  ;;  %v26_v18 = vld [vmem:[%s274_s1 + $0x58] sm:$0xff] }
   0x5   :  { %170 = vmatprep.subr.bf16.mxu0 %v194_v0  ;;  %v180_v16 = vpack.c.bf16 %v24_v15, %v23_v14  ;;  %v183_v19 = vpack.c.bf16 %v26_v18, %v25_v17  ;;  %v27_v20 = vld [vmem:[%s274_s1 + $0x60] sm:$0xff]  ;;  %v28_v21 = vld [vmem:[%s274_s1 + $0x68] sm:$0xff]  ;;  %v29_v23 = vld [vmem:[%s274_s1 + $0x70] sm:$0xff] }
   0x6   :  { %v186_v22 = vpack.c.bf16 %v28_v21, %v27_v20  ;;  %v30_v24 = vld [vmem:[%s274_s1 + $0x78] sm:$0xff]  ;;  %v14_v26 = vld [vmem:[%s275_s0] sm:$0x3] }
   0x7   :  { %v189_v25 = vpack.c.bf16 %v30_v24, %v29_v23  ;;  %v114_v27 = vld [vmem:[%s276_s2] ss:$0 sm:$0xff] }
   0x8   :  { %172 = vmatpush3.bf16.msra.mxu0 %v171_v7 }
   0x9   :  { %173 = vmatprep.subr.bf16.mxu0 %v194_v0 }
   0xc   :  { %175 = vmatpush3.bf16.msra.mxu0 %v174_v10 }
   0xd   :  { %176 = vmatprep.subr.bf16.mxu0 %v194_v0 }
  0x10   :  { %178 = vmatpush3.bf16.msra.mxu0 %v177_v13 }
  0x11   :  { %179 = vmatprep.subr.bf16.mxu0 %v194_v0 }
  0x14   :  { %181 = vmatpush3.bf16.msra.mxu0 %v180_v16 }
  0x15   :  { %182 = vmatprep.subr.bf16.mxu0 %v194_v0 }
  0x18   :  { %184 = vmatpush3.bf16.msra.mxu0 %v183_v19 }
  0x19   :  { %185 = vmatprep.subr.bf16.mxu0 %v194_v0 }
  0x1c   :  { %187 = vmatpush3.bf16.msra.mxu0 %v186_v22 }
  0x1d   :  { %188 = vmatprep.subr.bf16.mxu0 %v194_v0 }
  0x20   :  { %190 = vmatpush3.bf16.msra.mxu0 %v189_v25 }
  0x23   :  { %165 = vmatmul.mubr.f32.vlgmr.msra.gmra.mrb[0].mxu0 %v14_v26 }
  0xf6   :  { %v104_v28 = vpop.f32.mrb[0].mxu0 }
  0xf7   :  { %v105_v29 = vadd.f32 %v114_v27, %v104_v28  ;;  %v166_v30 = vpop.f32.mrb[1].mxu0 }
  0xf9   :  { %109 = vst.msk [vmem:[%s277_s3] sm:$0x3] %vm108_vm1, %v105_v29 }

// kernel: layer_vae_forward.24
= control target key start
LH: loop header
LB: loop body
LE: loop exit
PB: predicated region body
PF: predicated region fallthrough
CT: control target
= control target key end

     0   :  { %vm23_vm0 = vcmask 64512   ;;  %v117_v0 = vmov 0.0   ;;  %vm118_vm1 = vmmov 0   ;;  %vm100_vm3 = vcmask 517120   ;;  %s151_s1 = inlined_call_operand.vmem [shape: f32[8,64], index: 1, kind: input, shape index: {}]   ;;  %s152_s0 = inlined_call_operand.vmem [shape: f32[2,8], index: 0, kind: input, shape index: {}]   ;;  %s153_s2 = inlined_call_operand.vmem [shape: f32[1,64], index: 2, kind: input, shape index: {}]   ;;  %s154_s3 = inlined_call_operand.vmem [shape: f32[2,64], index: 3, kind: output, shape index: {}]  }
   0x1   :  { %110 = vmatprep.subr.mxu0 %v117_v0  ;;  %v15_v1 = vld [vmem:[%s151_s1] sm:$0xff]  ;;  %112 = vmatprep.mubr.msk.f32.mxu0 %vm118_vm1, %v117_v0 }
   0x2   :  { %v14_v2 = vld [vmem:[%s152_s0] sm:$0x3]  ;;  %111 = vmatpush3.msra.mxu0 %v15_v1 }
   0x3   :  { %113 = vmatmul.mubr.msk.f32.vlgmr.msra.gmra.mrb[0].mxu0 %vm23_vm0, %v14_v2  ;;  %v106_v3 = vld [vmem:[%s153_s2] ss:$0 sm:$0xff] }
  0xd6   :  { %v93_v4 = vpop.f32.mrb[0].mxu0 }
  0xd7   :  { %v94_v5 = vadd.f32 %v106_v3, %v93_v4  ;;  %v114_v6 = vpop.f32.mrb[1].mxu0 }
  0xd9   :  { %vm97_vm2 = vcmp.ge.f32.partialorder %v94_v5, 0.0  ;;  %v98_v7 = vmul.f32 0.01, %v94_v5 }
  0xdb   :  { %v99_v8 = vsel %vm97_vm2, %v94_v5, %v98_v7 }
  0xdc   :  { %101 = vst.msk [vmem:[%s154_s3] sm:$0x3] %vm100_vm3, %v99_v8 }

// kernel: layer_vae_forward.25
= control target key start
LH: loop header
LB: loop body
LE: loop exit
PB: predicated region body
PF: predicated region fallthrough
CT: control target
= control target key end

     0   :  { %v1081_v3 = vmov 0.0   ;;  %vm227_vm0 = vcmask 523264   ;;  %s1555_s1 = inlined_call_operand.vmem [shape: f32[64,2048], index: 1, kind: input, shape index: {}]   ;;  %s1556_s0 = inlined_call_operand.vmem [shape: f32[2,64], index: 0, kind: input, shape index: {}]   ;;  %s1557_s2 = inlined_call_operand.vmem [shape: f32[1,2048], index: 2, kind: input, shape index: {}]   ;;  %s1558_s3 = inlined_call_operand.vmem [shape: f32[2,2048], index: 3, kind: output, shape index: {}]  }
   0x1   :  { %v16_v0 = vld [vmem:[%s1555_s1 + $0x8] sm:$0xff]  ;;  %v18_v2 = vld [vmem:[%s1555_s1 + $0x18] sm:$0xff]  ;;  %295 = vmatprep.mubr.f32.mxu0 %v1081_v3  ;;  %366 = vmatprep.mubr.f32.mxu1 %v1081_v3  ;;  %v15_v6 = vld [vmem:[%s1555_s1] sm:$0xff] }
   0x2   :  { %v32_v1 = vld [vmem:[%s1555_s1 + $0x88] sm:$0xff]  ;;  %v34_v5 = vld [vmem:[%s1555_s1 + $0x98] sm:$0xff]  ;;  %v31_v7 = vld [vmem:[%s1555_s1 + $0x80] sm:$0xff] }
   0x3   :  { %v919_v4 = vpack.c.bf16 %v32_v1, %v16_v0  ;;  %v935_v8 = vpack.c.bf16 %v34_v5, %v18_v2  ;;  %v921_v9 = vpack.c.bf16 %v31_v7, %v15_v6  ;;  %v17_v10 = vld [vmem:[%s1555_s1 + $0x10] sm:$0xff]  ;;  %v48_v12 = vld [vmem:[%s1555_s1 + $0x108] sm:$0xff]  ;;  %v50_v15 = vld [vmem:[%s1555_s1 + $0x118] sm:$0xff] }
   0x4   :  { %v33_v11 = vld [vmem:[%s1555_s1 + $0x90] sm:$0xff]  ;;  %v64_v14 = vld [vmem:[%s1555_s1 + $0x188] sm:$0xff]  ;;  %v66_v16 = vld [vmem:[%s1555_s1 + $0x198] sm:$0xff] }
   0x5   :  { %920 = vmatprep.subr.bf16.mxu0 %v919_v4  ;;  %v937_v13 = vpack.c.bf16 %v33_v11, %v17_v10  ;;  %936 = vmatprep.subr.bf16.mxu1 %v935_v8  ;;  %v923_v17 = vpack.c.bf16 %v64_v14, %v48_v12  ;;  %v939_v18 = vpack.c.bf16 %v66_v16, %v50_v15  ;;  %v47_v19 = vld [vmem:[%s1555_s1 + $0x100] sm:$0xff]  ;;  %v49_v21 = vld [vmem:[%s1555_s1 + $0x110] sm:$0xff]  ;;  %v80_v24 = vld [vmem:[%s1555_s1 + $0x208] sm:$0xff] }
   0x6   :  { %922 = vmatpush1.bf16.msra.mxu0 %v921_v9  ;;  %v63_v20 = vld [vmem:[%s1555_s1 + $0x180] sm:$0xff]  ;;  %v65_v23 = vld [vmem:[%s1555_s1 + $0x190] sm:$0xff]  ;;  %v96_v25 = vld [vmem:[%s1555_s1 + $0x288] sm:$0xff] }
   0x7   :  { %938 = vmatpush1.bf16.msra.mxu1 %v937_v13  ;;  %v925_v22 = vpack.c.bf16 %v63_v20, %v47_v19  ;;  %924 = vmatprep.subr.bf16.mxu0 %v923_v17  ;;  %v941_v26 = vpack.c.bf16 %v65_v23, %v49_v21  ;;  %v927_v27 = vpack.c.bf16 %v96_v25, %v80_v24  ;;  %v82_v28 = vld [vmem:[%s1555_s1 + $0x218] sm:$0xff]  ;;  %v79_v30 = vld [vmem:[%s1555_s1 + $0x200] sm:$0xff]  ;;  %v81_v33 = vld [vmem:[%s1555_s1 + $0x210] sm:$0xff] }
   0x8   :  { %940 = vmatprep.subr.bf16.mxu1 %v939_v18  ;;  %v98_v29 = vld [vmem:[%s1555_s1 + $0x298] sm:$0xff]  ;;  %v95_v32 = vld [vmem:[%s1555_s1 + $0x280] sm:$0xff]  ;;  %v97_v34 = vld [vmem:[%s1555_s1 + $0x290] sm:$0xff] }
   0x9   :  { %v943_v31 = vpack.c.bf16 %v98_v29, %v82_v28  ;;  %v929_v35 = vpack.c.bf16 %v95_v32, %v79_v30  ;;  %v112_v36 = vld [vmem:[%s1555_s1 + $0x308] sm:$0xff]  ;;  %v114_v38 = vld [vmem:[%s1555_s1 + $0x318] sm:$0xff]  ;;  %v945_v39 = vpack.c.bf16 %v97_v34, %v81_v33  ;;  %v111_v42 = vld [vmem:[%s1555_s1 + $0x300] sm:$0xff] }
   0xa   :  { %926 = vmatpush1.bf16.msra.mxu0 %v925_v22  ;;  %v128_v37 = vld [vmem:[%s1555_s1 + $0x388] sm:$0xff]  ;;  %v130_v41 = vld [vmem:[%s1555_s1 + $0x398] sm:$0xff]  ;;  %v127_v43 = vld [vmem:[%s1555_s1 + $0x380] sm:$0xff] }
   0xb   :  { %942 = vmatpush1.bf16.msra.mxu1 %v941_v26  ;;  %928 = vmatprep.subr.bf16.mxu0 %v927_v27  ;;  %v931_v40 = vpack.c.bf16 %v128_v37, %v112_v36  ;;  %v947_v44 = vpack.c.bf16 %v130_v41, %v114_v38  ;;  %v113_v45 = vld [vmem:[%s1555_s1 + $0x310] sm:$0xff]  ;;  %v20_v47 = vld [vmem:[%s1555_s1 + $0x28] sm:$0xff]  ;;  %v22_v49 = vld [vmem:[%s1555_s1 + $0x38] sm:$0xff]  ;;  %v933_v50 = vpack.c.bf16 %v127_v43, %v111_v42 }
   0xc   :  { %944 = vmatprep.subr.bf16.mxu1 %v943_v31  ;;  %v129_v46 = vld [vmem:[%s1555_s1 + $0x390] sm:$0xff]  ;;  %v36_v48 = vld [vmem:[%s1555_s1 + $0xa8] sm:$0xff]  ;;  %v38_v51 = vld [vmem:[%s1555_s1 + $0xb8] sm:$0xff] }
   0xd   :  { %v949_v52 = vpack.c.bf16 %v129_v46, %v113_v45  ;;  %v951_v53 = vpack.c.bf16 %v36_v48, %v20_v47  ;;  %v19_v54 = vld [vmem:[%s1555_s1 + $0x20] sm:$0xff]  ;;  %v21_v56 = vld [vmem:[%s1555_s1 + $0x30] sm:$0xff]  ;;  %v967_v57 = vpack.c.bf16 %v38_v51, %v22_v49  ;;  %v52_v59 = vld [vmem:[%s1555_s1 + $0x128] sm:$0xff] }
   0xe   :  { %930 = vmatpush1.bf16.msra.mxu0 %v929_v35  ;;  %v35_v55 = vld [vmem:[%s1555_s1 + $0xa0] sm:$0xff]  ;;  %v37_v58 = vld [vmem:[%s1555_s1 + $0xb0] sm:$0xff]  ;;  %v68_v60 = vld [vmem:[%s1555_s1 + $0x1a8] sm:$0xff] }
   0xf   :  { %946 = vmatpush1.bf16.msra.mxu1 %v945_v39  ;;  %932 = vmatprep.subr.bf16.mxu0 %v931_v40  ;;  %v54_v61 = vld [vmem:[%s1555_s1 + $0x138] sm:$0xff]  ;;  %v1240_v63 = vld [vmem:[%s1556_s0] sm:$0x3]  ;;  %v953_v0 = vpack.c.bf16 %v35_v55, %v19_v54  ;;  %v969_v1 = vpack.c.bf16 %v37_v58, %v21_v56  ;;  %v955_v2 = vpack.c.bf16 %v68_v60, %v52_v59  ;;  %v53_v6 = vld [vmem:[%s1555_s1 + $0x130] sm:$0xff] }
  0x10   :  { %948 = vmatprep.subr.bf16.mxu1 %v947_v44  ;;  %v70_v62 = vld [vmem:[%s1555_s1 + $0x1b8] sm:$0xff]  ;;  %v51_v4 = vld [vmem:[%s1555_s1 + $0x120] sm:$0xff]  ;;  %v69_v8 = vld [vmem:[%s1555_s1 + $0x1b0] sm:$0xff] }
  0x11   :  { %v67_v5 = vld [vmem:[%s1555_s1 + $0x1a0] sm:$0xff]  ;;  %v971_v7 = vpack.c.bf16 %v70_v62, %v54_v61  ;;  %v84_v9 = vld [vmem:[%s1555_s1 + $0x228] sm:$0xff]  ;;  %v86_v11 = vld [vmem:[%s1555_s1 + $0x238] sm:$0xff]  ;;  %v973_v14 = vpack.c.bf16 %v69_v8, %v53_v6 }
  0x12   :  { %934 = vmatpush1.bf16.msra.mxu0 %v933_v50  ;;  %v100_v10 = vld [vmem:[%s1555_s1 + $0x2a8] sm:$0xff]  ;;  %v102_v12 = vld [vmem:[%s1555_s1 + $0x2b8] sm:$0xff]  ;;  %v957_v13 = vpack.c.bf16 %v67_v5, %v51_v4  ;;  %v83_v16 = vld [vmem:[%s1555_s1 + $0x220] sm:$0xff] }
  0x13   :  { %950 = vmatpush1.bf16.msra.mxu1 %v949_v52  ;;  %952 = vmatprep.subr.bf16.mxu0 %v951_v53  ;;  %v959_v15 = vpack.c.bf16 %v100_v10, %v84_v9  ;;  %v99_v17 = vld [vmem:[%s1555_s1 + $0x2a0] sm:$0xff]  ;;  %v85_v18 = vld [vmem:[%s1555_s1 + $0x230] sm:$0xff]  ;;  %v975_v19 = vpack.c.bf16 %v102_v12, %v86_v11  ;;  %v116_v21 = vld [vmem:[%s1555_s1 + $0x328] sm:$0xff] }
  0x14   :  { %968 = vmatprep.subr.bf16.mxu1 %v967_v57  ;;  %v101_v20 = vld [vmem:[%s1555_s1 + $0x2b0] sm:$0xff]  ;;  %v132_v22 = vld [vmem:[%s1555_s1 + $0x3a8] sm:$0xff]  ;;  %v118_v23 = vld [vmem:[%s1555_s1 + $0x338] sm:$0xff]  ;;  %v961_v25 = vpack.c.bf16 %v99_v17, %v83_v16 }
  0x15   :  { %911 = vmatmul.mubr.msk.f32.vlgmr.msra.gmra.mrb[0].mxu0 %vm227_vm0, %v1240_v63  ;;  %v134_v24 = vld [vmem:[%s1555_s1 + $0x3b8] sm:$0xff]  ;;  %v977_v26 = vpack.c.bf16 %v101_v20, %v85_v18  ;;  %v963_v27 = vpack.c.bf16 %v132_v22, %v116_v21  ;;  %v115_v28 = vld [vmem:[%s1555_s1 + $0x320] sm:$0xff]  ;;  %v117_v30 = vld [vmem:[%s1555_s1 + $0x330] sm:$0xff] }
  0x16   :  { %912 = vmatmul.mubr.msk.f32.vlgmr.msra.gmra.mrb[0].mxu1 %vm227_vm0, %v1240_v63  ;;  %954 = vmatpush1.bf16.msra.mxu0 %v953_v0  ;;  %v131_v29 = vld [vmem:[%s1555_s1 + $0x3a0] sm:$0xff]  ;;  %v979_v31 = vpack.c.bf16 %v134_v24, %v118_v23  ;;  %v133_v32 = vld [vmem:[%s1555_s1 + $0x3b0] sm:$0xff]  ;;  %v24_v33 = vld [vmem:[%s1555_s1 + $0x48] sm:$0xff] }
  0x17   :  { %970 = vmatpush1.bf16.msra.mxu1 %v969_v1  ;;  %956 = vmatprep.subr.bf16.mxu0 %v955_v2  ;;  %v40_v34 = vld [vmem:[%s1555_s1 + $0xc8] sm:$0xff]  ;;  %v26_v35 = vld [vmem:[%s1555_s1 + $0x58] sm:$0xff]  ;;  %v965_v37 = vpack.c.bf16 %v131_v29, %v115_v28  ;;  %v981_v38 = vpack.c.bf16 %v133_v32, %v117_v30  ;;  %v23_v40 = vld [vmem:[%s1555_s1 + $0x40] sm:$0xff] }
  0x18   :  { %972 = vmatprep.subr.bf16.mxu1 %v971_v7  ;;  %437 = vmatprep.mubr.f32.mxu0 %v1081_v3  ;;  %v42_v36 = vld [vmem:[%s1555_s1 + $0xd8] sm:$0xff]  ;;  %v983_v39 = vpack.c.bf16 %v40_v34, %v24_v33  ;;  %v39_v41 = vld [vmem:[%s1555_s1 + $0xc0] sm:$0xff]  ;;  %v25_v42 = vld [vmem:[%s1555_s1 + $0x50] sm:$0xff] }
  0x19   :  { %508 = vmatprep.mubr.f32.mxu1 %v1081_v3  ;;  %v999_v43 = vpack.c.bf16 %v42_v36, %v26_v35  ;;  %v41_v44 = vld [vmem:[%s1555_s1 + $0xd0] sm:$0xff]  ;;  %v56_v45 = vld [vmem:[%s1555_s1 + $0x148] sm:$0xff]  ;;  %v58_v47 = vld [vmem:[%s1555_s1 + $0x158] sm:$0xff]  ;;  %v985_v49 = vpack.c.bf16 %v39_v41, %v23_v40 }
  0x1a   :  { %958 = vmatpush1.bf16.msra.mxu0 %v957_v13  ;;  %v72_v46 = vld [vmem:[%s1555_s1 + $0x1c8] sm:$0xff]  ;;  %v74_v48 = vld [vmem:[%s1555_s1 + $0x1d8] sm:$0xff]  ;;  %v1001_v50 = vpack.c.bf16 %v41_v44, %v25_v42  ;;  %v55_v52 = vld [vmem:[%s1555_s1 + $0x140] sm:$0xff] }
  0x1b   :  { %974 = vmatpush1.bf16.msra.mxu1 %v973_v14  ;;  %960 = vmatprep.subr.bf16.mxu0 %v959_v15  ;;  %v987_v51 = vpack.c.bf16 %v72_v46, %v56_v45  ;;  %v71_v53 = vld [vmem:[%s1555_s1 + $0x1c0] sm:$0xff]  ;;  %v57_v54 = vld [vmem:[%s1555_s1 + $0x150] sm:$0xff]  ;;  %v1003_v55 = vpack.c.bf16 %v74_v48, %v58_v47  ;;  %v88_v57 = vld [vmem:[%s1555_s1 + $0x248] sm:$0xff] }
  0x1c   :  { %976 = vmatprep.subr.bf16.mxu1 %v975_v19  ;;  %v73_v56 = vld [vmem:[%s1555_s1 + $0x1d0] sm:$0xff]  ;;  %v104_v58 = vld [vmem:[%s1555_s1 + $0x2c8] sm:$0xff]  ;;  %v90_v59 = vld [vmem:[%s1555_s1 + $0x258] sm:$0xff]  ;;  %v989_v61 = vpack.c.bf16 %v71_v53, %v55_v52 }
  0x1d   :  { %v106_v60 = vld [vmem:[%s1555_s1 + $0x2d8] sm:$0xff]  ;;  %v1005_v62 = vpack.c.bf16 %v73_v56, %v57_v54  ;;  %v991_v0 = vpack.c.bf16 %v104_v58, %v88_v57  ;;  %v87_v1 = vld [vmem:[%s1555_s1 + $0x240] sm:$0xff]  ;;  %v89_v4 = vld [vmem:[%s1555_s1 + $0x250] sm:$0xff] }
  0x1e   :  { %962 = vmatpush1.bf16.msra.mxu0 %v961_v25  ;;  %v103_v2 = vld [vmem:[%s1555_s1 + $0x2c0] sm:$0xff]  ;;  %v1007_v5 = vpack.c.bf16 %v106_v60, %v90_v59  ;;  %v105_v6 = vld [vmem:[%s1555_s1 + $0x2d0] sm:$0xff]  ;;  %v120_v7 = vld [vmem:[%s1555_s1 + $0x348] sm:$0xff] }
  0x1f   :  { %978 = vmatpush1.bf16.msra.mxu1 %v977_v26  ;;  %964 = vmatprep.subr.bf16.mxu0 %v963_v27  ;;  %v136_v8 = vld [vmem:[%s1555_s1 + $0x3c8] sm:$0xff]  ;;  %v122_v9 = vld [vmem:[%s1555_s1 + $0x358] sm:$0xff]  ;;  %v993_v11 = vpack.c.bf16 %v103_v2, %v87_v1  ;;  %v1009_v12 = vpack.c.bf16 %v105_v6, %v89_v4  ;;  %v119_v14 = vld [vmem:[%s1555_s1 + $0x340] sm:$0xff]  ;;  %v147_v6 = vlaneseq }
  0x20   :  { %980 = vmatprep.subr.bf16.mxu1 %v979_v31  ;;  %v138_v10 = vld [vmem:[%s1555_s1 + $0x3d8] sm:$0xff]  ;;  %v995_v13 = vpack.c.bf16 %v136_v8, %v120_v7  ;;  %v135_v15 = vld [vmem:[%s1555_s1 + $0x3c0] sm:$0xff]  ;;  %v121_v16 = vld [vmem:[%s1555_s1 + $0x350] sm:$0xff] }
  0x21   :  { %v1011_v17 = vpack.c.bf16 %v138_v10, %v122_v9  ;;  %v137_v18 = vld [vmem:[%s1555_s1 + $0x3d0] sm:$0xff]  ;;  %v28_v19 = vld [vmem:[%s1555_s1 + $0x68] sm:$0xff]  ;;  %v30_v21 = vld [vmem:[%s1555_s1 + $0x78] sm:$0xff]  ;;  %v997_v23 = vpack.c.bf16 %v135_v15, %v119_v14  ;;  %v1516_v7 = vshrl.u32 %v147_v6, 7 }
  0x22   :  { %966 = vmatpush1.bf16.msra.mxu0 %v965_v37  ;;  %v44_v20 = vld [vmem:[%s1555_s1 + $0xe8] sm:$0xff]  ;;  %v46_v22 = vld [vmem:[%s1555_s1 + $0xf8] sm:$0xff]  ;;  %v1013_v24 = vpack.c.bf16 %v137_v18, %v121_v16  ;;  %v27_v26 = vld [vmem:[%s1555_s1 + $0x60] sm:$0xff] }
  0x23   :  { %982 = vmatpush1.bf16.msra.mxu1 %v981_v38  ;;  %984 = vmatprep.subr.bf16.mxu0 %v983_v39  ;;  %v1015_v25 = vpack.c.bf16 %v44_v20, %v28_v19  ;;  %v43_v27 = vld [vmem:[%s1555_s1 + $0xe0] sm:$0xff]  ;;  %v29_v28 = vld [vmem:[%s1555_s1 + $0x70] sm:$0xff]  ;;  %v1031_v29 = vpack.c.bf16 %v46_v22, %v30_v21  ;;  %v60_v31 = vld [vmem:[%s1555_s1 + $0x168] sm:$0xff]  ;;  %v149_v8 = vsub.s32 0, %v1516_v7  ;;  %v157_v10 = vsub.s32 2, %v1516_v7 }
  0x24   :  { %1000 = vmatprep.subr.bf16.mxu1 %v999_v43  ;;  %v45_v30 = vld [vmem:[%s1555_s1 + $0xf0] sm:$0xff]  ;;  %v76_v32 = vld [vmem:[%s1555_s1 + $0x1e8] sm:$0xff]  ;;  %v62_v33 = vld [vmem:[%s1555_s1 + $0x178] sm:$0xff]  ;;  %v1017_v35 = vpack.c.bf16 %v43_v27, %v27_v26  ;;  %v165_v26 = vsub.s32 4, %v1516_v7 }
  0x25   :  { %913 = vmatmul.mubr.msk.f32.vlgmr.msra.gmra.mrb[2].mxu0 %vm227_vm0, %v1240_v63  ;;  %v78_v34 = vld [vmem:[%s1555_s1 + $0x1f8] sm:$0xff]  ;;  %v1033_v36 = vpack.c.bf16 %v45_v30, %v29_v28  ;;  %v1019_v37 = vpack.c.bf16 %v76_v32, %v60_v31  ;;  %v59_v38 = vld [vmem:[%s1555_s1 + $0x160] sm:$0xff]  ;;  %v61_v40 = vld [vmem:[%s1555_s1 + $0x170] sm:$0xff]  ;;  %v173_v28 = vsub.s32 6, %v1516_v7  ;;  %v177_v30 = vsub.s32 7, %v1516_v7 }
  0x26   :  { %914 = vmatmul.mubr.msk.f32.vlgmr.msra.gmra.mrb[2].mxu1 %vm227_vm0, %v1240_v63  ;;  %986 = vmatpush1.bf16.msra.mxu0 %v985_v49  ;;  %v75_v39 = vld [vmem:[%s1555_s1 + $0x1e0] sm:$0xff]  ;;  %v1035_v41 = vpack.c.bf16 %v78_v34, %v62_v33  ;;  %v77_v42 = vld [vmem:[%s1555_s1 + $0x1f0] sm:$0xff]  ;;  %v92_v43 = vld [vmem:[%s1555_s1 + $0x268] sm:$0xff] }
  0x27   :  { %1002 = vmatpush1.bf16.msra.mxu1 %v1001_v50  ;;  %988 = vmatprep.subr.bf16.mxu0 %v987_v51  ;;  %v108_v44 = vld [vmem:[%s1555_s1 + $0x2e8] sm:$0xff]  ;;  %v94_v45 = vld [vmem:[%s1555_s1 + $0x278] sm:$0xff]  ;;  %v1021_v47 = vpack.c.bf16 %v75_v39, %v59_v38  ;;  %v1037_v48 = vpack.c.bf16 %v77_v42, %v61_v40  ;;  %v91_v50 = vld [vmem:[%s1555_s1 + $0x260] sm:$0xff] }
  0x28   :  { %1004 = vmatprep.subr.bf16.mxu1 %v1003_v55  ;;  %579 = vmatprep.mubr.f32.mxu0 %v1081_v3  ;;  %v110_v46 = vld [vmem:[%s1555_s1 + $0x2f8] sm:$0xff]  ;;  %v1023_v49 = vpack.c.bf16 %v108_v44, %v92_v43  ;;  %v107_v51 = vld [vmem:[%s1555_s1 + $0x2e0] sm:$0xff]  ;;  %v93_v52 = vld [vmem:[%s1555_s1 + $0x270] sm:$0xff] }
  0x29   :  { %650 = vmatprep.mubr.f32.mxu1 %v1081_v3  ;;  %v1039_v53 = vpack.c.bf16 %v110_v46, %v94_v45  ;;  %v109_v54 = vld [vmem:[%s1555_s1 + $0x2f0] sm:$0xff]  ;;  %v124_v55 = vld [vmem:[%s1555_s1 + $0x368] sm:$0xff]  ;;  %v126_v57 = vld [vmem:[%s1555_s1 + $0x378] sm:$0xff]  ;;  %v1025_v59 = vpack.c.bf16 %v107_v51, %v91_v50 }
  0x2a   :  { %990 = vmatpush1.bf16.msra.mxu0 %v989_v61  ;;  %v140_v56 = vld [vmem:[%s1555_s1 + $0x3e8] sm:$0xff]  ;;  %v142_v58 = vld [vmem:[%s1555_s1 + $0x3f8] sm:$0xff]  ;;  %v1041_v60 = vpack.c.bf16 %v109_v54, %v93_v52  ;;  %v141_v2 = vld [vmem:[%s1555_s1 + $0x3f0] sm:$0xff] }
  0x2b   :  { %1006 = vmatpush1.bf16.msra.mxu1 %v1005_v62  ;;  %992 = vmatprep.subr.bf16.mxu0 %v991_v0  ;;  %v1027_v61 = vpack.c.bf16 %v140_v56, %v124_v55  ;;  %v123_v62 = vld [vmem:[%s1555_s1 + $0x360] sm:$0xff]  ;;  %v1043_v1 = vpack.c.bf16 %v142_v58, %v126_v57 }
  0x2c   :  { %1008 = vmatprep.subr.bf16.mxu1 %v1007_v5  ;;  %v139_v0 = vld [vmem:[%s1555_s1 + $0x3e0] sm:$0xff] }
  0x2d   :  { %v1029_v4 = vpack.c.bf16 %v139_v0, %v123_v62  ;;  %v143_v9 = vld [vmem:[%s1557_s2] sm:$0xff] }
  0x2e   :  { %994 = vmatpush1.bf16.msra.mxu0 %v993_v11  ;;  %v153_v11 = vsub.s32 1, %v1516_v7  ;;  %v158_v14 = vrot.slane %v143_v9, %v157_v10  ;;  %v166_v32 = vrot.slane %v143_v9, %v165_v26  ;;  %v178_v38 = vrot.slane %v143_v9, %v177_v30 }
  0x2f   :  { %1010 = vmatpush1.bf16.msra.mxu1 %v1009_v12  ;;  %996 = vmatprep.subr.bf16.mxu0 %v995_v13  ;;  %v161_v12 = vsub.s32 3, %v1516_v7  ;;  %v150_v13 = vrot.slane %v143_v9, %v149_v8 }
  0x30   :  { %1012 = vmatprep.subr.bf16.mxu1 %v1011_v17  ;;  %v154_v15 = vrot.slane %v143_v9, %v153_v11 }
  0x31   :  { %v162_v16 = vrot.slane %v143_v9, %v161_v12 }
  0x32   :  { %998 = vmatpush1.bf16.msra.mxu0 %v997_v23 }
  0x33   :  { %1014 = vmatpush1.bf16.msra.mxu1 %v1013_v24  ;;  %1016 = vmatprep.subr.bf16.mxu0 %v1015_v25  ;;  %v1082_v24 = vmov 1983009808  }
  0x34   :  { %1032 = vmatprep.subr.bf16.mxu1 %v1031_v29  ;;  %v834_v25 = vunpack.c.l.s4 %v1082_v24  ;;  %v169_v29 = vsub.s32 5, %v1516_v7 }
  0x35   :  { %915 = vmatmul.mubr.msk.f32.vlgmr.msra.gmra.mrb[4].mxu0 %vm227_vm0, %v1240_v63 }
  0x36   :  { %916 = vmatmul.mubr.msk.f32.vlgmr.msra.gmra.mrb[4].mxu1 %vm227_vm0, %v1240_v63  ;;  %1018 = vmatpush1.bf16.msra.mxu0 %v1017_v35  ;;  %v835_v27 = vunpack.c.0.s8 %v834_v25  ;;  %v174_v35 = vrot.slane %v143_v9, %v173_v28 }
  0x37   :  { %1034 = vmatpush1.bf16.msra.mxu1 %v1033_v36  ;;  %1020 = vmatprep.subr.bf16.mxu0 %v1019_v37  ;;  %v170_v36 = vrot.slane %v143_v9, %v169_v29 }
  0x38   :  { %1036 = vmatprep.subr.bf16.mxu1 %v1035_v41  ;;  %721 = vmatprep.mubr.f32.mxu0 %v1081_v3  ;;  %v1530_v34 = vsub.s32 %v835_v27, %v1516_v7 }
  0x39   :  { %792 = vmatprep.mubr.f32.mxu1 %v1081_v3  ;;  %v125_v3 = vld [vmem:[%s1555_s1 + $0x370] sm:$0xff] }
  0x3a   :  { %1022 = vmatpush1.bf16.msra.mxu0 %v1021_v47  ;;  %v1045_v5 = vpack.c.bf16 %v141_v2, %v125_v3 }
  0x3b   :  { %1038 = vmatpush1.bf16.msra.mxu1 %v1037_v48  ;;  %1024 = vmatprep.subr.bf16.mxu0 %v1023_v49 }
  0x3c   :  { %1040 = vmatprep.subr.bf16.mxu1 %v1039_v53  ;;  %v144_v53 = vld [vmem:[%s1557_s2 + $0x8] sm:$0xff] }
  0x3d   :  { %v182_v55 = vrot.slane %v144_v53, %v149_v8  ;;  %v190_v57 = vrot.slane %v144_v53, %v157_v10  ;;  %v186_v58 = vrot.slane %v144_v53, %v153_v11 }
  0x3e   :  { %1026 = vmatpush1.bf16.msra.mxu0 %v1025_v59 }
  0x3f   :  { %1042 = vmatpush1.bf16.msra.mxu1 %v1041_v60  ;;  %1028 = vmatprep.subr.bf16.mxu0 %v1027_v61  ;;  %v194_v60 = vrot.slane %v144_v53, %v161_v12  ;;  %v198_v12 = vrot.slane %v144_v53, %v165_v26 }
  0x40   :  { %1044 = vmatprep.subr.bf16.mxu1 %v1043_v1 }
  0x42   :  { %1030 = vmatpush1.bf16.msra.mxu0 %v1029_v4 }
  0x43   :  { %1046 = vmatpush1.bf16.msra.mxu1 %v1045_v5 }
  0x45   :  { %917 = vmatmul.mubr.msk.f32.vlgmr.msra.gmra.mrb[6].mxu0 %vm227_vm0, %v1240_v63 }
  0x46   :  { %918 = vmatmul.mubr.msk.f32.vlgmr.msra.gmra.mrb[6].mxu1 %vm227_vm0, %v1240_v63 }
  0xe8   :  { %v297_v63 = vpop.f32.mrb[0].mxu0 }
  0xe9   :  { %v298_v17 = vadd.f32 %v297_v63, %v150_v13  ;;  %v368_v18 = vpop.f32.mrb[0].mxu1  ;;  %v299_v19 = vpop.f32.mrb[1].mxu0 }
  0xea   :  { %v369_v20 = vadd.f32 %v368_v18, %v158_v14  ;;  %v300_v21 = vadd.f32 %v299_v19, %v154_v15  ;;  %v370_v22 = vpop.f32.mrb[1].mxu1  ;;  %v206_v15 = vrot.slane %v144_v53, %v173_v28 }
  0xeb   :  { %1049 = vtanh.f32 %v298_v17  ;;  %v371_v23 = vadd.f32 %v370_v22, %v162_v16  ;;  %v202_v16 = vrot.slane %v144_v53, %v169_v29  ;;  %v210_v17 = vrot.slane %v144_v53, %v177_v30 }
  0xec   :  { %1051 = vtanh.f32 %v369_v20 }
  0xed   :  { %1053 = vtanh.f32 %v300_v21 }
  0xee   :  { %1055 = vtanh.f32 %v371_v23 }
  0xf5   :  { %v1050_v31 = vpop.eup %1049 }
  0xf6   :  { %v1052_v33 = vpop.eup %1051 }
  0xf7   :  { %v1054_v37 = vpop.eup %1053 }
  0xf8   :  { %v1056_v39 = vpop.eup %1055  ;;  %v831_v40 = vcombine.low %v1050_v31, %v1054_v37  ;;  %v439_v41 = vpop.f32.mrb[2].mxu0 }
  0xf9   :  { %v832_v42 = vcombine.low %v1052_v33, %v1056_v39  ;;  %v440_v43 = vadd.f32 %v439_v41, %v166_v32  ;;  %v510_v44 = vpop.f32.mrb[2].mxu1  ;;  %v441_v45 = vpop.f32.mrb[3].mxu0 }
  0xfa   :  { %v839_v46 = vrot.slane %v831_v40, %v1530_v34  ;;  %v511_v47 = vadd.f32 %v510_v44, %v174_v35  ;;  %v442_v48 = vadd.f32 %v441_v45, %v170_v36  ;;  %v512_v49 = vpop.f32.mrb[3].mxu1 }
  0xfb   :  { %v846_v50 = vrot.slane %v832_v42, %v1530_v34  ;;  %1057 = vtanh.f32 %v440_v43  ;;  %v513_v51 = vadd.f32 %v512_v49, %v178_v38 }
  0xfc   :  { %1059 = vtanh.f32 %v511_v47 }
  0xfd   :  { %v847_v52 = vcombine.low %v839_v46, %v846_v50  ;;  %1061 = vtanh.f32 %v442_v48 }
  0xfe   :  { %1063 = vtanh.f32 %v513_v51 }
  0xff   :  { %903 = vst [vmem:[%s1558_s3] sm:$0xff] %v847_v52 }
 0x105   :  { %v1058_v54 = vpop.eup %1057 }
 0x106   :  { %v1060_v56 = vpop.eup %1059 }
 0x107   :  { %v1062_v59 = vpop.eup %1061 }
 0x108   :  { %v1064_v61 = vpop.eup %1063  ;;  %v848_v62 = vcombine.low %v1058_v54, %v1062_v59  ;;  %v581_v0 = vpop.f32.mrb[4].mxu0 }
 0x109   :  { %v849_v1 = vcombine.low %v1060_v56, %v1064_v61  ;;  %v582_v3 = vadd.f32 %v581_v0, %v182_v55  ;;  %v652_v2 = vpop.f32.mrb[4].mxu1  ;;  %v583_v4 = vpop.f32.mrb[5].mxu0 }
 0x10a   :  { %v856_v5 = vrot.slane %v848_v62, %v1530_v34  ;;  %v653_v6 = vadd.f32 %v652_v2, %v190_v57  ;;  %v584_v7 = vadd.f32 %v583_v4, %v186_v58  ;;  %v654_v9 = vpop.f32.mrb[5].mxu1 }
 0x10b   :  { %v863_v13 = vrot.slane %v849_v1, %v1530_v34  ;;  %1065 = vtanh.f32 %v582_v3  ;;  %v655_v8 = vadd.f32 %v654_v9, %v194_v60 }
 0x10c   :  { %1067 = vtanh.f32 %v653_v6 }
 0x10d   :  { %v864_v10 = vcombine.low %v856_v5, %v863_v13  ;;  %1069 = vtanh.f32 %v584_v7 }
 0x10e   :  { %1071 = vtanh.f32 %v655_v8 }
 0x10f   :  { %904 = vst [vmem:[%s1558_s3 + $0x8] sm:$0xff] %v864_v10 }
 0x115   :  { %v1066_v11 = vpop.eup %1065 }
 0x116   :  { %v1068_v14 = vpop.eup %1067 }
 0x117   :  { %v1070_v63 = vpop.eup %1069 }
 0x118   :  { %v1072_v18 = vpop.eup %1071  ;;  %v865_v19 = vcombine.low %v1066_v11, %v1070_v63  ;;  %v723_v20 = vpop.f32.mrb[6].mxu0 }
 0x119   :  { %v866_v21 = vcombine.low %v1068_v14, %v1072_v18  ;;  %v724_v22 = vadd.f32 %v723_v20, %v198_v12  ;;  %v794_v23 = vpop.f32.mrb[6].mxu1  ;;  %v725_v24 = vpop.f32.mrb[7].mxu0 }
 0x11a   :  { %v873_v25 = vrot.slane %v865_v19, %v1530_v34  ;;  %v795_v27 = vadd.f32 %v794_v23, %v206_v15  ;;  %v726_v31 = vadd.f32 %v725_v24, %v202_v16  ;;  %v796_v32 = vpop.f32.mrb[7].mxu1 }
 0x11b   :  { %v880_v33 = vrot.slane %v866_v21, %v1530_v34  ;;  %1073 = vtanh.f32 %v724_v22  ;;  %v797_v26 = vadd.f32 %v796_v32, %v210_v17 }
 0x11c   :  { %1075 = vtanh.f32 %v795_v27 }
 0x11d   :  { %v881_v28 = vcombine.low %v873_v25, %v880_v33  ;;  %1077 = vtanh.f32 %v726_v31 }
 0x11e   :  { %1079 = vtanh.f32 %v797_v26 }
 0x11f   :  { %905 = vst [vmem:[%s1558_s3 + $0x10] sm:$0xff] %v881_v28 }
 0x125   :  { %v1074_v29 = vpop.eup %1073 }
 0x126   :  { %v1076_v30 = vpop.eup %1075 }
 0x127   :  { %v1078_v35 = vpop.eup %1077 }
 0x128   :  { %v1080_v36 = vpop.eup %1079  ;;  %v882_v37 = vcombine.low %v1074_v29, %v1078_v35 }
 0x129   :  { %v883_v38 = vcombine.low %v1076_v30, %v1080_v36 }
 0x12a   :  { %v890_v39 = vrot.slane %v882_v37, %v1530_v34 }
 0x12b   :  { %v897_v40 = vrot.slane %v883_v38, %v1530_v34 }
 0x12d   :  { %v898_v41 = vcombine.low %v890_v39, %v897_v40 }
 0x12f   :  { %906 = vst [vmem:[%s1558_s3 + $0x18] sm:$0xff] %v898_v41 }

// kernel: layer_vae_forward.28
= control target key start
LH: loop header
LB: loop body
LE: loop exit
PB: predicated region body
PF: predicated region fallthrough
CT: control target
= control target key end

     0   :  { %v197_v0 = vmov 0.0   ;;  %vm198_vm0 = vmmov 0   ;;  %v199_v3 = vmov 0   ;;  %vm79_vm1 = vcmask 261120   ;;  %s268_s1 = inlined_call_operand.vmem [shape: bf16[32,128], index: 1, kind: input, shape index: {}]   ;;  %s269_s0 = inlined_call_operand.vmem [shape: bf16[36,32], index: 0, kind: input, shape index: {}]   ;;  %s270_s2 = inlined_call_operand.vmem [shape: f32[36,1], index: 2, kind: input, shape index: {}]   ;;  %s271_s3 = inlined_call_operand.vmem [shape: f32[36,128], index: 3, kind: output, shape index: {}]  }
   0x1   :  { %167 = vmatprep.subr.bf16.mxu0 %v197_v0  ;;  %183 = vmatprep.subr.bf16.mxu1 %v197_v0  ;;  %v192_v1 = vld [vmem:[%s268_s1] sm:$0xff]   ;;  %v193_v2 = vld [vmem:[%s268_s1 + $0x8] sm:$0xff]   ;;  %v26_v7 = vld [vmem:[%s270_s2 + $0x10] sm:$0xff] }
   0x2   :  { %171 = vmatprep.mubr.msk.bf16.mxu0 %vm198_vm0, %v197_v0  ;;  %175 = vmatprep.mubr.msk.bf16.mxu1 %vm198_vm0, %v197_v0  ;;  %v24_v4 = vld [vmem:[%s270_s2] sm:$0xff]  ;;  %v195_v6 = vld [vmem:[%s269_s0 + $0x8] sm:$0xff]   ;;  %v27_v9 = vld [vmem:[%s270_s2 + $0x18] sm:$0xff] }
   0x3   :  { %168 = vmatpush3.bf16.msra.mxu0 %v192_v1  ;;  %185 = vmatpush3.bf16.msra.mxu1 %v192_v1  ;;  %v194_v5 = vld [vmem:[%s269_s0] sm:$0xff]   ;;  %v25_v8 = vld [vmem:[%s270_s2 + $0x8] sm:$0xff]  ;;  %v196_v11 = vld [vmem:[%s269_s0 + $0x10] ss:$0 sps:$4 sm:$0x33]  }
   0x4   :  { %169 = vmatprep.subr.bf16.mxu0 %v197_v0  ;;  %184 = vmatprep.subr.bf16.mxu1 %v197_v0  ;;  %v28_v10 = vld [vmem:[%s270_s2 + $0x20] sm:$0xf] }
   0x5   :  { %190 = vset.pattern.permute.xlu0 %v199_v3  ;;  %191 = vset.pattern.permute.xlu1 %v199_v3 }
   0x6   :  { %31 = vperm.xlu0 %190, %v24_v4   ;;  %41 = vperm.xlu1 %191, %v26_v7  }
   0x7   :  { %170 = vmatpush3.bf16.msra.mxu0 %v193_v2  ;;  %186 = vmatpush3.bf16.msra.mxu1 %v193_v2 }
   0xa   :  { %172 = vmatmul.mubr.msk.bf16.vlgmr.msra.gmra.mrb[0].mxu0 %vm79_vm1, %v194_v5  ;;  %176 = vmatmul.mubr.msk.bf16.vlgmr.msra.gmra.mrb[0].mxu1 %vm79_vm1, %v195_v6 }
   0xb   :  { %179 = vmatprep.mubr.msk.bf16.mxu1 %vm198_vm0, %v197_v0  ;;  %36 = vperm.xlu0 %190, %v25_v8  }
   0xc   :  { %46 = vperm.xlu1 %191, %v27_v9  }
   0xf   :  { %51 = vperm.xlu0 %190, %v28_v10  }
  0x12   :  { %180 = vmatmul.mubr.msk.bf16.gmra.mrb[4].mxu1 %vm79_vm1, %v196_v11 }
  0x85   :  { %v32_v12 = vpop.permute.xlu0 %31  ;;  %v42_v13 = vpop.permute.xlu1 %41 }
  0x8a   :  { %v37_v14 = vpop.permute.xlu0 %36 }
  0x8b   :  { %v47_v15 = vpop.permute.xlu1 %46 }
  0x8e   :  { %v52_v28 = vpop.permute.xlu0 %51 }
  0xdd   :  { %v123_v16 = vpop.f32.mrb[0].mxu0  ;;  %v131_v17 = vpop.f32.mrb[0].mxu1 }
  0xde   :  { %v124_v18 = vadd.f32 %v123_v16, %v32_v12  ;;  %v132_v19 = vadd.f32 %v131_v17, %v42_v13  ;;  %v173_v20 = vpop.f32.mrb[1].mxu0  ;;  %v177_v21 = vpop.f32.mrb[1].mxu1 }
  0xdf   :  { %v126_v22 = vpop.f32.mrb[2].mxu0  ;;  %v134_v23 = vpop.f32.mrb[2].mxu1 }
  0xe0   :  { %145 = vst [vmem:[%s271_s3] sm:$0xff] %v124_v18  ;;  %147 = vst [vmem:[%s271_s3 + $0x10] sm:$0xff] %v132_v19  ;;  %v127_v24 = vadd.f32 %v126_v22, %v37_v14  ;;  %v135_v25 = vadd.f32 %v134_v23, %v47_v15  ;;  %v178_v26 = vpop.f32.mrb[3].mxu1  ;;  %v174_v27 = vpop.f32.mrb[3].mxu0 }
  0xe2   :  { %146 = vst [vmem:[%s271_s3 + $0x8] sm:$0xff] %v127_v24  ;;  %148 = vst [vmem:[%s271_s3 + $0x18] sm:$0xff] %v135_v25 }
  0xe5   :  { %v139_v29 = vpop.f32.mrb[4].mxu1 }
  0xe6   :  { %v140_v30 = vadd.f32 %v139_v29, %v52_v28  ;;  %v181_v31 = vpop.f32.mrb[5].mxu1 }
  0xe7   :  { %v142_v32 = vpop.f32.mrb[6].mxu1 }
  0xe8   :  { %149 = vst [vmem:[%s271_s3 + $0x20] sm:$0xf] %v140_v30  ;;  %v182_v33 = vpop.f32.mrb[7].mxu1 }

// kernel: layer_vae_forward.31
= control target key start
LH: loop header
LB: loop body
LE: loop exit
PB: predicated region body
PF: predicated region fallthrough
CT: control target
= control target key end

     0   :  { %v539_v1 = vmov 0   ;;  %vm166_vm0 = vcmask 1041408   ;;  %vm162_vm1 = vcmask 293888   ;;  %v540_v36 = vmov 0.0   ;;  %s666_s1 = inlined_call_operand.vmem [shape: bf16[36,1152], index: 1, kind: input, shape index: {}]   ;;  %s667_s0 = inlined_call_operand.vmem [shape: bf16[4,36], index: 0, kind: input, shape index: {}]   ;;  %s668_s2 = inlined_call_operand.vmem [shape: f32[4,1], index: 2, kind: input, shape index: {}]   ;;  %s669_s3 = inlined_call_operand.vmem [shape: f32[4,1152], index: 3, kind: output, shape index: {}]  }
   0x1   :  { %v486_v0 = vld [vmem:[%s666_s1 + $0x4] ss:$36 sps:$4 sm:$0xff]   ;;  %226 = vmatprep.mubr.bf16.mxu0 %v539_v1  ;;  %267 = vmatprep.mubr.bf16.mxu1 %v539_v1  ;;  %v489_v3 = vld [vmem:[%s666_s1 + $0x4c] ss:$36 sps:$4 sm:$0xff]   ;;  %v497_v10 = vld [vmem:[%s666_s1 + $0x54] ss:$36 sps:$4 sm:$0xff]  }
   0x2   :  { %v488_v2 = vld [vmem:[%s666_s1] ss:$36 sps:$4 sm:$0xff]   ;;  %485 = vset.pattern.permute.xlu0 %v539_v1  ;;  %194 = vmatprep.subr.bf16.mxu0 %v486_v0  ;;  %v491_v4 = vld [vmem:[%s666_s1 + $0x48] ss:$36 sps:$4 sm:$0xff]   ;;  %v36_v7 = vld [vmem:[%s666_s1 + $0x90] sm:$0x33] }
   0x3   :  { %195 = vmatpush1.bf16.msra.mxu0 %v488_v2  ;;  %v492_v5 = vld [vmem:[%s666_s1 + $0xc] ss:$36 sps:$4 sm:$0xff]   ;;  %v451_v8 = vcombine.high %v36_v7, %v36_v7  ;;  %v450_v9 = vcombine.low %v36_v7, %v36_v7  ;;  %v37_v12 = vld [vmem:[%s666_s1 + $0x98] sm:$0x33]  ;;  %v15_v17 = vld [vmem:[%s667_s0] sm:$0x3] }
   0x4   :  { %v494_v6 = vld [vmem:[%s666_s1 + $0x8] ss:$36 sps:$4 sm:$0xff]   ;;  %196 = vmatprep.subr.bf16.mxu0 %v489_v3  ;;  %235 = vmatprep.subr.bf16.mxu1 %v492_v5  ;;  %v499_v11 = vld [vmem:[%s666_s1 + $0x50] ss:$36 sps:$4 sm:$0xff]   ;;  %v453_v15 = vcombine.high %v37_v12, %v37_v12  ;;  %v452_v16 = vcombine.low %v37_v12, %v37_v12  ;;  %v510_v20 = vld [vmem:[%s666_s1 + $0x1c] ss:$36 sps:$4 sm:$0xff]  }
   0x5   :  { %236 = vmatpush1.bf16.msra.mxu1 %v494_v6  ;;  %v168_v13 = vsel %vm166_vm0, %v450_v9, 0  ;;  %v502_v14 = vld [vmem:[%s666_s1 + $0x14] ss:$36 sps:$4 sm:$0xff]   ;;  %v507_v21 = vld [vmem:[%s666_s1 + $0x5c] ss:$36 sps:$4 sm:$0xff]   ;;  %vm541_vm2 = vmmov 0  }
   0x6   :  { %237 = vmatprep.subr.bf16.mxu1 %v497_v10  ;;  %v500_v18 = vld [vmem:[%s666_s1 + $0x10] ss:$36 sps:$4 sm:$0xff]   ;;  %v174_v19 = vsel %vm166_vm0, %v452_v16, 0  ;;  %v38_v22 = vld [vmem:[%s666_s1 + $0xa0] sm:$0x33] }
   0x7   :  { %197 = vmatpush1.bf16.msra.mxu0 %v491_v4  ;;  %v508_v23 = vld [vmem:[%s666_s1 + $0x18] ss:$36 sps:$4 sm:$0xff]   ;;  %v515_v25 = vld [vmem:[%s666_s1 + $0x64] ss:$36 sps:$4 sm:$0xff]   ;;  %v41_v26 = vld [vmem:[%s668_s2] sm:$0xf]  ;;  %v455_v27 = vcombine.high %v38_v22, %v38_v22  ;;  %v454_v28 = vcombine.low %v38_v22, %v38_v22 }
   0x8   :  { %459 = vmatprep.subr.msk.bf16.mxu0 %vm166_vm0, %v451_v8  ;;  %v505_v24 = vld [vmem:[%s666_s1 + $0x58] ss:$36 sps:$4 sm:$0xff]   ;;  %v39_v29 = vld [vmem:[%s666_s1 + $0xa8] sm:$0x33]  ;;  %44 = vperm.xlu0 %485, %v41_v26   ;;  %v513_v30 = vld [vmem:[%s666_s1 + $0x60] ss:$36 sps:$4 sm:$0xff]  }
   0x9   :  { %238 = vmatpush1.bf16.msra.mxu1 %v499_v11  ;;  %v457_v31 = vcombine.high %v39_v29, %v39_v29  ;;  %v456_v32 = vcombine.low %v39_v29, %v39_v29  ;;  %v180_v33 = vsel %vm166_vm0, %v454_v28, 0  ;;  %v516_v34 = vld [vmem:[%s666_s1 + $0x20] ss:$36 sps:$4 sm:$0xff]   ;;  %v519_v37 = vld [vmem:[%s666_s1 + $0x68] ss:$36 sps:$4 sm:$0xff]  }
   0xa   :  { %461 = vmatprep.subr.msk.bf16.mxu1 %vm166_vm0, %v453_v15  ;;  %v520_v38 = vld [vmem:[%s666_s1 + $0xb0] ss:$0 sps:$4 sm:$0x33]  }
   0xb   :  { %199 = vmatpush1.bf16.msra.mxu0 %v168_v13  ;;  %v186_v35 = vsel %vm166_vm0, %v456_v32, 0  ;;  %v192_v39 = vsel %vm166_vm0, %v520_v38, 0 }
   0xc   :  { %276 = vmatprep.subr.bf16.mxu0 %v502_v14 }
   0xd   :  { %240 = vmatpush1.bf16.msra.mxu1 %v174_v19 }
   0xe   :  { %460 = vmatmul.mubr.msk.bf16.vlgmr.msra.gmra.mrb[0].mxu0 %vm162_vm1, %v15_v17  ;;  %317 = vmatprep.subr.bf16.mxu1 %v510_v20 }
   0xf   :  { %277 = vmatpush1.bf16.msra.mxu0 %v500_v18  ;;  %308 = vmatprep.mubr.bf16.mxu0 %v539_v1 }
  0x10   :  { %278 = vmatprep.subr.bf16.mxu0 %v507_v21  ;;  %462 = vmatmul.mubr.msk.bf16.vlgmr.msra.gmra.mrb[0].mxu1 %vm162_vm1, %v15_v17 }
  0x11   :  { %318 = vmatpush1.bf16.msra.mxu1 %v508_v23  ;;  %349 = vmatprep.mubr.bf16.mxu1 %v539_v1 }
  0x12   :  { %319 = vmatprep.subr.bf16.mxu1 %v515_v25 }
  0x13   :  { %279 = vmatpush1.bf16.msra.mxu0 %v505_v24 }
  0x14   :  { %463 = vmatprep.subr.msk.bf16.mxu0 %vm166_vm0, %v455_v27 }
  0x15   :  { %320 = vmatpush1.bf16.msra.mxu1 %v513_v30 }
  0x16   :  { %465 = vmatprep.subr.msk.bf16.mxu1 %vm166_vm0, %v457_v31 }
  0x17   :  { %281 = vmatpush1.bf16.msra.mxu0 %v180_v33 }
  0x18   :  { %472 = vmatprep.subr.bf16.mxu0 %v540_v36 }
  0x19   :  { %322 = vmatpush1.bf16.msra.mxu1 %v186_v35 }
  0x1a   :  { %464 = vmatmul.mubr.msk.bf16.vlgmr.msra.gmra.mrb[4].mxu0 %vm162_vm1, %v15_v17 }
  0x1b   :  { %473 = vmatpush3.bf16.msra.mxu0 %v516_v34  ;;  %478 = vmatprep.mubr.msk.bf16.mxu0 %vm541_vm2, %v540_v36 }
  0x1c   :  { %474 = vmatprep.subr.bf16.mxu0 %v540_v36  ;;  %466 = vmatmul.mubr.msk.bf16.vlgmr.msra.gmra.mrb[4].mxu1 %vm162_vm1, %v15_v17 }
  0x1f   :  { %475 = vmatpush3.bf16.msra.mxu0 %v519_v37 }
  0x20   :  { %476 = vmatprep.subr.bf16.mxu0 %v540_v36 }
  0x23   :  { %477 = vmatpush3.bf16.msra.mxu0 %v192_v39 }
  0x26   :  { %479 = vmatmul.mubr.msk.bf16.vlgmr.msra.gmra.mrb[8].mxu0 %vm162_vm1, %v15_v17 }
  0x87   :  { %v45_v40 = vpop.permute.xlu0 %44 }
  0xe1   :  { %v228_v41 = vpop.f32.mrb[0].mxu0 }
  0xe2   :  { %v229_v42 = vadd.f32 %v228_v41, %v45_v40  ;;  %v230_v43 = vpop.f32.mrb[1].mxu0 }
  0xe3   :  { %v231_v44 = vadd.f32 %v230_v43, %v45_v40  ;;  %v232_v45 = vpop.f32.mrb[2].mxu0  ;;  %v269_v47 = vpop.f32.mrb[0].mxu1 }
  0xe4   :  { %521 = vtanh.f32 %v229_v42  ;;  %v233_v46 = vpop.f32.mrb[3].mxu0  ;;  %v270_v48 = vadd.f32 %v269_v47, %v45_v40  ;;  %v271_v49 = vpop.f32.mrb[1].mxu1 }
  0xe5   :  { %523 = vtanh.f32 %v231_v44  ;;  %v272_v50 = vadd.f32 %v271_v49, %v45_v40  ;;  %v273_v51 = vpop.f32.mrb[2].mxu1 }
  0xe6   :  { %525 = vtanh.f32 %v270_v48  ;;  %v274_v52 = vpop.f32.mrb[3].mxu1 }
  0xe7   :  { %527 = vtanh.f32 %v272_v50 }
  0xed   :  { %v310_v53 = vpop.f32.mrb[4].mxu0 }
  0xee   :  { %v522_v54 = vpop.eup %521  ;;  %v311_v55 = vadd.f32 %v310_v53, %v45_v40  ;;  %v312_v56 = vpop.f32.mrb[5].mxu0 }
  0xef   :  { %v524_v57 = vpop.eup %523  ;;  %v313_v58 = vadd.f32 %v312_v56, %v45_v40  ;;  %v314_v59 = vpop.f32.mrb[6].mxu0 }
  0xf0   :  { %v415_v60 = vcombine.low %v522_v54, %v524_v57  ;;  %529 = vtanh.f32 %v311_v55  ;;  %v315_v61 = vpop.f32.mrb[7].mxu0  ;;  %v351_v62 = vpop.f32.mrb[4].mxu1 }
  0xf1   :  { %v526_v63 = vpop.eup %525  ;;  %531 = vtanh.f32 %v313_v58  ;;  %v352_v0 = vadd.f32 %v351_v62, %v45_v40  ;;  %v353_v1 = vpop.f32.mrb[5].mxu1 }
  0xf2   :  { %v528_v2 = vpop.eup %527  ;;  %423 = vst [vmem:[%s669_s3] sm:$0xff] %v415_v60  ;;  %v354_v3 = vadd.f32 %v353_v1, %v45_v40  ;;  %v355_v4 = vpop.f32.mrb[6].mxu1 }
  0xf3   :  { %v416_v5 = vcombine.low %v526_v63, %v528_v2  ;;  %533 = vtanh.f32 %v352_v0  ;;  %v356_v6 = vpop.f32.mrb[7].mxu1 }
  0xf4   :  { %535 = vtanh.f32 %v354_v3 }
  0xf5   :  { %424 = vst [vmem:[%s669_s3 + $0x8] sm:$0xff] %v416_v5 }
  0xf9   :  { %v392_v7 = vpop.f32.mrb[8].mxu0 }
  0xfa   :  { %v530_v8 = vpop.eup %529  ;;  %v393_v9 = vadd.f32 %v392_v7, %v45_v40  ;;  %v480_v10 = vpop.f32.mrb[9].mxu0 }
  0xfb   :  { %v532_v11 = vpop.eup %531  ;;  %v395_v12 = vpop.f32.mrb[10].mxu0 }
  0xfc   :  { %v417_v13 = vcombine.low %v530_v8, %v532_v11  ;;  %537 = vtanh.f32 %v393_v9  ;;  %v481_v14 = vpop.f32.mrb[11].mxu0 }
  0xfd   :  { %v534_v15 = vpop.eup %533 }
  0xfe   :  { %v536_v16 = vpop.eup %535  ;;  %425 = vst [vmem:[%s669_s3 + $0x10] sm:$0xff] %v417_v13 }
  0xff   :  { %v418_v17 = vcombine.low %v534_v15, %v536_v16 }
 0x101   :  { %426 = vst [vmem:[%s669_s3 + $0x18] sm:$0xff] %v418_v17 }
 0x106   :  { %v538_v18 = vpop.eup %537 }
 0x107   :  { %427 = vst [vmem:[%s669_s3 + $0x20] sm:$0xf] %v538_v18 }

</bundles_post_ra>
